<compile_context>
chip_gen: v7x
topology: tpu7x:2x2x1
jax: 0.10.0
libtpu: 0.0.40
codegen_flags: <defaults>
</compile_context>

<pallas_src>
import functools

import jax
import jax.numpy as jnp
from jax.experimental import pallas as pl
from jax.experimental.pallas import tpu as pltpu


# ----------------------------------------------------------------------------
# GRU cell math (PyTorch gate order [r, z, n]; n uses r * (W_hn h + b_hn)).
# gx / gh are (B, 3H) with gates fused along the last axis.
# ----------------------------------------------------------------------------
def _gru_cell(gx, gh, h, H):
    r = jax.nn.sigmoid(gx[:, :H] + gh[:, :H])
    z = jax.nn.sigmoid(gx[:, H:2 * H] + gh[:, H:2 * H])
    n = jnp.tanh(gx[:, 2 * H:] + r * gh[:, 2 * H:])
    return (1.0 - z) * n + z * h


# ----------------------------------------------------------------------------
# Single fused VAE forward kernel.
#   inputs : time-major embedded sequences, lengths, eps, all (packed) weights
#   outputs: logits (T*B, V) time-major, stats (B, 3L) = [mean | logvar | z]
# ----------------------------------------------------------------------------
def _vae_fused_kernel(x_ref, xr_ref, len_ref, eps_ref,
                      wxa_ref, bxa_ref, wxb_ref, bxb_ref,
                      whe_ref, bhe_ref, whd_ref, bhd_ref,
                      wml1_ref, bml1_ref, wml2_ref, bml2_ref,
                      fchw_ref, fchb_ref, fcw_ref, fcb_ref,
                      logits_ref, stats_ref, *, T, B, H, L):
    G = 3 * H

    # ---- hoisted input projections: 2 large MXU dots ----
    x = x_ref[...]                                  # (T*B, E) time-major (fwd/dec)
    xr = xr_ref[...]                                # (T*B, E) reversed (bwd)
    gx_a = jnp.dot(x, wxa_ref[...],
                   preferred_element_type=jnp.float32) + bxa_ref[...]   # (T*B, 2G)
    gx_b = jnp.dot(xr, wxb_ref[...],
                   preferred_element_type=jnp.float32) + bxb_ref[...]   # (T*B, G)
    gx_f = gx_a[:, :G]                              # encoder-fwd gates
    gx_d = gx_a[:, G:]                              # decoder gates

    lens = len_ref[...]                             # (B, 1) int32
    whe = whe_ref[...]                              # (2H, 2G) block-diag [fwd|bwd]
    bhe = bhe_ref[...]                              # (1, 2G)

    # ---- bidirectional encoder recurrence (block-diag fused, fully unrolled) ----
    h_f = jnp.zeros((B, H), jnp.float32)
    h_b = jnp.zeros((B, H), jnp.float32)
    for t in range(T):
        h_cat = jnp.concatenate([h_f, h_b], axis=-1)           # (B, 2H)
        gh = jnp.dot(h_cat, whe, preferred_element_type=jnp.float32) + bhe
        sl = slice(t * B, (t + 1) * B)
        hf_new = _gru_cell(gx_f[sl], gh[:, :G], h_f, H)
        hb_new = _gru_cell(gx_b[sl], gh[:, G:], h_b, H)
        keep = lens > t                                          # (B, 1) bool
        # packed-sequence semantics: freeze hidden state past each valid length
        h_f = jnp.where(keep, hf_new, h_f)
        h_b = jnp.where(keep, hb_new, h_b)

    # torch.cat((hidden[-1], hidden[-2]), dim=-1) == [backward, forward]
    hidden = jnp.concatenate([h_b, h_f], axis=-1)               # (B, 2H)

    # ---- fused latent heads: mean / logvar MLPs + reparameterize + fc_hidden ----
    h1 = jnp.maximum(
        jnp.dot(hidden, wml1_ref[...],
                preferred_element_type=jnp.float32) + bml1_ref[...], 0.0)  # (B, 4H)
    ml2 = jnp.dot(h1, wml2_ref[...],
                  preferred_element_type=jnp.float32) + bml2_ref[...]      # (B, 2L)
    mean = ml2[:, :L]
    logvar = ml2[:, L:]
    z = mean + eps_ref[...] * jnp.exp(0.5 * logvar)
    h_d = jnp.dot(z, fchw_ref[...],
                  preferred_element_type=jnp.float32) + fchb_ref[...]      # (B, H)

    # ---- decoder recurrence (fully unrolled), fc projection deferred ----
    whd = whd_ref[...]                              # (H, G)
    bhd = bhd_ref[...]                              # (1, G)
    hs = []
    for t in range(T):
        gh = jnp.dot(h_d, whd, preferred_element_type=jnp.float32) + bhd
        sl = slice(t * B, (t + 1) * B)
        h_d = _gru_cell(gx_d[sl], gh, h_d, H)
        hs.append(h_d)
    hs_all = jnp.concatenate(hs, axis=0)            # (T*B, H), time-major

    # one (T*B, H) x (H, V) dot instead of T tiny per-step dots
    logits = jnp.dot(hs_all, fcw_ref[...],
                     preferred_element_type=jnp.float32) + fcb_ref[...]    # (T*B, V)
    logits_ref[...] = logits
    stats_ref[...] = jnp.concatenate([mean, logvar, z], axis=-1)            # (B, 3L)


def _full_spec(shape):
    n = len(shape)
    return pl.BlockSpec(shape, lambda i, _n=n: (0,) * _n)


def vae_fused_call(x_tm, xr_tm, lens, eps, w_xa, b_xa, w_xb, b_xb, whe, bhe,
                   whd, bhd, wml1, bml1, wml2, bml2, fchw, fchb, fcw, fcb,
                   *, T, B, H, L):
    V = fcw.shape[1]
    inputs = (x_tm, xr_tm, lens, eps, w_xa, b_xa, w_xb, b_xb, whe, bhe,
              whd, bhd, wml1, bml1, wml2, bml2, fchw, fchb, fcw, fcb)
    kernel = functools.partial(_vae_fused_kernel, T=T, B=B, H=H, L=L)
    return pl.pallas_call(
        kernel,
        grid=(1,),
        in_specs=[_full_spec(a.shape) for a in inputs],
        out_specs=[_full_spec((T * B, V)), _full_spec((B, 3 * L))],
        out_shape=(jax.ShapeDtypeStruct((T * B, V), jnp.float32),
                   jax.ShapeDtypeStruct((B, 3 * L), jnp.float32)),
        compiler_params=pltpu.CompilerParams(
            dimension_semantics=("arbitrary",)),
    )(*inputs)


# ----------------------------------------------------------------------------
# Parameter construction (deterministic; shapes from VAE.__init__, gate order
# [r, z, n] fused along the last axis as in PyTorch).
# ----------------------------------------------------------------------------
def init_params(key, V, E, H, L, num_layers=1, bidirectional=True):
    assert num_layers == 1 and bidirectional, "demo config: num_layers=1, bidirectional"
    G = 3 * H
    F = 2 * H                                            # dim_flatten
    ks = jax.random.split(key, 25)
    u = lambda k, shape, s=0.1: jax.random.uniform(k, shape, jnp.float32, -s, s)
    return {
        "embedding": jax.random.normal(ks[0], (V, E), jnp.float32) * 0.1,
        # encoder fwd / bwd and decoder GRU weights
        "w_ih_fwd": u(ks[1], (E, G)), "b_ih_fwd": u(ks[2], (1, G)),
        "w_ih_bwd": u(ks[3], (E, G)), "b_ih_bwd": u(ks[4], (1, G)),
        "w_ih_dec": u(ks[5], (E, G)), "b_ih_dec": u(ks[6], (1, G)),
        "w_hh_fwd": u(ks[7], (H, G)), "b_hh_fwd": u(ks[8], (1, G)),
        "w_hh_bwd": u(ks[9], (H, G)), "b_hh_bwd": u(ks[10], (1, G)),
        "w_hh_dec": u(ks[11], (H, G)), "b_hh_dec": u(ks[12], (1, G)),
        # mlp_mean: Linear(F, F) -> ReLU -> Linear(F, L)
        "mean_w1": u(ks[13], (F, F)), "mean_b1": u(ks[14], (1, F)),
        "mean_w2": u(ks[15], (F, L)), "mean_b2": u(ks[16], (1, L)),
        # mlp_logvar
        "lv_w1": u(ks[17], (F, F)), "lv_b1": u(ks[18], (1, F)),
        "lv_w2": u(ks[19], (F, L)), "lv_b2": u(ks[20], (1, L)),
        # fc_hidden: Linear(L, H * num_layers)
        "fch_w": u(ks[21], (L, H)), "fch_b": u(ks[22], (1, H)),
        # fc: Linear(H, V)
        "fc_w": u(ks[23], (H, V)), "fc_b": u(ks[24], (1, V)),
    }


# ----------------------------------------------------------------------------
# Full VAE forward (eval mode).
# ----------------------------------------------------------------------------
def vae_forward(params, src, length, eps_key):
    B, T = src.shape
    E = params["embedding"].shape[1]
    H = params["w_hh_dec"].shape[0]
    L = params["fch_w"].shape[0]
    V = params["fc_w"].shape[1]
    G = 3 * H
    F = 2 * H

    # TODO(synk): embedding gather, per-example sequence reversal and eps RNG stay
    # in XLA glue (data-dependent gather has no clean tiny-shape Pallas win).
    emb = params["embedding"][src]                        # (B, T, E)

    # Backward-direction encoder input: reverse each sequence within its valid
    # length (packed-sequence semantics); padding rows are frozen in-kernel.
    t_idx = jnp.arange(T)
    rev_idx = jnp.where(t_idx[None, :] < length[:, None],
                        length[:, None] - 1 - t_idx[None, :],
                        t_idx[None, :])
    emb_rev = jnp.take_along_axis(emb, rev_idx[:, :, None], axis=1)

    x_tm = jnp.transpose(emb, (1, 0, 2)).reshape(T * B, E)       # shared fwd + dec
    xr_tm = jnp.transpose(emb_rev, (1, 0, 2)).reshape(T * B, E)

    # ---- weight packing for the fused kernel (tiny XLA ops) ----
    w_xa = jnp.concatenate([params["w_ih_fwd"], params["w_ih_dec"]], axis=1)  # (E, 2G)
    b_xa = jnp.concatenate([params["b_ih_fwd"], params["b_ih_dec"]], axis=1)
    w_xb, b_xb = params["w_ih_bwd"], params["b_ih_bwd"]
    # block-diagonal encoder hidden-to-hidden: [fwd | bwd] along columns
    whe = jnp.zeros((F, 2 * G), jnp.float32)
    whe = whe.at[:H, :G].set(params["w_hh_fwd"])
    whe = whe.at[H:, G:].set(params["w_hh_bwd"])
    bhe = jnp.concatenate([params["b_hh_fwd"], params["b_hh_bwd"]], axis=1)
    # fused latent-head layer 1: [mean | logvar] columns; layer 2 block-diagonal
    wml1 = jnp.concatenate([params["mean_w1"], params["lv_w1"]], axis=1)      # (F, 2F)
    bml1 = jnp.concatenate([params["mean_b1"], params["lv_b1"]], axis=1)
    wml2 = jnp.zeros((2 * F, 2 * L), jnp.float32)
    wml2 = wml2.at[:F, :L].set(params["mean_w2"])
    wml2 = wml2.at[F:, L:].set(params["lv_w2"])
    bml2 = jnp.concatenate([params["mean_b2"], params["lv_b2"]], axis=1)

    lens = length.astype(jnp.int32)[:, None]                      # (B, 1)
    eps = jax.random.normal(eps_key, (B, L), jnp.float32)

    logits_flat, stats = vae_fused_call(
        x_tm, xr_tm, lens, eps, w_xa, b_xa, w_xb, b_xb, whe, bhe,
        params["w_hh_dec"], params["b_hh_dec"], wml1, bml1, wml2, bml2,
        params["fch_w"], params["fch_b"], params["fc_w"], params["fc_b"],
        T=T, B=B, H=H, L=L)

    logits = jnp.transpose(logits_flat.reshape(T, B, V), (1, 0, 2))   # (B, T, V)
    mean = stats[:, :L]
    logvar = stats[:, L:2 * L]
    z = stats[:, 2 * L:]
    return logits, mean, logvar, z


if __name__ == "__main__":
    # Small config consistent with VAE.__init__:
    # num_embeddings=64, dim_embedding=16, dim_hidden=32, dim_latent=16,
    # num_layers=1, bidirectional=True, dropout inactive (eval mode).
    V, E, H, L = 64, 16, 32, 16
    B, T = 2, 8

    key = jax.random.PRNGKey(0)
    k_param, k_src, k_eps = jax.random.split(key, 3)

    params = init_params(k_param, V, E, H, L)
    src = jax.random.randint(k_src, (B, T), 0, V, dtype=jnp.int32)
    length = jnp.array([8, 5], dtype=jnp.int32)

    fwd = jax.jit(vae_forward)
    logits, mean, logvar, z = fwd(params, src, length, k_eps)
    jax.block_until_ready((logits, mean, logvar, z))

    assert logits.shape == (B, T, V)
    assert mean.shape == (B, L) and logvar.shape == (B, L) and z.shape == (B, L)
    assert bool(jnp.all(jnp.isfinite(logits)))
    assert bool(jnp.all(jnp.isfinite(z)))
    print("KERNEL_OK")
</pallas_src>

<mosaic_0001>
module attributes {stable_mosaic.version = 11 : i64} {
  func.func @_vae_fused_kernel(%arg0: i32, %arg1: memref<16x16xf32, #tpu.memory_space<vmem>>, %arg2: memref<16x16xf32, #tpu.memory_space<vmem>>, %arg3: memref<2x1xi32, #tpu.memory_space<vmem>>, %arg4: memref<2x16xf32, #tpu.memory_space<vmem>>, %arg5: memref<16x192xf32, #tpu.memory_space<vmem>>, %arg6: memref<1x192xf32, #tpu.memory_space<vmem>>, %arg7: memref<16x96xf32, #tpu.memory_space<vmem>>, %arg8: memref<1x96xf32, #tpu.memory_space<vmem>>, %arg9: memref<64x192xf32, #tpu.memory_space<vmem>>, %arg10: memref<1x192xf32, #tpu.memory_space<vmem>>, %arg11: memref<32x96xf32, #tpu.memory_space<vmem>>, %arg12: memref<1x96xf32, #tpu.memory_space<vmem>>, %arg13: memref<64x128xf32, #tpu.memory_space<vmem>>, %arg14: memref<1x128xf32, #tpu.memory_space<vmem>>, %arg15: memref<128x32xf32, #tpu.memory_space<vmem>>, %arg16: memref<1x32xf32, #tpu.memory_space<vmem>>, %arg17: memref<16x32xf32, #tpu.memory_space<vmem>>, %arg18: memref<1x32xf32, #tpu.memory_space<vmem>>, %arg19: memref<32x64xf32, #tpu.memory_space<vmem>>, %arg20: memref<1x64xf32, #tpu.memory_space<vmem>>, %arg21: memref<16x64xf32, #tpu.memory_space<vmem>>, %arg22: memref<2x48xf32, #tpu.memory_space<vmem>>) attributes {dimension_semantics = [#tpu.dimension_semantics<arbitrary>], iteration_bounds = array<i64: 1>, scalar_prefetch = 0 : i64, scratch_operands = 0 : i64, tpu.core_type = #tpu.core_type<tc>, window_params = [{pipeline_mode = #tpu.pipeline_mode<synchronous>, transform_indices = @transform_0, window_bounds = array<i64: 16, 16>}, {pipeline_mode = #tpu.pipeline_mode<synchronous>, transform_indices = @transform_1, window_bounds = array<i64: 16, 16>}, {pipeline_mode = #tpu.pipeline_mode<synchronous>, transform_indices = @transform_2, window_bounds = array<i64: 2, 1>}, {pipeline_mode = #tpu.pipeline_mode<synchronous>, transform_indices = @transform_3, window_bounds = array<i64: 2, 16>}, {pipeline_mode = #tpu.pipeline_mode<synchronous>, transform_indices = @transform_4, window_bounds = array<i64: 16, 192>}, {pipeline_mode = #tpu.pipeline_mode<synchronous>, transform_indices = @transform_5, window_bounds = array<i64: 1, 192>}, {pipeline_mode = #tpu.pipeline_mode<synchronous>, transform_indices = @transform_6, window_bounds = array<i64: 16, 96>}, {pipeline_mode = #tpu.pipeline_mode<synchronous>, transform_indices = @transform_7, window_bounds = array<i64: 1, 96>}, {pipeline_mode = #tpu.pipeline_mode<synchronous>, transform_indices = @transform_8, window_bounds = array<i64: 64, 192>}, {pipeline_mode = #tpu.pipeline_mode<synchronous>, transform_indices = @transform_9, window_bounds = array<i64: 1, 192>}, {pipeline_mode = #tpu.pipeline_mode<synchronous>, transform_indices = @transform_10, window_bounds = array<i64: 32, 96>}, {pipeline_mode = #tpu.pipeline_mode<synchronous>, transform_indices = @transform_11, window_bounds = array<i64: 1, 96>}, {pipeline_mode = #tpu.pipeline_mode<synchronous>, transform_indices = @transform_12, window_bounds = array<i64: 64, 128>}, {pipeline_mode = #tpu.pipeline_mode<synchronous>, transform_indices = @transform_13, window_bounds = array<i64: 1, 128>}, {pipeline_mode = #tpu.pipeline_mode<synchronous>, transform_indices = @transform_14, window_bounds = array<i64: 128, 32>}, {pipeline_mode = #tpu.pipeline_mode<synchronous>, transform_indices = @transform_15, window_bounds = array<i64: 1, 32>}, {pipeline_mode = #tpu.pipeline_mode<synchronous>, transform_indices = @transform_16, window_bounds = array<i64: 16, 32>}, {pipeline_mode = #tpu.pipeline_mode<synchronous>, transform_indices = @transform_17, window_bounds = array<i64: 1, 32>}, {pipeline_mode = #tpu.pipeline_mode<synchronous>, transform_indices = @transform_18, window_bounds = array<i64: 32, 64>}, {pipeline_mode = #tpu.pipeline_mode<synchronous>, transform_indices = @transform_19, window_bounds = array<i64: 1, 64>}, {pipeline_mode = #tpu.pipeline_mode<synchronous>, transform_indices = @transform_20, window_bounds = array<i64: 16, 64>}, {pipeline_mode = #tpu.pipeline_mode<synchronous>, transform_indices = @transform_21, window_bounds = array<i64: 2, 48>}]} {
    %c0 = arith.constant 0 : index
    %c0_0 = arith.constant 0 : index
    %0 = vector.load %arg1[%c0, %c0_0] : memref<16x16xf32, #tpu.memory_space<vmem>>, vector<16x16xf32>
    %c0_1 = arith.constant 0 : index
    %c0_2 = arith.constant 0 : index
    %1 = vector.load %arg2[%c0_1, %c0_2] : memref<16x16xf32, #tpu.memory_space<vmem>>, vector<16x16xf32>
    %c0_3 = arith.constant 0 : index
    %c0_4 = arith.constant 0 : index
    %2 = vector.load %arg5[%c0_3, %c0_4] : memref<16x192xf32, #tpu.memory_space<vmem>>, vector<16x192xf32>
    %cst = arith.constant dense<0.000000e+00> : vector<16x192xf32>
    %3 = tpu.matmul %0, %2, %cst {dimension_numbers = #tpu.dot_dimension_numbers<[1], [0], [0], [1], [0, 0, 1, 1], [], []>} : vector<16x16xf32>, vector<16x192xf32>, vector<16x192xf32> -> vector<16x192xf32>
    %c0_5 = arith.constant 0 : index
    %c0_6 = arith.constant 0 : index
    %4 = vector.load %arg6[%c0_5, %c0_6] : memref<1x192xf32, #tpu.memory_space<vmem>>, vector<1x192xf32>
    %5 = vector.broadcast %4 : vector<1x192xf32> to vector<16x192xf32>
    %6 = arith.addf %3, %5 : vector<16x192xf32>
    %c0_7 = arith.constant 0 : index
    %c0_8 = arith.constant 0 : index
    %7 = vector.load %arg7[%c0_7, %c0_8] : memref<16x96xf32, #tpu.memory_space<vmem>>, vector<16x96xf32>
    %cst_9 = arith.constant dense<0.000000e+00> : vector<16x96xf32>
    %8 = tpu.matmul %1, %7, %cst_9 {dimension_numbers = #tpu.dot_dimension_numbers<[1], [0], [0], [1], [0, 0, 1, 1], [], []>} : vector<16x16xf32>, vector<16x96xf32>, vector<16x96xf32> -> vector<16x96xf32>
    %c0_10 = arith.constant 0 : index
    %c0_11 = arith.constant 0 : index
    %9 = vector.load %arg8[%c0_10, %c0_11] : memref<1x96xf32, #tpu.memory_space<vmem>>, vector<1x96xf32>
    %10 = vector.broadcast %9 : vector<1x96xf32> to vector<16x96xf32>
    %11 = arith.addf %8, %10 : vector<16x96xf32>
    %12 = vector.extract_strided_slice %6 {offsets = [0, 0], sizes = [16, 96], strides = [1, 1]} : vector<16x192xf32> to vector<16x96xf32>
    %13 = vector.extract_strided_slice %6 {offsets = [0, 96], sizes = [16, 96], strides = [1, 1]} : vector<16x192xf32> to vector<16x96xf32>
    %c0_12 = arith.constant 0 : index
    %c0_13 = arith.constant 0 : index
    %14 = vector.load %arg3[%c0_12, %c0_13] : memref<2x1xi32, #tpu.memory_space<vmem>>, vector<2x1xi32>
    %c0_14 = arith.constant 0 : index
    %c0_15 = arith.constant 0 : index
    %15 = vector.load %arg9[%c0_14, %c0_15] : memref<64x192xf32, #tpu.memory_space<vmem>>, vector<64x192xf32>
    %c0_16 = arith.constant 0 : index
    %c0_17 = arith.constant 0 : index
    %16 = vector.load %arg10[%c0_16, %c0_17] : memref<1x192xf32, #tpu.memory_space<vmem>>, vector<1x192xf32>
    %cst_18 = arith.constant 0.000000e+00 : f32
    %17 = vector.broadcast %cst_18 : f32 to vector<2x32xf32>
    %cst_19 = arith.constant 0.000000e+00 : f32
    %18 = vector.broadcast %cst_19 : f32 to vector<2x32xf32>
    %19 = tpu.concatenate %17, %18 in 1 : vector<2x32xf32>, vector<2x32xf32> -> vector<2x64xf32>
    %cst_20 = arith.constant dense<0.000000e+00> : vector<2x192xf32>
    %20 = tpu.matmul %19, %15, %cst_20 {dimension_numbers = #tpu.dot_dimension_numbers<[1], [0], [0], [1], [0, 0, 1, 1], [], []>} : vector<2x64xf32>, vector<64x192xf32>, vector<2x192xf32> -> vector<2x192xf32>
    %21 = vector.broadcast %16 : vector<1x192xf32> to vector<2x192xf32>
    %22 = arith.addf %20, %21 : vector<2x192xf32>
    %23 = vector.extract_strided_slice %12 {offsets = [0, 0], sizes = [2, 96], strides = [1, 1]} : vector<16x96xf32> to vector<2x96xf32>
    %24 = vector.extract_strided_slice %22 {offsets = [0, 0], sizes = [2, 96], strides = [1, 1]} : vector<2x192xf32> to vector<2x96xf32>
    %25 = vector.extract_strided_slice %23 {offsets = [0, 0], sizes = [2, 32], strides = [1, 1]} : vector<2x96xf32> to vector<2x32xf32>
    %26 = vector.extract_strided_slice %24 {offsets = [0, 0], sizes = [2, 32], strides = [1, 1]} : vector<2x96xf32> to vector<2x32xf32>
    %27 = arith.addf %25, %26 : vector<2x32xf32>
    %28 = arith.negf %27 : vector<2x32xf32>
    %29 = math.exp %28 : vector<2x32xf32>
    %cst_21 = arith.constant 1.000000e+00 : f32
    %30 = vector.broadcast %cst_21 : f32 to vector<2x32xf32>
    %31 = arith.addf %30, %29 : vector<2x32xf32>
    %32 = arith.divf %30, %31 : vector<2x32xf32>
    %33 = vector.extract_strided_slice %23 {offsets = [0, 32], sizes = [2, 32], strides = [1, 1]} : vector<2x96xf32> to vector<2x32xf32>
    %34 = vector.extract_strided_slice %24 {offsets = [0, 32], sizes = [2, 32], strides = [1, 1]} : vector<2x96xf32> to vector<2x32xf32>
    %35 = arith.addf %33, %34 : vector<2x32xf32>
    %36 = arith.negf %35 : vector<2x32xf32>
    %37 = math.exp %36 : vector<2x32xf32>
    %cst_22 = arith.constant 1.000000e+00 : f32
    %38 = vector.broadcast %cst_22 : f32 to vector<2x32xf32>
    %39 = arith.addf %38, %37 : vector<2x32xf32>
    %40 = arith.divf %38, %39 : vector<2x32xf32>
    %41 = vector.extract_strided_slice %23 {offsets = [0, 64], sizes = [2, 32], strides = [1, 1]} : vector<2x96xf32> to vector<2x32xf32>
    %42 = vector.extract_strided_slice %24 {offsets = [0, 64], sizes = [2, 32], strides = [1, 1]} : vector<2x96xf32> to vector<2x32xf32>
    %43 = arith.mulf %32, %42 : vector<2x32xf32>
    %44 = arith.addf %41, %43 : vector<2x32xf32>
    %45 = math.tanh %44 : vector<2x32xf32>
    %cst_23 = arith.constant 1.000000e+00 : f32
    %46 = vector.broadcast %cst_23 : f32 to vector<2x32xf32>
    %47 = arith.subf %46, %40 : vector<2x32xf32>
    %48 = arith.mulf %47, %45 : vector<2x32xf32>
    %49 = arith.mulf %40, %17 : vector<2x32xf32>
    %50 = arith.addf %48, %49 : vector<2x32xf32>
    %51 = vector.extract_strided_slice %11 {offsets = [0, 0], sizes = [2, 96], strides = [1, 1]} : vector<16x96xf32> to vector<2x96xf32>
    %52 = vector.extract_strided_slice %22 {offsets = [0, 96], sizes = [2, 96], strides = [1, 1]} : vector<2x192xf32> to vector<2x96xf32>
    %53 = vector.extract_strided_slice %51 {offsets = [0, 0], sizes = [2, 32], strides = [1, 1]} : vector<2x96xf32> to vector<2x32xf32>
    %54 = vector.extract_strided_slice %52 {offsets = [0, 0], sizes = [2, 32], strides = [1, 1]} : vector<2x96xf32> to vector<2x32xf32>
    %55 = arith.addf %53, %54 : vector<2x32xf32>
    %56 = arith.negf %55 : vector<2x32xf32>
    %57 = math.exp %56 : vector<2x32xf32>
    %cst_24 = arith.constant 1.000000e+00 : f32
    %58 = vector.broadcast %cst_24 : f32 to vector<2x32xf32>
    %59 = arith.addf %58, %57 : vector<2x32xf32>
    %60 = arith.divf %58, %59 : vector<2x32xf32>
    %61 = vector.extract_strided_slice %51 {offsets = [0, 32], sizes = [2, 32], strides = [1, 1]} : vector<2x96xf32> to vector<2x32xf32>
    %62 = vector.extract_strided_slice %52 {offsets = [0, 32], sizes = [2, 32], strides = [1, 1]} : vector<2x96xf32> to vector<2x32xf32>
    %63 = arith.addf %61, %62 : vector<2x32xf32>
    %64 = arith.negf %63 : vector<2x32xf32>
    %65 = math.exp %64 : vector<2x32xf32>
    %cst_25 = arith.constant 1.000000e+00 : f32
    %66 = vector.broadcast %cst_25 : f32 to vector<2x32xf32>
    %67 = arith.addf %66, %65 : vector<2x32xf32>
    %68 = arith.divf %66, %67 : vector<2x32xf32>
    %69 = vector.extract_strided_slice %51 {offsets = [0, 64], sizes = [2, 32], strides = [1, 1]} : vector<2x96xf32> to vector<2x32xf32>
    %70 = vector.extract_strided_slice %52 {offsets = [0, 64], sizes = [2, 32], strides = [1, 1]} : vector<2x96xf32> to vector<2x32xf32>
    %71 = arith.mulf %60, %70 : vector<2x32xf32>
    %72 = arith.addf %69, %71 : vector<2x32xf32>
    %73 = math.tanh %72 : vector<2x32xf32>
    %cst_26 = arith.constant 1.000000e+00 : f32
    %74 = vector.broadcast %cst_26 : f32 to vector<2x32xf32>
    %75 = arith.subf %74, %68 : vector<2x32xf32>
    %76 = arith.mulf %75, %73 : vector<2x32xf32>
    %77 = arith.mulf %68, %18 : vector<2x32xf32>
    %78 = arith.addf %76, %77 : vector<2x32xf32>
    %c0_i32 = arith.constant 0 : i32
    %79 = vector.broadcast %c0_i32 : i32 to vector<2x1xi32>
    %80 = arith.cmpi sgt, %14, %79 : vector<2x1xi32>
    %81 = vector.shape_cast %80 : vector<2x1xi1> to vector<2x1xi1>
    %82 = vector.broadcast %81 : vector<2x1xi1> to vector<2x32xi1>
    %83 = arith.select %82, %50, %17 : vector<2x32xi1>, vector<2x32xf32>
    %84 = vector.shape_cast %80 : vector<2x1xi1> to vector<2x1xi1>
    %85 = vector.broadcast %84 : vector<2x1xi1> to vector<2x32xi1>
    %86 = arith.select %85, %78, %18 : vector<2x32xi1>, vector<2x32xf32>
    %87 = tpu.concatenate %83, %86 in 1 : vector<2x32xf32>, vector<2x32xf32> -> vector<2x64xf32>
    %cst_27 = arith.constant dense<0.000000e+00> : vector<2x192xf32>
    %88 = tpu.matmul %87, %15, %cst_27 {dimension_numbers = #tpu.dot_dimension_numbers<[1], [0], [0], [1], [0, 0, 1, 1], [], []>} : vector<2x64xf32>, vector<64x192xf32>, vector<2x192xf32> -> vector<2x192xf32>
    %89 = vector.broadcast %16 : vector<1x192xf32> to vector<2x192xf32>
    %90 = arith.addf %88, %89 : vector<2x192xf32>
    %91 = vector.extract_strided_slice %12 {offsets = [2, 0], sizes = [2, 96], strides = [1, 1]} : vector<16x96xf32> to vector<2x96xf32>
    %92 = vector.extract_strided_slice %90 {offsets = [0, 0], sizes = [2, 96], strides = [1, 1]} : vector<2x192xf32> to vector<2x96xf32>
    %93 = vector.extract_strided_slice %91 {offsets = [0, 0], sizes = [2, 32], strides = [1, 1]} : vector<2x96xf32> to vector<2x32xf32>
    %94 = vector.extract_strided_slice %92 {offsets = [0, 0], sizes = [2, 32], strides = [1, 1]} : vector<2x96xf32> to vector<2x32xf32>
    %95 = arith.addf %93, %94 : vector<2x32xf32>
    %96 = arith.negf %95 : vector<2x32xf32>
    %97 = math.exp %96 : vector<2x32xf32>
    %cst_28 = arith.constant 1.000000e+00 : f32
    %98 = vector.broadcast %cst_28 : f32 to vector<2x32xf32>
    %99 = arith.addf %98, %97 : vector<2x32xf32>
    %100 = arith.divf %98, %99 : vector<2x32xf32>
    %101 = vector.extract_strided_slice %91 {offsets = [0, 32], sizes = [2, 32], strides = [1, 1]} : vector<2x96xf32> to vector<2x32xf32>
    %102 = vector.extract_strided_slice %92 {offsets = [0, 32], sizes = [2, 32], strides = [1, 1]} : vector<2x96xf32> to vector<2x32xf32>
    %103 = arith.addf %101, %102 : vector<2x32xf32>
    %104 = arith.negf %103 : vector<2x32xf32>
    %105 = math.exp %104 : vector<2x32xf32>
    %cst_29 = arith.constant 1.000000e+00 : f32
    %106 = vector.broadcast %cst_29 : f32 to vector<2x32xf32>
    %107 = arith.addf %106, %105 : vector<2x32xf32>
    %108 = arith.divf %106, %107 : vector<2x32xf32>
    %109 = vector.extract_strided_slice %91 {offsets = [0, 64], sizes = [2, 32], strides = [1, 1]} : vector<2x96xf32> to vector<2x32xf32>
    %110 = vector.extract_strided_slice %92 {offsets = [0, 64], sizes = [2, 32], strides = [1, 1]} : vector<2x96xf32> to vector<2x32xf32>
    %111 = arith.mulf %100, %110 : vector<2x32xf32>
    %112 = arith.addf %109, %111 : vector<2x32xf32>
    %113 = math.tanh %112 : vector<2x32xf32>
    %cst_30 = arith.constant 1.000000e+00 : f32
    %114 = vector.broadcast %cst_30 : f32 to vector<2x32xf32>
    %115 = arith.subf %114, %108 : vector<2x32xf32>
    %116 = arith.mulf %115, %113 : vector<2x32xf32>
    %117 = arith.mulf %108, %83 : vector<2x32xf32>
    %118 = arith.addf %116, %117 : vector<2x32xf32>
    %119 = vector.extract_strided_slice %11 {offsets = [2, 0], sizes = [2, 96], strides = [1, 1]} : vector<16x96xf32> to vector<2x96xf32>
    %120 = vector.extract_strided_slice %90 {offsets = [0, 96], sizes = [2, 96], strides = [1, 1]} : vector<2x192xf32> to vector<2x96xf32>
    %121 = vector.extract_strided_slice %119 {offsets = [0, 0], sizes = [2, 32], strides = [1, 1]} : vector<2x96xf32> to vector<2x32xf32>
    %122 = vector.extract_strided_slice %120 {offsets = [0, 0], sizes = [2, 32], strides = [1, 1]} : vector<2x96xf32> to vector<2x32xf32>
    %123 = arith.addf %121, %122 : vector<2x32xf32>
    %124 = arith.negf %123 : vector<2x32xf32>
    %125 = math.exp %124 : vector<2x32xf32>
    %cst_31 = arith.constant 1.000000e+00 : f32
    %126 = vector.broadcast %cst_31 : f32 to vector<2x32xf32>
    %127 = arith.addf %126, %125 : vector<2x32xf32>
    %128 = arith.divf %126, %127 : vector<2x32xf32>
    %129 = vector.extract_strided_slice %119 {offsets = [0, 32], sizes = [2, 32], strides = [1, 1]} : vector<2x96xf32> to vector<2x32xf32>
    %130 = vector.extract_strided_slice %120 {offsets = [0, 32], sizes = [2, 32], strides = [1, 1]} : vector<2x96xf32> to vector<2x32xf32>
    %131 = arith.addf %129, %130 : vector<2x32xf32>
    %132 = arith.negf %131 : vector<2x32xf32>
    %133 = math.exp %132 : vector<2x32xf32>
    %cst_32 = arith.constant 1.000000e+00 : f32
    %134 = vector.broadcast %cst_32 : f32 to vector<2x32xf32>
    %135 = arith.addf %134, %133 : vector<2x32xf32>
    %136 = arith.divf %134, %135 : vector<2x32xf32>
    %137 = vector.extract_strided_slice %119 {offsets = [0, 64], sizes = [2, 32], strides = [1, 1]} : vector<2x96xf32> to vector<2x32xf32>
    %138 = vector.extract_strided_slice %120 {offsets = [0, 64], sizes = [2, 32], strides = [1, 1]} : vector<2x96xf32> to vector<2x32xf32>
    %139 = arith.mulf %128, %138 : vector<2x32xf32>
    %140 = arith.addf %137, %139 : vector<2x32xf32>
    %141 = math.tanh %140 : vector<2x32xf32>
    %cst_33 = arith.constant 1.000000e+00 : f32
    %142 = vector.broadcast %cst_33 : f32 to vector<2x32xf32>
    %143 = arith.subf %142, %136 : vector<2x32xf32>
    %144 = arith.mulf %143, %141 : vector<2x32xf32>
    %145 = arith.mulf %136, %86 : vector<2x32xf32>
    %146 = arith.addf %144, %145 : vector<2x32xf32>
    %c1_i32 = arith.constant 1 : i32
    %147 = vector.broadcast %c1_i32 : i32 to vector<2x1xi32>
    %148 = arith.cmpi sgt, %14, %147 : vector<2x1xi32>
    %149 = vector.shape_cast %148 : vector<2x1xi1> to vector<2x1xi1>
    %150 = vector.broadcast %149 : vector<2x1xi1> to vector<2x32xi1>
    %151 = arith.select %150, %118, %83 : vector<2x32xi1>, vector<2x32xf32>
    %152 = vector.shape_cast %148 : vector<2x1xi1> to vector<2x1xi1>
    %153 = vector.broadcast %152 : vector<2x1xi1> to vector<2x32xi1>
    %154 = arith.select %153, %146, %86 : vector<2x32xi1>, vector<2x32xf32>
    %155 = tpu.concatenate %151, %154 in 1 : vector<2x32xf32>, vector<2x32xf32> -> vector<2x64xf32>
    %cst_34 = arith.constant dense<0.000000e+00> : vector<2x192xf32>
    %156 = tpu.matmul %155, %15, %cst_34 {dimension_numbers = #tpu.dot_dimension_numbers<[1], [0], [0], [1], [0, 0, 1, 1], [], []>} : vector<2x64xf32>, vector<64x192xf32>, vector<2x192xf32> -> vector<2x192xf32>
    %157 = vector.broadcast %16 : vector<1x192xf32> to vector<2x192xf32>
    %158 = arith.addf %156, %157 : vector<2x192xf32>
    %159 = vector.extract_strided_slice %12 {offsets = [4, 0], sizes = [2, 96], strides = [1, 1]} : vector<16x96xf32> to vector<2x96xf32>
    %160 = vector.extract_strided_slice %158 {offsets = [0, 0], sizes = [2, 96], strides = [1, 1]} : vector<2x192xf32> to vector<2x96xf32>
    %161 = vector.extract_strided_slice %159 {offsets = [0, 0], sizes = [2, 32], strides = [1, 1]} : vector<2x96xf32> to vector<2x32xf32>
    %162 = vector.extract_strided_slice %160 {offsets = [0, 0], sizes = [2, 32], strides = [1, 1]} : vector<2x96xf32> to vector<2x32xf32>
    %163 = arith.addf %161, %162 : vector<2x32xf32>
    %164 = arith.negf %163 : vector<2x32xf32>
    %165 = math.exp %164 : vector<2x32xf32>
    %cst_35 = arith.constant 1.000000e+00 : f32
    %166 = vector.broadcast %cst_35 : f32 to vector<2x32xf32>
    %167 = arith.addf %166, %165 : vector<2x32xf32>
    %168 = arith.divf %166, %167 : vector<2x32xf32>
    %169 = vector.extract_strided_slice %159 {offsets = [0, 32], sizes = [2, 32], strides = [1, 1]} : vector<2x96xf32> to vector<2x32xf32>
    %170 = vector.extract_strided_slice %160 {offsets = [0, 32], sizes = [2, 32], strides = [1, 1]} : vector<2x96xf32> to vector<2x32xf32>
    %171 = arith.addf %169, %170 : vector<2x32xf32>
    %172 = arith.negf %171 : vector<2x32xf32>
    %173 = math.exp %172 : vector<2x32xf32>
    %cst_36 = arith.constant 1.000000e+00 : f32
    %174 = vector.broadcast %cst_36 : f32 to vector<2x32xf32>
    %175 = arith.addf %174, %173 : vector<2x32xf32>
    %176 = arith.divf %174, %175 : vector<2x32xf32>
    %177 = vector.extract_strided_slice %159 {offsets = [0, 64], sizes = [2, 32], strides = [1, 1]} : vector<2x96xf32> to vector<2x32xf32>
    %178 = vector.extract_strided_slice %160 {offsets = [0, 64], sizes = [2, 32], strides = [1, 1]} : vector<2x96xf32> to vector<2x32xf32>
    %179 = arith.mulf %168, %178 : vector<2x32xf32>
    %180 = arith.addf %177, %179 : vector<2x32xf32>
    %181 = math.tanh %180 : vector<2x32xf32>
    %cst_37 = arith.constant 1.000000e+00 : f32
    %182 = vector.broadcast %cst_37 : f32 to vector<2x32xf32>
    %183 = arith.subf %182, %176 : vector<2x32xf32>
    %184 = arith.mulf %183, %181 : vector<2x32xf32>
    %185 = arith.mulf %176, %151 : vector<2x32xf32>
    %186 = arith.addf %184, %185 : vector<2x32xf32>
    %187 = vector.extract_strided_slice %11 {offsets = [4, 0], sizes = [2, 96], strides = [1, 1]} : vector<16x96xf32> to vector<2x96xf32>
    %188 = vector.extract_strided_slice %158 {offsets = [0, 96], sizes = [2, 96], strides = [1, 1]} : vector<2x192xf32> to vector<2x96xf32>
    %189 = vector.extract_strided_slice %187 {offsets = [0, 0], sizes = [2, 32], strides = [1, 1]} : vector<2x96xf32> to vector<2x32xf32>
    %190 = vector.extract_strided_slice %188 {offsets = [0, 0], sizes = [2, 32], strides = [1, 1]} : vector<2x96xf32> to vector<2x32xf32>
    %191 = arith.addf %189, %190 : vector<2x32xf32>
    %192 = arith.negf %191 : vector<2x32xf32>
    %193 = math.exp %192 : vector<2x32xf32>
    %cst_38 = arith.constant 1.000000e+00 : f32
    %194 = vector.broadcast %cst_38 : f32 to vector<2x32xf32>
    %195 = arith.addf %194, %193 : vector<2x32xf32>
    %196 = arith.divf %194, %195 : vector<2x32xf32>
    %197 = vector.extract_strided_slice %187 {offsets = [0, 32], sizes = [2, 32], strides = [1, 1]} : vector<2x96xf32> to vector<2x32xf32>
    %198 = vector.extract_strided_slice %188 {offsets = [0, 32], sizes = [2, 32], strides = [1, 1]} : vector<2x96xf32> to vector<2x32xf32>
    %199 = arith.addf %197, %198 : vector<2x32xf32>
    %200 = arith.negf %199 : vector<2x32xf32>
    %201 = math.exp %200 : vector<2x32xf32>
    %cst_39 = arith.constant 1.000000e+00 : f32
    %202 = vector.broadcast %cst_39 : f32 to vector<2x32xf32>
    %203 = arith.addf %202, %201 : vector<2x32xf32>
    %204 = arith.divf %202, %203 : vector<2x32xf32>
    %205 = vector.extract_strided_slice %187 {offsets = [0, 64], sizes = [2, 32], strides = [1, 1]} : vector<2x96xf32> to vector<2x32xf32>
    %206 = vector.extract_strided_slice %188 {offsets = [0, 64], sizes = [2, 32], strides = [1, 1]} : vector<2x96xf32> to vector<2x32xf32>
    %207 = arith.mulf %196, %206 : vector<2x32xf32>
    %208 = arith.addf %205, %207 : vector<2x32xf32>
    %209 = math.tanh %208 : vector<2x32xf32>
    %cst_40 = arith.constant 1.000000e+00 : f32
    %210 = vector.broadcast %cst_40 : f32 to vector<2x32xf32>
    %211 = arith.subf %210, %204 : vector<2x32xf32>
    %212 = arith.mulf %211, %209 : vector<2x32xf32>
    %213 = arith.mulf %204, %154 : vector<2x32xf32>
    %214 = arith.addf %212, %213 : vector<2x32xf32>
    %c2_i32 = arith.constant 2 : i32
    %215 = vector.broadcast %c2_i32 : i32 to vector<2x1xi32>
    %216 = arith.cmpi sgt, %14, %215 : vector<2x1xi32>
    %217 = vector.shape_cast %216 : vector<2x1xi1> to vector<2x1xi1>
    %218 = vector.broadcast %217 : vector<2x1xi1> to vector<2x32xi1>
    %219 = arith.select %218, %186, %151 : vector<2x32xi1>, vector<2x32xf32>
    %220 = vector.shape_cast %216 : vector<2x1xi1> to vector<2x1xi1>
    %221 = vector.broadcast %220 : vector<2x1xi1> to vector<2x32xi1>
    %222 = arith.select %221, %214, %154 : vector<2x32xi1>, vector<2x32xf32>
    %223 = tpu.concatenate %219, %222 in 1 : vector<2x32xf32>, vector<2x32xf32> -> vector<2x64xf32>
    %cst_41 = arith.constant dense<0.000000e+00> : vector<2x192xf32>
    %224 = tpu.matmul %223, %15, %cst_41 {dimension_numbers = #tpu.dot_dimension_numbers<[1], [0], [0], [1], [0, 0, 1, 1], [], []>} : vector<2x64xf32>, vector<64x192xf32>, vector<2x192xf32> -> vector<2x192xf32>
    %225 = vector.broadcast %16 : vector<1x192xf32> to vector<2x192xf32>
    %226 = arith.addf %224, %225 : vector<2x192xf32>
    %227 = vector.extract_strided_slice %12 {offsets = [6, 0], sizes = [2, 96], strides = [1, 1]} : vector<16x96xf32> to vector<2x96xf32>
    %228 = vector.extract_strided_slice %226 {offsets = [0, 0], sizes = [2, 96], strides = [1, 1]} : vector<2x192xf32> to vector<2x96xf32>
    %229 = vector.extract_strided_slice %227 {offsets = [0, 0], sizes = [2, 32], strides = [1, 1]} : vector<2x96xf32> to vector<2x32xf32>
    %230 = vector.extract_strided_slice %228 {offsets = [0, 0], sizes = [2, 32], strides = [1, 1]} : vector<2x96xf32> to vector<2x32xf32>
    %231 = arith.addf %229, %230 : vector<2x32xf32>
    %232 = arith.negf %231 : vector<2x32xf32>
    %233 = math.exp %232 : vector<2x32xf32>
    %cst_42 = arith.constant 1.000000e+00 : f32
    %234 = vector.broadcast %cst_42 : f32 to vector<2x32xf32>
    %235 = arith.addf %234, %233 : vector<2x32xf32>
    %236 = arith.divf %234, %235 : vector<2x32xf32>
    %237 = vector.extract_strided_slice %227 {offsets = [0, 32], sizes = [2, 32], strides = [1, 1]} : vector<2x96xf32> to vector<2x32xf32>
    %238 = vector.extract_strided_slice %228 {offsets = [0, 32], sizes = [2, 32], strides = [1, 1]} : vector<2x96xf32> to vector<2x32xf32>
    %239 = arith.addf %237, %238 : vector<2x32xf32>
    %240 = arith.negf %239 : vector<2x32xf32>
    %241 = math.exp %240 : vector<2x32xf32>
    %cst_43 = arith.constant 1.000000e+00 : f32
    %242 = vector.broadcast %cst_43 : f32 to vector<2x32xf32>
    %243 = arith.addf %242, %241 : vector<2x32xf32>
    %244 = arith.divf %242, %243 : vector<2x32xf32>
    %245 = vector.extract_strided_slice %227 {offsets = [0, 64], sizes = [2, 32], strides = [1, 1]} : vector<2x96xf32> to vector<2x32xf32>
    %246 = vector.extract_strided_slice %228 {offsets = [0, 64], sizes = [2, 32], strides = [1, 1]} : vector<2x96xf32> to vector<2x32xf32>
    %247 = arith.mulf %236, %246 : vector<2x32xf32>
    %248 = arith.addf %245, %247 : vector<2x32xf32>
    %249 = math.tanh %248 : vector<2x32xf32>
    %cst_44 = arith.constant 1.000000e+00 : f32
    %250 = vector.broadcast %cst_44 : f32 to vector<2x32xf32>
    %251 = arith.subf %250, %244 : vector<2x32xf32>
    %252 = arith.mulf %251, %249 : vector<2x32xf32>
    %253 = arith.mulf %244, %219 : vector<2x32xf32>
    %254 = arith.addf %252, %253 : vector<2x32xf32>
    %255 = vector.extract_strided_slice %11 {offsets = [6, 0], sizes = [2, 96], strides = [1, 1]} : vector<16x96xf32> to vector<2x96xf32>
    %256 = vector.extract_strided_slice %226 {offsets = [0, 96], sizes = [2, 96], strides = [1, 1]} : vector<2x192xf32> to vector<2x96xf32>
    %257 = vector.extract_strided_slice %255 {offsets = [0, 0], sizes = [2, 32], strides = [1, 1]} : vector<2x96xf32> to vector<2x32xf32>
    %258 = vector.extract_strided_slice %256 {offsets = [0, 0], sizes = [2, 32], strides = [1, 1]} : vector<2x96xf32> to vector<2x32xf32>
    %259 = arith.addf %257, %258 : vector<2x32xf32>
    %260 = arith.negf %259 : vector<2x32xf32>
    %261 = math.exp %260 : vector<2x32xf32>
    %cst_45 = arith.constant 1.000000e+00 : f32
    %262 = vector.broadcast %cst_45 : f32 to vector<2x32xf32>
    %263 = arith.addf %262, %261 : vector<2x32xf32>
    %264 = arith.divf %262, %263 : vector<2x32xf32>
    %265 = vector.extract_strided_slice %255 {offsets = [0, 32], sizes = [2, 32], strides = [1, 1]} : vector<2x96xf32> to vector<2x32xf32>
    %266 = vector.extract_strided_slice %256 {offsets = [0, 32], sizes = [2, 32], strides = [1, 1]} : vector<2x96xf32> to vector<2x32xf32>
    %267 = arith.addf %265, %266 : vector<2x32xf32>
    %268 = arith.negf %267 : vector<2x32xf32>
    %269 = math.exp %268 : vector<2x32xf32>
    %cst_46 = arith.constant 1.000000e+00 : f32
    %270 = vector.broadcast %cst_46 : f32 to vector<2x32xf32>
    %271 = arith.addf %270, %269 : vector<2x32xf32>
    %272 = arith.divf %270, %271 : vector<2x32xf32>
    %273 = vector.extract_strided_slice %255 {offsets = [0, 64], sizes = [2, 32], strides = [1, 1]} : vector<2x96xf32> to vector<2x32xf32>
    %274 = vector.extract_strided_slice %256 {offsets = [0, 64], sizes = [2, 32], strides = [1, 1]} : vector<2x96xf32> to vector<2x32xf32>
    %275 = arith.mulf %264, %274 : vector<2x32xf32>
    %276 = arith.addf %273, %275 : vector<2x32xf32>
    %277 = math.tanh %276 : vector<2x32xf32>
    %cst_47 = arith.constant 1.000000e+00 : f32
    %278 = vector.broadcast %cst_47 : f32 to vector<2x32xf32>
    %279 = arith.subf %278, %272 : vector<2x32xf32>
    %280 = arith.mulf %279, %277 : vector<2x32xf32>
    %281 = arith.mulf %272, %222 : vector<2x32xf32>
    %282 = arith.addf %280, %281 : vector<2x32xf32>
    %c3_i32 = arith.constant 3 : i32
    %283 = vector.broadcast %c3_i32 : i32 to vector<2x1xi32>
    %284 = arith.cmpi sgt, %14, %283 : vector<2x1xi32>
    %285 = vector.shape_cast %284 : vector<2x1xi1> to vector<2x1xi1>
    %286 = vector.broadcast %285 : vector<2x1xi1> to vector<2x32xi1>
    %287 = arith.select %286, %254, %219 : vector<2x32xi1>, vector<2x32xf32>
    %288 = vector.shape_cast %284 : vector<2x1xi1> to vector<2x1xi1>
    %289 = vector.broadcast %288 : vector<2x1xi1> to vector<2x32xi1>
    %290 = arith.select %289, %282, %222 : vector<2x32xi1>, vector<2x32xf32>
    %291 = tpu.concatenate %287, %290 in 1 : vector<2x32xf32>, vector<2x32xf32> -> vector<2x64xf32>
    %cst_48 = arith.constant dense<0.000000e+00> : vector<2x192xf32>
    %292 = tpu.matmul %291, %15, %cst_48 {dimension_numbers = #tpu.dot_dimension_numbers<[1], [0], [0], [1], [0, 0, 1, 1], [], []>} : vector<2x64xf32>, vector<64x192xf32>, vector<2x192xf32> -> vector<2x192xf32>
    %293 = vector.broadcast %16 : vector<1x192xf32> to vector<2x192xf32>
    %294 = arith.addf %292, %293 : vector<2x192xf32>
    %295 = vector.extract_strided_slice %12 {offsets = [8, 0], sizes = [2, 96], strides = [1, 1]} : vector<16x96xf32> to vector<2x96xf32>
    %296 = vector.extract_strided_slice %294 {offsets = [0, 0], sizes = [2, 96], strides = [1, 1]} : vector<2x192xf32> to vector<2x96xf32>
    %297 = vector.extract_strided_slice %295 {offsets = [0, 0], sizes = [2, 32], strides = [1, 1]} : vector<2x96xf32> to vector<2x32xf32>
    %298 = vector.extract_strided_slice %296 {offsets = [0, 0], sizes = [2, 32], strides = [1, 1]} : vector<2x96xf32> to vector<2x32xf32>
    %299 = arith.addf %297, %298 : vector<2x32xf32>
    %300 = arith.negf %299 : vector<2x32xf32>
    %301 = math.exp %300 : vector<2x32xf32>
    %cst_49 = arith.constant 1.000000e+00 : f32
    %302 = vector.broadcast %cst_49 : f32 to vector<2x32xf32>
    %303 = arith.addf %302, %301 : vector<2x32xf32>
    %304 = arith.divf %302, %303 : vector<2x32xf32>
    %305 = vector.extract_strided_slice %295 {offsets = [0, 32], sizes = [2, 32], strides = [1, 1]} : vector<2x96xf32> to vector<2x32xf32>
    %306 = vector.extract_strided_slice %296 {offsets = [0, 32], sizes = [2, 32], strides = [1, 1]} : vector<2x96xf32> to vector<2x32xf32>
    %307 = arith.addf %305, %306 : vector<2x32xf32>
    %308 = arith.negf %307 : vector<2x32xf32>
    %309 = math.exp %308 : vector<2x32xf32>
    %cst_50 = arith.constant 1.000000e+00 : f32
    %310 = vector.broadcast %cst_50 : f32 to vector<2x32xf32>
    %311 = arith.addf %310, %309 : vector<2x32xf32>
    %312 = arith.divf %310, %311 : vector<2x32xf32>
    %313 = vector.extract_strided_slice %295 {offsets = [0, 64], sizes = [2, 32], strides = [1, 1]} : vector<2x96xf32> to vector<2x32xf32>
    %314 = vector.extract_strided_slice %296 {offsets = [0, 64], sizes = [2, 32], strides = [1, 1]} : vector<2x96xf32> to vector<2x32xf32>
    %315 = arith.mulf %304, %314 : vector<2x32xf32>
    %316 = arith.addf %313, %315 : vector<2x32xf32>
    %317 = math.tanh %316 : vector<2x32xf32>
    %cst_51 = arith.constant 1.000000e+00 : f32
    %318 = vector.broadcast %cst_51 : f32 to vector<2x32xf32>
    %319 = arith.subf %318, %312 : vector<2x32xf32>
    %320 = arith.mulf %319, %317 : vector<2x32xf32>
    %321 = arith.mulf %312, %287 : vector<2x32xf32>
    %322 = arith.addf %320, %321 : vector<2x32xf32>
    %323 = vector.extract_strided_slice %11 {offsets = [8, 0], sizes = [2, 96], strides = [1, 1]} : vector<16x96xf32> to vector<2x96xf32>
    %324 = vector.extract_strided_slice %294 {offsets = [0, 96], sizes = [2, 96], strides = [1, 1]} : vector<2x192xf32> to vector<2x96xf32>
    %325 = vector.extract_strided_slice %323 {offsets = [0, 0], sizes = [2, 32], strides = [1, 1]} : vector<2x96xf32> to vector<2x32xf32>
    %326 = vector.extract_strided_slice %324 {offsets = [0, 0], sizes = [2, 32], strides = [1, 1]} : vector<2x96xf32> to vector<2x32xf32>
    %327 = arith.addf %325, %326 : vector<2x32xf32>
    %328 = arith.negf %327 : vector<2x32xf32>
    %329 = math.exp %328 : vector<2x32xf32>
    %cst_52 = arith.constant 1.000000e+00 : f32
    %330 = vector.broadcast %cst_52 : f32 to vector<2x32xf32>
    %331 = arith.addf %330, %329 : vector<2x32xf32>
    %332 = arith.divf %330, %331 : vector<2x32xf32>
    %333 = vector.extract_strided_slice %323 {offsets = [0, 32], sizes = [2, 32], strides = [1, 1]} : vector<2x96xf32> to vector<2x32xf32>
    %334 = vector.extract_strided_slice %324 {offsets = [0, 32], sizes = [2, 32], strides = [1, 1]} : vector<2x96xf32> to vector<2x32xf32>
    %335 = arith.addf %333, %334 : vector<2x32xf32>
    %336 = arith.negf %335 : vector<2x32xf32>
    %337 = math.exp %336 : vector<2x32xf32>
    %cst_53 = arith.constant 1.000000e+00 : f32
    %338 = vector.broadcast %cst_53 : f32 to vector<2x32xf32>
    %339 = arith.addf %338, %337 : vector<2x32xf32>
    %340 = arith.divf %338, %339 : vector<2x32xf32>
    %341 = vector.extract_strided_slice %323 {offsets = [0, 64], sizes = [2, 32], strides = [1, 1]} : vector<2x96xf32> to vector<2x32xf32>
    %342 = vector.extract_strided_slice %324 {offsets = [0, 64], sizes = [2, 32], strides = [1, 1]} : vector<2x96xf32> to vector<2x32xf32>
    %343 = arith.mulf %332, %342 : vector<2x32xf32>
    %344 = arith.addf %341, %343 : vector<2x32xf32>
    %345 = math.tanh %344 : vector<2x32xf32>
    %cst_54 = arith.constant 1.000000e+00 : f32
    %346 = vector.broadcast %cst_54 : f32 to vector<2x32xf32>
    %347 = arith.subf %346, %340 : vector<2x32xf32>
    %348 = arith.mulf %347, %345 : vector<2x32xf32>
    %349 = arith.mulf %340, %290 : vector<2x32xf32>
    %350 = arith.addf %348, %349 : vector<2x32xf32>
    %c4_i32 = arith.constant 4 : i32
    %351 = vector.broadcast %c4_i32 : i32 to vector<2x1xi32>
    %352 = arith.cmpi sgt, %14, %351 : vector<2x1xi32>
    %353 = vector.shape_cast %352 : vector<2x1xi1> to vector<2x1xi1>
    %354 = vector.broadcast %353 : vector<2x1xi1> to vector<2x32xi1>
    %355 = arith.select %354, %322, %287 : vector<2x32xi1>, vector<2x32xf32>
    %356 = vector.shape_cast %352 : vector<2x1xi1> to vector<2x1xi1>
    %357 = vector.broadcast %356 : vector<2x1xi1> to vector<2x32xi1>
    %358 = arith.select %357, %350, %290 : vector<2x32xi1>, vector<2x32xf32>
    %359 = tpu.concatenate %355, %358 in 1 : vector<2x32xf32>, vector<2x32xf32> -> vector<2x64xf32>
    %cst_55 = arith.constant dense<0.000000e+00> : vector<2x192xf32>
    %360 = tpu.matmul %359, %15, %cst_55 {dimension_numbers = #tpu.dot_dimension_numbers<[1], [0], [0], [1], [0, 0, 1, 1], [], []>} : vector<2x64xf32>, vector<64x192xf32>, vector<2x192xf32> -> vector<2x192xf32>
    %361 = vector.broadcast %16 : vector<1x192xf32> to vector<2x192xf32>
    %362 = arith.addf %360, %361 : vector<2x192xf32>
    %363 = vector.extract_strided_slice %12 {offsets = [10, 0], sizes = [2, 96], strides = [1, 1]} : vector<16x96xf32> to vector<2x96xf32>
    %364 = vector.extract_strided_slice %362 {offsets = [0, 0], sizes = [2, 96], strides = [1, 1]} : vector<2x192xf32> to vector<2x96xf32>
    %365 = vector.extract_strided_slice %363 {offsets = [0, 0], sizes = [2, 32], strides = [1, 1]} : vector<2x96xf32> to vector<2x32xf32>
    %366 = vector.extract_strided_slice %364 {offsets = [0, 0], sizes = [2, 32], strides = [1, 1]} : vector<2x96xf32> to vector<2x32xf32>
    %367 = arith.addf %365, %366 : vector<2x32xf32>
    %368 = arith.negf %367 : vector<2x32xf32>
    %369 = math.exp %368 : vector<2x32xf32>
    %cst_56 = arith.constant 1.000000e+00 : f32
    %370 = vector.broadcast %cst_56 : f32 to vector<2x32xf32>
    %371 = arith.addf %370, %369 : vector<2x32xf32>
    %372 = arith.divf %370, %371 : vector<2x32xf32>
    %373 = vector.extract_strided_slice %363 {offsets = [0, 32], sizes = [2, 32], strides = [1, 1]} : vector<2x96xf32> to vector<2x32xf32>
    %374 = vector.extract_strided_slice %364 {offsets = [0, 32], sizes = [2, 32], strides = [1, 1]} : vector<2x96xf32> to vector<2x32xf32>
    %375 = arith.addf %373, %374 : vector<2x32xf32>
    %376 = arith.negf %375 : vector<2x32xf32>
    %377 = math.exp %376 : vector<2x32xf32>
    %cst_57 = arith.constant 1.000000e+00 : f32
    %378 = vector.broadcast %cst_57 : f32 to vector<2x32xf32>
    %379 = arith.addf %378, %377 : vector<2x32xf32>
    %380 = arith.divf %378, %379 : vector<2x32xf32>
    %381 = vector.extract_strided_slice %363 {offsets = [0, 64], sizes = [2, 32], strides = [1, 1]} : vector<2x96xf32> to vector<2x32xf32>
    %382 = vector.extract_strided_slice %364 {offsets = [0, 64], sizes = [2, 32], strides = [1, 1]} : vector<2x96xf32> to vector<2x32xf32>
    %383 = arith.mulf %372, %382 : vector<2x32xf32>
    %384 = arith.addf %381, %383 : vector<2x32xf32>
    %385 = math.tanh %384 : vector<2x32xf32>
    %cst_58 = arith.constant 1.000000e+00 : f32
    %386 = vector.broadcast %cst_58 : f32 to vector<2x32xf32>
    %387 = arith.subf %386, %380 : vector<2x32xf32>
    %388 = arith.mulf %387, %385 : vector<2x32xf32>
    %389 = arith.mulf %380, %355 : vector<2x32xf32>
    %390 = arith.addf %388, %389 : vector<2x32xf32>
    %391 = vector.extract_strided_slice %11 {offsets = [10, 0], sizes = [2, 96], strides = [1, 1]} : vector<16x96xf32> to vector<2x96xf32>
    %392 = vector.extract_strided_slice %362 {offsets = [0, 96], sizes = [2, 96], strides = [1, 1]} : vector<2x192xf32> to vector<2x96xf32>
    %393 = vector.extract_strided_slice %391 {offsets = [0, 0], sizes = [2, 32], strides = [1, 1]} : vector<2x96xf32> to vector<2x32xf32>
    %394 = vector.extract_strided_slice %392 {offsets = [0, 0], sizes = [2, 32], strides = [1, 1]} : vector<2x96xf32> to vector<2x32xf32>
    %395 = arith.addf %393, %394 : vector<2x32xf32>
    %396 = arith.negf %395 : vector<2x32xf32>
    %397 = math.exp %396 : vector<2x32xf32>
    %cst_59 = arith.constant 1.000000e+00 : f32
    %398 = vector.broadcast %cst_59 : f32 to vector<2x32xf32>
    %399 = arith.addf %398, %397 : vector<2x32xf32>
    %400 = arith.divf %398, %399 : vector<2x32xf32>
    %401 = vector.extract_strided_slice %391 {offsets = [0, 32], sizes = [2, 32], strides = [1, 1]} : vector<2x96xf32> to vector<2x32xf32>
    %402 = vector.extract_strided_slice %392 {offsets = [0, 32], sizes = [2, 32], strides = [1, 1]} : vector<2x96xf32> to vector<2x32xf32>
    %403 = arith.addf %401, %402 : vector<2x32xf32>
    %404 = arith.negf %403 : vector<2x32xf32>
    %405 = math.exp %404 : vector<2x32xf32>
    %cst_60 = arith.constant 1.000000e+00 : f32
    %406 = vector.broadcast %cst_60 : f32 to vector<2x32xf32>
    %407 = arith.addf %406, %405 : vector<2x32xf32>
    %408 = arith.divf %406, %407 : vector<2x32xf32>
    %409 = vector.extract_strided_slice %391 {offsets = [0, 64], sizes = [2, 32], strides = [1, 1]} : vector<2x96xf32> to vector<2x32xf32>
    %410 = vector.extract_strided_slice %392 {offsets = [0, 64], sizes = [2, 32], strides = [1, 1]} : vector<2x96xf32> to vector<2x32xf32>
    %411 = arith.mulf %400, %410 : vector<2x32xf32>
    %412 = arith.addf %409, %411 : vector<2x32xf32>
    %413 = math.tanh %412 : vector<2x32xf32>
    %cst_61 = arith.constant 1.000000e+00 : f32
    %414 = vector.broadcast %cst_61 : f32 to vector<2x32xf32>
    %415 = arith.subf %414, %408 : vector<2x32xf32>
    %416 = arith.mulf %415, %413 : vector<2x32xf32>
    %417 = arith.mulf %408, %358 : vector<2x32xf32>
    %418 = arith.addf %416, %417 : vector<2x32xf32>
    %c5_i32 = arith.constant 5 : i32
    %419 = vector.broadcast %c5_i32 : i32 to vector<2x1xi32>
    %420 = arith.cmpi sgt, %14, %419 : vector<2x1xi32>
    %421 = vector.shape_cast %420 : vector<2x1xi1> to vector<2x1xi1>
    %422 = vector.broadcast %421 : vector<2x1xi1> to vector<2x32xi1>
    %423 = arith.select %422, %390, %355 : vector<2x32xi1>, vector<2x32xf32>
    %424 = vector.shape_cast %420 : vector<2x1xi1> to vector<2x1xi1>
    %425 = vector.broadcast %424 : vector<2x1xi1> to vector<2x32xi1>
    %426 = arith.select %425, %418, %358 : vector<2x32xi1>, vector<2x32xf32>
    %427 = tpu.concatenate %423, %426 in 1 : vector<2x32xf32>, vector<2x32xf32> -> vector<2x64xf32>
    %cst_62 = arith.constant dense<0.000000e+00> : vector<2x192xf32>
    %428 = tpu.matmul %427, %15, %cst_62 {dimension_numbers = #tpu.dot_dimension_numbers<[1], [0], [0], [1], [0, 0, 1, 1], [], []>} : vector<2x64xf32>, vector<64x192xf32>, vector<2x192xf32> -> vector<2x192xf32>
    %429 = vector.broadcast %16 : vector<1x192xf32> to vector<2x192xf32>
    %430 = arith.addf %428, %429 : vector<2x192xf32>
    %431 = vector.extract_strided_slice %12 {offsets = [12, 0], sizes = [2, 96], strides = [1, 1]} : vector<16x96xf32> to vector<2x96xf32>
    %432 = vector.extract_strided_slice %430 {offsets = [0, 0], sizes = [2, 96], strides = [1, 1]} : vector<2x192xf32> to vector<2x96xf32>
    %433 = vector.extract_strided_slice %431 {offsets = [0, 0], sizes = [2, 32], strides = [1, 1]} : vector<2x96xf32> to vector<2x32xf32>
    %434 = vector.extract_strided_slice %432 {offsets = [0, 0], sizes = [2, 32], strides = [1, 1]} : vector<2x96xf32> to vector<2x32xf32>
    %435 = arith.addf %433, %434 : vector<2x32xf32>
    %436 = arith.negf %435 : vector<2x32xf32>
    %437 = math.exp %436 : vector<2x32xf32>
    %cst_63 = arith.constant 1.000000e+00 : f32
    %438 = vector.broadcast %cst_63 : f32 to vector<2x32xf32>
    %439 = arith.addf %438, %437 : vector<2x32xf32>
    %440 = arith.divf %438, %439 : vector<2x32xf32>
    %441 = vector.extract_strided_slice %431 {offsets = [0, 32], sizes = [2, 32], strides = [1, 1]} : vector<2x96xf32> to vector<2x32xf32>
    %442 = vector.extract_strided_slice %432 {offsets = [0, 32], sizes = [2, 32], strides = [1, 1]} : vector<2x96xf32> to vector<2x32xf32>
    %443 = arith.addf %441, %442 : vector<2x32xf32>
    %444 = arith.negf %443 : vector<2x32xf32>
    %445 = math.exp %444 : vector<2x32xf32>
    %cst_64 = arith.constant 1.000000e+00 : f32
    %446 = vector.broadcast %cst_64 : f32 to vector<2x32xf32>
    %447 = arith.addf %446, %445 : vector<2x32xf32>
    %448 = arith.divf %446, %447 : vector<2x32xf32>
    %449 = vector.extract_strided_slice %431 {offsets = [0, 64], sizes = [2, 32], strides = [1, 1]} : vector<2x96xf32> to vector<2x32xf32>
    %450 = vector.extract_strided_slice %432 {offsets = [0, 64], sizes = [2, 32], strides = [1, 1]} : vector<2x96xf32> to vector<2x32xf32>
    %451 = arith.mulf %440, %450 : vector<2x32xf32>
    %452 = arith.addf %449, %451 : vector<2x32xf32>
    %453 = math.tanh %452 : vector<2x32xf32>
    %cst_65 = arith.constant 1.000000e+00 : f32
    %454 = vector.broadcast %cst_65 : f32 to vector<2x32xf32>
    %455 = arith.subf %454, %448 : vector<2x32xf32>
    %456 = arith.mulf %455, %453 : vector<2x32xf32>
    %457 = arith.mulf %448, %423 : vector<2x32xf32>
    %458 = arith.addf %456, %457 : vector<2x32xf32>
    %459 = vector.extract_strided_slice %11 {offsets = [12, 0], sizes = [2, 96], strides = [1, 1]} : vector<16x96xf32> to vector<2x96xf32>
    %460 = vector.extract_strided_slice %430 {offsets = [0, 96], sizes = [2, 96], strides = [1, 1]} : vector<2x192xf32> to vector<2x96xf32>
    %461 = vector.extract_strided_slice %459 {offsets = [0, 0], sizes = [2, 32], strides = [1, 1]} : vector<2x96xf32> to vector<2x32xf32>
    %462 = vector.extract_strided_slice %460 {offsets = [0, 0], sizes = [2, 32], strides = [1, 1]} : vector<2x96xf32> to vector<2x32xf32>
    %463 = arith.addf %461, %462 : vector<2x32xf32>
    %464 = arith.negf %463 : vector<2x32xf32>
    %465 = math.exp %464 : vector<2x32xf32>
    %cst_66 = arith.constant 1.000000e+00 : f32
    %466 = vector.broadcast %cst_66 : f32 to vector<2x32xf32>
    %467 = arith.addf %466, %465 : vector<2x32xf32>
    %468 = arith.divf %466, %467 : vector<2x32xf32>
    %469 = vector.extract_strided_slice %459 {offsets = [0, 32], sizes = [2, 32], strides = [1, 1]} : vector<2x96xf32> to vector<2x32xf32>
    %470 = vector.extract_strided_slice %460 {offsets = [0, 32], sizes = [2, 32], strides = [1, 1]} : vector<2x96xf32> to vector<2x32xf32>
    %471 = arith.addf %469, %470 : vector<2x32xf32>
    %472 = arith.negf %471 : vector<2x32xf32>
    %473 = math.exp %472 : vector<2x32xf32>
    %cst_67 = arith.constant 1.000000e+00 : f32
    %474 = vector.broadcast %cst_67 : f32 to vector<2x32xf32>
    %475 = arith.addf %474, %473 : vector<2x32xf32>
    %476 = arith.divf %474, %475 : vector<2x32xf32>
    %477 = vector.extract_strided_slice %459 {offsets = [0, 64], sizes = [2, 32], strides = [1, 1]} : vector<2x96xf32> to vector<2x32xf32>
    %478 = vector.extract_strided_slice %460 {offsets = [0, 64], sizes = [2, 32], strides = [1, 1]} : vector<2x96xf32> to vector<2x32xf32>
    %479 = arith.mulf %468, %478 : vector<2x32xf32>
    %480 = arith.addf %477, %479 : vector<2x32xf32>
    %481 = math.tanh %480 : vector<2x32xf32>
    %cst_68 = arith.constant 1.000000e+00 : f32
    %482 = vector.broadcast %cst_68 : f32 to vector<2x32xf32>
    %483 = arith.subf %482, %476 : vector<2x32xf32>
    %484 = arith.mulf %483, %481 : vector<2x32xf32>
    %485 = arith.mulf %476, %426 : vector<2x32xf32>
    %486 = arith.addf %484, %485 : vector<2x32xf32>
    %c6_i32 = arith.constant 6 : i32
    %487 = vector.broadcast %c6_i32 : i32 to vector<2x1xi32>
    %488 = arith.cmpi sgt, %14, %487 : vector<2x1xi32>
    %489 = vector.shape_cast %488 : vector<2x1xi1> to vector<2x1xi1>
    %490 = vector.broadcast %489 : vector<2x1xi1> to vector<2x32xi1>
    %491 = arith.select %490, %458, %423 : vector<2x32xi1>, vector<2x32xf32>
    %492 = vector.shape_cast %488 : vector<2x1xi1> to vector<2x1xi1>
    %493 = vector.broadcast %492 : vector<2x1xi1> to vector<2x32xi1>
    %494 = arith.select %493, %486, %426 : vector<2x32xi1>, vector<2x32xf32>
    %495 = tpu.concatenate %491, %494 in 1 : vector<2x32xf32>, vector<2x32xf32> -> vector<2x64xf32>
    %cst_69 = arith.constant dense<0.000000e+00> : vector<2x192xf32>
    %496 = tpu.matmul %495, %15, %cst_69 {dimension_numbers = #tpu.dot_dimension_numbers<[1], [0], [0], [1], [0, 0, 1, 1], [], []>} : vector<2x64xf32>, vector<64x192xf32>, vector<2x192xf32> -> vector<2x192xf32>
    %497 = vector.broadcast %16 : vector<1x192xf32> to vector<2x192xf32>
    %498 = arith.addf %496, %497 : vector<2x192xf32>
    %499 = vector.extract_strided_slice %12 {offsets = [14, 0], sizes = [2, 96], strides = [1, 1]} : vector<16x96xf32> to vector<2x96xf32>
    %500 = vector.extract_strided_slice %498 {offsets = [0, 0], sizes = [2, 96], strides = [1, 1]} : vector<2x192xf32> to vector<2x96xf32>
    %501 = vector.extract_strided_slice %499 {offsets = [0, 0], sizes = [2, 32], strides = [1, 1]} : vector<2x96xf32> to vector<2x32xf32>
    %502 = vector.extract_strided_slice %500 {offsets = [0, 0], sizes = [2, 32], strides = [1, 1]} : vector<2x96xf32> to vector<2x32xf32>
    %503 = arith.addf %501, %502 : vector<2x32xf32>
    %504 = arith.negf %503 : vector<2x32xf32>
    %505 = math.exp %504 : vector<2x32xf32>
    %cst_70 = arith.constant 1.000000e+00 : f32
    %506 = vector.broadcast %cst_70 : f32 to vector<2x32xf32>
    %507 = arith.addf %506, %505 : vector<2x32xf32>
    %508 = arith.divf %506, %507 : vector<2x32xf32>
    %509 = vector.extract_strided_slice %499 {offsets = [0, 32], sizes = [2, 32], strides = [1, 1]} : vector<2x96xf32> to vector<2x32xf32>
    %510 = vector.extract_strided_slice %500 {offsets = [0, 32], sizes = [2, 32], strides = [1, 1]} : vector<2x96xf32> to vector<2x32xf32>
    %511 = arith.addf %509, %510 : vector<2x32xf32>
    %512 = arith.negf %511 : vector<2x32xf32>
    %513 = math.exp %512 : vector<2x32xf32>
    %cst_71 = arith.constant 1.000000e+00 : f32
    %514 = vector.broadcast %cst_71 : f32 to vector<2x32xf32>
    %515 = arith.addf %514, %513 : vector<2x32xf32>
    %516 = arith.divf %514, %515 : vector<2x32xf32>
    %517 = vector.extract_strided_slice %499 {offsets = [0, 64], sizes = [2, 32], strides = [1, 1]} : vector<2x96xf32> to vector<2x32xf32>
    %518 = vector.extract_strided_slice %500 {offsets = [0, 64], sizes = [2, 32], strides = [1, 1]} : vector<2x96xf32> to vector<2x32xf32>
    %519 = arith.mulf %508, %518 : vector<2x32xf32>
    %520 = arith.addf %517, %519 : vector<2x32xf32>
    %521 = math.tanh %520 : vector<2x32xf32>
    %cst_72 = arith.constant 1.000000e+00 : f32
    %522 = vector.broadcast %cst_72 : f32 to vector<2x32xf32>
    %523 = arith.subf %522, %516 : vector<2x32xf32>
    %524 = arith.mulf %523, %521 : vector<2x32xf32>
    %525 = arith.mulf %516, %491 : vector<2x32xf32>
    %526 = arith.addf %524, %525 : vector<2x32xf32>
    %527 = vector.extract_strided_slice %11 {offsets = [14, 0], sizes = [2, 96], strides = [1, 1]} : vector<16x96xf32> to vector<2x96xf32>
    %528 = vector.extract_strided_slice %498 {offsets = [0, 96], sizes = [2, 96], strides = [1, 1]} : vector<2x192xf32> to vector<2x96xf32>
    %529 = vector.extract_strided_slice %527 {offsets = [0, 0], sizes = [2, 32], strides = [1, 1]} : vector<2x96xf32> to vector<2x32xf32>
    %530 = vector.extract_strided_slice %528 {offsets = [0, 0], sizes = [2, 32], strides = [1, 1]} : vector<2x96xf32> to vector<2x32xf32>
    %531 = arith.addf %529, %530 : vector<2x32xf32>
    %532 = arith.negf %531 : vector<2x32xf32>
    %533 = math.exp %532 : vector<2x32xf32>
    %cst_73 = arith.constant 1.000000e+00 : f32
    %534 = vector.broadcast %cst_73 : f32 to vector<2x32xf32>
    %535 = arith.addf %534, %533 : vector<2x32xf32>
    %536 = arith.divf %534, %535 : vector<2x32xf32>
    %537 = vector.extract_strided_slice %527 {offsets = [0, 32], sizes = [2, 32], strides = [1, 1]} : vector<2x96xf32> to vector<2x32xf32>
    %538 = vector.extract_strided_slice %528 {offsets = [0, 32], sizes = [2, 32], strides = [1, 1]} : vector<2x96xf32> to vector<2x32xf32>
    %539 = arith.addf %537, %538 : vector<2x32xf32>
    %540 = arith.negf %539 : vector<2x32xf32>
    %541 = math.exp %540 : vector<2x32xf32>
    %cst_74 = arith.constant 1.000000e+00 : f32
    %542 = vector.broadcast %cst_74 : f32 to vector<2x32xf32>
    %543 = arith.addf %542, %541 : vector<2x32xf32>
    %544 = arith.divf %542, %543 : vector<2x32xf32>
    %545 = vector.extract_strided_slice %527 {offsets = [0, 64], sizes = [2, 32], strides = [1, 1]} : vector<2x96xf32> to vector<2x32xf32>
    %546 = vector.extract_strided_slice %528 {offsets = [0, 64], sizes = [2, 32], strides = [1, 1]} : vector<2x96xf32> to vector<2x32xf32>
    %547 = arith.mulf %536, %546 : vector<2x32xf32>
    %548 = arith.addf %545, %547 : vector<2x32xf32>
    %549 = math.tanh %548 : vector<2x32xf32>
    %cst_75 = arith.constant 1.000000e+00 : f32
    %550 = vector.broadcast %cst_75 : f32 to vector<2x32xf32>
    %551 = arith.subf %550, %544 : vector<2x32xf32>
    %552 = arith.mulf %551, %549 : vector<2x32xf32>
    %553 = arith.mulf %544, %494 : vector<2x32xf32>
    %554 = arith.addf %552, %553 : vector<2x32xf32>
    %c7_i32 = arith.constant 7 : i32
    %555 = vector.broadcast %c7_i32 : i32 to vector<2x1xi32>
    %556 = arith.cmpi sgt, %14, %555 : vector<2x1xi32>
    %557 = vector.shape_cast %556 : vector<2x1xi1> to vector<2x1xi1>
    %558 = vector.broadcast %557 : vector<2x1xi1> to vector<2x32xi1>
    %559 = arith.select %558, %526, %491 : vector<2x32xi1>, vector<2x32xf32>
    %560 = vector.shape_cast %556 : vector<2x1xi1> to vector<2x1xi1>
    %561 = vector.broadcast %560 : vector<2x1xi1> to vector<2x32xi1>
    %562 = arith.select %561, %554, %494 : vector<2x32xi1>, vector<2x32xf32>
    %563 = tpu.concatenate %562, %559 in 1 : vector<2x32xf32>, vector<2x32xf32> -> vector<2x64xf32>
    %c0_76 = arith.constant 0 : index
    %c0_77 = arith.constant 0 : index
    %564 = vector.load %arg13[%c0_76, %c0_77] : memref<64x128xf32, #tpu.memory_space<vmem>>, vector<64x128xf32>
    %cst_78 = arith.constant dense<0.000000e+00> : vector<2x128xf32>
    %565 = tpu.matmul %563, %564, %cst_78 {dimension_numbers = #tpu.dot_dimension_numbers<[1], [0], [0], [1], [0, 0, 1, 1], [], []>} : vector<2x64xf32>, vector<64x128xf32>, vector<2x128xf32> -> vector<2x128xf32>
    %c0_79 = arith.constant 0 : index
    %c0_80 = arith.constant 0 : index
    %566 = vector.load %arg14[%c0_79, %c0_80] : memref<1x128xf32, #tpu.memory_space<vmem>>, vector<1x128xf32>
    %567 = vector.broadcast %566 : vector<1x128xf32> to vector<2x128xf32>
    %568 = arith.addf %565, %567 : vector<2x128xf32>
    %cst_81 = arith.constant 0.000000e+00 : f32
    %569 = vector.broadcast %cst_81 : f32 to vector<2x128xf32>
    %570 = arith.maximumf %568, %569 : vector<2x128xf32>
    %c0_82 = arith.constant 0 : index
    %c0_83 = arith.constant 0 : index
    %571 = vector.load %arg15[%c0_82, %c0_83] : memref<128x32xf32, #tpu.memory_space<vmem>>, vector<128x32xf32>
    %cst_84 = arith.constant dense<0.000000e+00> : vector<2x32xf32>
    %572 = tpu.matmul %570, %571, %cst_84 {dimension_numbers = #tpu.dot_dimension_numbers<[1], [0], [0], [1], [0, 0, 1, 1], [], []>} : vector<2x128xf32>, vector<128x32xf32>, vector<2x32xf32> -> vector<2x32xf32>
    %c0_85 = arith.constant 0 : index
    %c0_86 = arith.constant 0 : index
    %573 = vector.load %arg16[%c0_85, %c0_86] : memref<1x32xf32, #tpu.memory_space<vmem>>, vector<1x32xf32>
    %574 = vector.broadcast %573 : vector<1x32xf32> to vector<2x32xf32>
    %575 = arith.addf %572, %574 : vector<2x32xf32>
    %576 = vector.extract_strided_slice %575 {offsets = [0, 0], sizes = [2, 16], strides = [1, 1]} : vector<2x32xf32> to vector<2x16xf32>
    %577 = vector.extract_strided_slice %575 {offsets = [0, 16], sizes = [2, 16], strides = [1, 1]} : vector<2x32xf32> to vector<2x16xf32>
    %c0_87 = arith.constant 0 : index
    %c0_88 = arith.constant 0 : index
    %578 = vector.load %arg4[%c0_87, %c0_88] : memref<2x16xf32, #tpu.memory_space<vmem>>, vector<2x16xf32>
    %cst_89 = arith.constant 5.000000e-01 : f32
    %579 = vector.broadcast %cst_89 : f32 to vector<2x16xf32>
    %580 = arith.mulf %579, %577 : vector<2x16xf32>
    %581 = math.exp %580 : vector<2x16xf32>
    %582 = arith.mulf %578, %581 : vector<2x16xf32>
    %583 = arith.addf %576, %582 : vector<2x16xf32>
    %c0_90 = arith.constant 0 : index
    %c0_91 = arith.constant 0 : index
    %584 = vector.load %arg17[%c0_90, %c0_91] : memref<16x32xf32, #tpu.memory_space<vmem>>, vector<16x32xf32>
    %cst_92 = arith.constant dense<0.000000e+00> : vector<2x32xf32>
    %585 = tpu.matmul %583, %584, %cst_92 {dimension_numbers = #tpu.dot_dimension_numbers<[1], [0], [0], [1], [0, 0, 1, 1], [], []>} : vector<2x16xf32>, vector<16x32xf32>, vector<2x32xf32> -> vector<2x32xf32>
    %c0_93 = arith.constant 0 : index
    %c0_94 = arith.constant 0 : index
    %586 = vector.load %arg18[%c0_93, %c0_94] : memref<1x32xf32, #tpu.memory_space<vmem>>, vector<1x32xf32>
    %587 = vector.broadcast %586 : vector<1x32xf32> to vector<2x32xf32>
    %588 = arith.addf %585, %587 : vector<2x32xf32>
    %c0_95 = arith.constant 0 : index
    %c0_96 = arith.constant 0 : index
    %589 = vector.load %arg11[%c0_95, %c0_96] : memref<32x96xf32, #tpu.memory_space<vmem>>, vector<32x96xf32>
    %c0_97 = arith.constant 0 : index
    %c0_98 = arith.constant 0 : index
    %590 = vector.load %arg12[%c0_97, %c0_98] : memref<1x96xf32, #tpu.memory_space<vmem>>, vector<1x96xf32>
    %cst_99 = arith.constant dense<0.000000e+00> : vector<2x96xf32>
    %591 = tpu.matmul %588, %589, %cst_99 {dimension_numbers = #tpu.dot_dimension_numbers<[1], [0], [0], [1], [0, 0, 1, 1], [], []>} : vector<2x32xf32>, vector<32x96xf32>, vector<2x96xf32> -> vector<2x96xf32>
    %592 = vector.broadcast %590 : vector<1x96xf32> to vector<2x96xf32>
    %593 = arith.addf %591, %592 : vector<2x96xf32>
    %594 = vector.extract_strided_slice %13 {offsets = [0, 0], sizes = [2, 96], strides = [1, 1]} : vector<16x96xf32> to vector<2x96xf32>
    %595 = vector.extract_strided_slice %594 {offsets = [0, 0], sizes = [2, 32], strides = [1, 1]} : vector<2x96xf32> to vector<2x32xf32>
    %596 = vector.extract_strided_slice %593 {offsets = [0, 0], sizes = [2, 32], strides = [1, 1]} : vector<2x96xf32> to vector<2x32xf32>
    %597 = arith.addf %595, %596 : vector<2x32xf32>
    %598 = arith.negf %597 : vector<2x32xf32>
    %599 = math.exp %598 : vector<2x32xf32>
    %cst_100 = arith.constant 1.000000e+00 : f32
    %600 = vector.broadcast %cst_100 : f32 to vector<2x32xf32>
    %601 = arith.addf %600, %599 : vector<2x32xf32>
    %602 = arith.divf %600, %601 : vector<2x32xf32>
    %603 = vector.extract_strided_slice %594 {offsets = [0, 32], sizes = [2, 32], strides = [1, 1]} : vector<2x96xf32> to vector<2x32xf32>
    %604 = vector.extract_strided_slice %593 {offsets = [0, 32], sizes = [2, 32], strides = [1, 1]} : vector<2x96xf32> to vector<2x32xf32>
    %605 = arith.addf %603, %604 : vector<2x32xf32>
    %606 = arith.negf %605 : vector<2x32xf32>
    %607 = math.exp %606 : vector<2x32xf32>
    %cst_101 = arith.constant 1.000000e+00 : f32
    %608 = vector.broadcast %cst_101 : f32 to vector<2x32xf32>
    %609 = arith.addf %608, %607 : vector<2x32xf32>
    %610 = arith.divf %608, %609 : vector<2x32xf32>
    %611 = vector.extract_strided_slice %594 {offsets = [0, 64], sizes = [2, 32], strides = [1, 1]} : vector<2x96xf32> to vector<2x32xf32>
    %612 = vector.extract_strided_slice %593 {offsets = [0, 64], sizes = [2, 32], strides = [1, 1]} : vector<2x96xf32> to vector<2x32xf32>
    %613 = arith.mulf %602, %612 : vector<2x32xf32>
    %614 = arith.addf %611, %613 : vector<2x32xf32>
    %615 = math.tanh %614 : vector<2x32xf32>
    %cst_102 = arith.constant 1.000000e+00 : f32
    %616 = vector.broadcast %cst_102 : f32 to vector<2x32xf32>
    %617 = arith.subf %616, %610 : vector<2x32xf32>
    %618 = arith.mulf %617, %615 : vector<2x32xf32>
    %619 = arith.mulf %610, %588 : vector<2x32xf32>
    %620 = arith.addf %618, %619 : vector<2x32xf32>
    %cst_103 = arith.constant dense<0.000000e+00> : vector<2x96xf32>
    %621 = tpu.matmul %620, %589, %cst_103 {dimension_numbers = #tpu.dot_dimension_numbers<[1], [0], [0], [1], [0, 0, 1, 1], [], []>} : vector<2x32xf32>, vector<32x96xf32>, vector<2x96xf32> -> vector<2x96xf32>
    %622 = vector.broadcast %590 : vector<1x96xf32> to vector<2x96xf32>
    %623 = arith.addf %621, %622 : vector<2x96xf32>
    %624 = vector.extract_strided_slice %13 {offsets = [2, 0], sizes = [2, 96], strides = [1, 1]} : vector<16x96xf32> to vector<2x96xf32>
    %625 = vector.extract_strided_slice %624 {offsets = [0, 0], sizes = [2, 32], strides = [1, 1]} : vector<2x96xf32> to vector<2x32xf32>
    %626 = vector.extract_strided_slice %623 {offsets = [0, 0], sizes = [2, 32], strides = [1, 1]} : vector<2x96xf32> to vector<2x32xf32>
    %627 = arith.addf %625, %626 : vector<2x32xf32>
    %628 = arith.negf %627 : vector<2x32xf32>
    %629 = math.exp %628 : vector<2x32xf32>
    %cst_104 = arith.constant 1.000000e+00 : f32
    %630 = vector.broadcast %cst_104 : f32 to vector<2x32xf32>
    %631 = arith.addf %630, %629 : vector<2x32xf32>
    %632 = arith.divf %630, %631 : vector<2x32xf32>
    %633 = vector.extract_strided_slice %624 {offsets = [0, 32], sizes = [2, 32], strides = [1, 1]} : vector<2x96xf32> to vector<2x32xf32>
    %634 = vector.extract_strided_slice %623 {offsets = [0, 32], sizes = [2, 32], strides = [1, 1]} : vector<2x96xf32> to vector<2x32xf32>
    %635 = arith.addf %633, %634 : vector<2x32xf32>
    %636 = arith.negf %635 : vector<2x32xf32>
    %637 = math.exp %636 : vector<2x32xf32>
    %cst_105 = arith.constant 1.000000e+00 : f32
    %638 = vector.broadcast %cst_105 : f32 to vector<2x32xf32>
    %639 = arith.addf %638, %637 : vector<2x32xf32>
    %640 = arith.divf %638, %639 : vector<2x32xf32>
    %641 = vector.extract_strided_slice %624 {offsets = [0, 64], sizes = [2, 32], strides = [1, 1]} : vector<2x96xf32> to vector<2x32xf32>
    %642 = vector.extract_strided_slice %623 {offsets = [0, 64], sizes = [2, 32], strides = [1, 1]} : vector<2x96xf32> to vector<2x32xf32>
    %643 = arith.mulf %632, %642 : vector<2x32xf32>
    %644 = arith.addf %641, %643 : vector<2x32xf32>
    %645 = math.tanh %644 : vector<2x32xf32>
    %cst_106 = arith.constant 1.000000e+00 : f32
    %646 = vector.broadcast %cst_106 : f32 to vector<2x32xf32>
    %647 = arith.subf %646, %640 : vector<2x32xf32>
    %648 = arith.mulf %647, %645 : vector<2x32xf32>
    %649 = arith.mulf %640, %620 : vector<2x32xf32>
    %650 = arith.addf %648, %649 : vector<2x32xf32>
    %cst_107 = arith.constant dense<0.000000e+00> : vector<2x96xf32>
    %651 = tpu.matmul %650, %589, %cst_107 {dimension_numbers = #tpu.dot_dimension_numbers<[1], [0], [0], [1], [0, 0, 1, 1], [], []>} : vector<2x32xf32>, vector<32x96xf32>, vector<2x96xf32> -> vector<2x96xf32>
    %652 = vector.broadcast %590 : vector<1x96xf32> to vector<2x96xf32>
    %653 = arith.addf %651, %652 : vector<2x96xf32>
    %654 = vector.extract_strided_slice %13 {offsets = [4, 0], sizes = [2, 96], strides = [1, 1]} : vector<16x96xf32> to vector<2x96xf32>
    %655 = vector.extract_strided_slice %654 {offsets = [0, 0], sizes = [2, 32], strides = [1, 1]} : vector<2x96xf32> to vector<2x32xf32>
    %656 = vector.extract_strided_slice %653 {offsets = [0, 0], sizes = [2, 32], strides = [1, 1]} : vector<2x96xf32> to vector<2x32xf32>
    %657 = arith.addf %655, %656 : vector<2x32xf32>
    %658 = arith.negf %657 : vector<2x32xf32>
    %659 = math.exp %658 : vector<2x32xf32>
    %cst_108 = arith.constant 1.000000e+00 : f32
    %660 = vector.broadcast %cst_108 : f32 to vector<2x32xf32>
    %661 = arith.addf %660, %659 : vector<2x32xf32>
    %662 = arith.divf %660, %661 : vector<2x32xf32>
    %663 = vector.extract_strided_slice %654 {offsets = [0, 32], sizes = [2, 32], strides = [1, 1]} : vector<2x96xf32> to vector<2x32xf32>
    %664 = vector.extract_strided_slice %653 {offsets = [0, 32], sizes = [2, 32], strides = [1, 1]} : vector<2x96xf32> to vector<2x32xf32>
    %665 = arith.addf %663, %664 : vector<2x32xf32>
    %666 = arith.negf %665 : vector<2x32xf32>
    %667 = math.exp %666 : vector<2x32xf32>
    %cst_109 = arith.constant 1.000000e+00 : f32
    %668 = vector.broadcast %cst_109 : f32 to vector<2x32xf32>
    %669 = arith.addf %668, %667 : vector<2x32xf32>
    %670 = arith.divf %668, %669 : vector<2x32xf32>
    %671 = vector.extract_strided_slice %654 {offsets = [0, 64], sizes = [2, 32], strides = [1, 1]} : vector<2x96xf32> to vector<2x32xf32>
    %672 = vector.extract_strided_slice %653 {offsets = [0, 64], sizes = [2, 32], strides = [1, 1]} : vector<2x96xf32> to vector<2x32xf32>
    %673 = arith.mulf %662, %672 : vector<2x32xf32>
    %674 = arith.addf %671, %673 : vector<2x32xf32>
    %675 = math.tanh %674 : vector<2x32xf32>
    %cst_110 = arith.constant 1.000000e+00 : f32
    %676 = vector.broadcast %cst_110 : f32 to vector<2x32xf32>
    %677 = arith.subf %676, %670 : vector<2x32xf32>
    %678 = arith.mulf %677, %675 : vector<2x32xf32>
    %679 = arith.mulf %670, %650 : vector<2x32xf32>
    %680 = arith.addf %678, %679 : vector<2x32xf32>
    %cst_111 = arith.constant dense<0.000000e+00> : vector<2x96xf32>
    %681 = tpu.matmul %680, %589, %cst_111 {dimension_numbers = #tpu.dot_dimension_numbers<[1], [0], [0], [1], [0, 0, 1, 1], [], []>} : vector<2x32xf32>, vector<32x96xf32>, vector<2x96xf32> -> vector<2x96xf32>
    %682 = vector.broadcast %590 : vector<1x96xf32> to vector<2x96xf32>
    %683 = arith.addf %681, %682 : vector<2x96xf32>
    %684 = vector.extract_strided_slice %13 {offsets = [6, 0], sizes = [2, 96], strides = [1, 1]} : vector<16x96xf32> to vector<2x96xf32>
    %685 = vector.extract_strided_slice %684 {offsets = [0, 0], sizes = [2, 32], strides = [1, 1]} : vector<2x96xf32> to vector<2x32xf32>
    %686 = vector.extract_strided_slice %683 {offsets = [0, 0], sizes = [2, 32], strides = [1, 1]} : vector<2x96xf32> to vector<2x32xf32>
    %687 = arith.addf %685, %686 : vector<2x32xf32>
    %688 = arith.negf %687 : vector<2x32xf32>
    %689 = math.exp %688 : vector<2x32xf32>
    %cst_112 = arith.constant 1.000000e+00 : f32
    %690 = vector.broadcast %cst_112 : f32 to vector<2x32xf32>
    %691 = arith.addf %690, %689 : vector<2x32xf32>
    %692 = arith.divf %690, %691 : vector<2x32xf32>
    %693 = vector.extract_strided_slice %684 {offsets = [0, 32], sizes = [2, 32], strides = [1, 1]} : vector<2x96xf32> to vector<2x32xf32>
    %694 = vector.extract_strided_slice %683 {offsets = [0, 32], sizes = [2, 32], strides = [1, 1]} : vector<2x96xf32> to vector<2x32xf32>
    %695 = arith.addf %693, %694 : vector<2x32xf32>
    %696 = arith.negf %695 : vector<2x32xf32>
    %697 = math.exp %696 : vector<2x32xf32>
    %cst_113 = arith.constant 1.000000e+00 : f32
    %698 = vector.broadcast %cst_113 : f32 to vector<2x32xf32>
    %699 = arith.addf %698, %697 : vector<2x32xf32>
    %700 = arith.divf %698, %699 : vector<2x32xf32>
    %701 = vector.extract_strided_slice %684 {offsets = [0, 64], sizes = [2, 32], strides = [1, 1]} : vector<2x96xf32> to vector<2x32xf32>
    %702 = vector.extract_strided_slice %683 {offsets = [0, 64], sizes = [2, 32], strides = [1, 1]} : vector<2x96xf32> to vector<2x32xf32>
    %703 = arith.mulf %692, %702 : vector<2x32xf32>
    %704 = arith.addf %701, %703 : vector<2x32xf32>
    %705 = math.tanh %704 : vector<2x32xf32>
    %cst_114 = arith.constant 1.000000e+00 : f32
    %706 = vector.broadcast %cst_114 : f32 to vector<2x32xf32>
    %707 = arith.subf %706, %700 : vector<2x32xf32>
    %708 = arith.mulf %707, %705 : vector<2x32xf32>
    %709 = arith.mulf %700, %680 : vector<2x32xf32>
    %710 = arith.addf %708, %709 : vector<2x32xf32>
    %cst_115 = arith.constant dense<0.000000e+00> : vector<2x96xf32>
    %711 = tpu.matmul %710, %589, %cst_115 {dimension_numbers = #tpu.dot_dimension_numbers<[1], [0], [0], [1], [0, 0, 1, 1], [], []>} : vector<2x32xf32>, vector<32x96xf32>, vector<2x96xf32> -> vector<2x96xf32>
    %712 = vector.broadcast %590 : vector<1x96xf32> to vector<2x96xf32>
    %713 = arith.addf %711, %712 : vector<2x96xf32>
    %714 = vector.extract_strided_slice %13 {offsets = [8, 0], sizes = [2, 96], strides = [1, 1]} : vector<16x96xf32> to vector<2x96xf32>
    %715 = vector.extract_strided_slice %714 {offsets = [0, 0], sizes = [2, 32], strides = [1, 1]} : vector<2x96xf32> to vector<2x32xf32>
    %716 = vector.extract_strided_slice %713 {offsets = [0, 0], sizes = [2, 32], strides = [1, 1]} : vector<2x96xf32> to vector<2x32xf32>
    %717 = arith.addf %715, %716 : vector<2x32xf32>
    %718 = arith.negf %717 : vector<2x32xf32>
    %719 = math.exp %718 : vector<2x32xf32>
    %cst_116 = arith.constant 1.000000e+00 : f32
    %720 = vector.broadcast %cst_116 : f32 to vector<2x32xf32>
    %721 = arith.addf %720, %719 : vector<2x32xf32>
    %722 = arith.divf %720, %721 : vector<2x32xf32>
    %723 = vector.extract_strided_slice %714 {offsets = [0, 32], sizes = [2, 32], strides = [1, 1]} : vector<2x96xf32> to vector<2x32xf32>
    %724 = vector.extract_strided_slice %713 {offsets = [0, 32], sizes = [2, 32], strides = [1, 1]} : vector<2x96xf32> to vector<2x32xf32>
    %725 = arith.addf %723, %724 : vector<2x32xf32>
    %726 = arith.negf %725 : vector<2x32xf32>
    %727 = math.exp %726 : vector<2x32xf32>
    %cst_117 = arith.constant 1.000000e+00 : f32
    %728 = vector.broadcast %cst_117 : f32 to vector<2x32xf32>
    %729 = arith.addf %728, %727 : vector<2x32xf32>
    %730 = arith.divf %728, %729 : vector<2x32xf32>
    %731 = vector.extract_strided_slice %714 {offsets = [0, 64], sizes = [2, 32], strides = [1, 1]} : vector<2x96xf32> to vector<2x32xf32>
    %732 = vector.extract_strided_slice %713 {offsets = [0, 64], sizes = [2, 32], strides = [1, 1]} : vector<2x96xf32> to vector<2x32xf32>
    %733 = arith.mulf %722, %732 : vector<2x32xf32>
    %734 = arith.addf %731, %733 : vector<2x32xf32>
    %735 = math.tanh %734 : vector<2x32xf32>
    %cst_118 = arith.constant 1.000000e+00 : f32
    %736 = vector.broadcast %cst_118 : f32 to vector<2x32xf32>
    %737 = arith.subf %736, %730 : vector<2x32xf32>
    %738 = arith.mulf %737, %735 : vector<2x32xf32>
    %739 = arith.mulf %730, %710 : vector<2x32xf32>
    %740 = arith.addf %738, %739 : vector<2x32xf32>
    %cst_119 = arith.constant dense<0.000000e+00> : vector<2x96xf32>
    %741 = tpu.matmul %740, %589, %cst_119 {dimension_numbers = #tpu.dot_dimension_numbers<[1], [0], [0], [1], [0, 0, 1, 1], [], []>} : vector<2x32xf32>, vector<32x96xf32>, vector<2x96xf32> -> vector<2x96xf32>
    %742 = vector.broadcast %590 : vector<1x96xf32> to vector<2x96xf32>
    %743 = arith.addf %741, %742 : vector<2x96xf32>
    %744 = vector.extract_strided_slice %13 {offsets = [10, 0], sizes = [2, 96], strides = [1, 1]} : vector<16x96xf32> to vector<2x96xf32>
    %745 = vector.extract_strided_slice %744 {offsets = [0, 0], sizes = [2, 32], strides = [1, 1]} : vector<2x96xf32> to vector<2x32xf32>
    %746 = vector.extract_strided_slice %743 {offsets = [0, 0], sizes = [2, 32], strides = [1, 1]} : vector<2x96xf32> to vector<2x32xf32>
    %747 = arith.addf %745, %746 : vector<2x32xf32>
    %748 = arith.negf %747 : vector<2x32xf32>
    %749 = math.exp %748 : vector<2x32xf32>
    %cst_120 = arith.constant 1.000000e+00 : f32
    %750 = vector.broadcast %cst_120 : f32 to vector<2x32xf32>
    %751 = arith.addf %750, %749 : vector<2x32xf32>
    %752 = arith.divf %750, %751 : vector<2x32xf32>
    %753 = vector.extract_strided_slice %744 {offsets = [0, 32], sizes = [2, 32], strides = [1, 1]} : vector<2x96xf32> to vector<2x32xf32>
    %754 = vector.extract_strided_slice %743 {offsets = [0, 32], sizes = [2, 32], strides = [1, 1]} : vector<2x96xf32> to vector<2x32xf32>
    %755 = arith.addf %753, %754 : vector<2x32xf32>
    %756 = arith.negf %755 : vector<2x32xf32>
    %757 = math.exp %756 : vector<2x32xf32>
    %cst_121 = arith.constant 1.000000e+00 : f32
    %758 = vector.broadcast %cst_121 : f32 to vector<2x32xf32>
    %759 = arith.addf %758, %757 : vector<2x32xf32>
    %760 = arith.divf %758, %759 : vector<2x32xf32>
    %761 = vector.extract_strided_slice %744 {offsets = [0, 64], sizes = [2, 32], strides = [1, 1]} : vector<2x96xf32> to vector<2x32xf32>
    %762 = vector.extract_strided_slice %743 {offsets = [0, 64], sizes = [2, 32], strides = [1, 1]} : vector<2x96xf32> to vector<2x32xf32>
    %763 = arith.mulf %752, %762 : vector<2x32xf32>
    %764 = arith.addf %761, %763 : vector<2x32xf32>
    %765 = math.tanh %764 : vector<2x32xf32>
    %cst_122 = arith.constant 1.000000e+00 : f32
    %766 = vector.broadcast %cst_122 : f32 to vector<2x32xf32>
    %767 = arith.subf %766, %760 : vector<2x32xf32>
    %768 = arith.mulf %767, %765 : vector<2x32xf32>
    %769 = arith.mulf %760, %740 : vector<2x32xf32>
    %770 = arith.addf %768, %769 : vector<2x32xf32>
    %cst_123 = arith.constant dense<0.000000e+00> : vector<2x96xf32>
    %771 = tpu.matmul %770, %589, %cst_123 {dimension_numbers = #tpu.dot_dimension_numbers<[1], [0], [0], [1], [0, 0, 1, 1], [], []>} : vector<2x32xf32>, vector<32x96xf32>, vector<2x96xf32> -> vector<2x96xf32>
    %772 = vector.broadcast %590 : vector<1x96xf32> to vector<2x96xf32>
    %773 = arith.addf %771, %772 : vector<2x96xf32>
    %774 = vector.extract_strided_slice %13 {offsets = [12, 0], sizes = [2, 96], strides = [1, 1]} : vector<16x96xf32> to vector<2x96xf32>
    %775 = vector.extract_strided_slice %774 {offsets = [0, 0], sizes = [2, 32], strides = [1, 1]} : vector<2x96xf32> to vector<2x32xf32>
    %776 = vector.extract_strided_slice %773 {offsets = [0, 0], sizes = [2, 32], strides = [1, 1]} : vector<2x96xf32> to vector<2x32xf32>
    %777 = arith.addf %775, %776 : vector<2x32xf32>
    %778 = arith.negf %777 : vector<2x32xf32>
    %779 = math.exp %778 : vector<2x32xf32>
    %cst_124 = arith.constant 1.000000e+00 : f32
    %780 = vector.broadcast %cst_124 : f32 to vector<2x32xf32>
    %781 = arith.addf %780, %779 : vector<2x32xf32>
    %782 = arith.divf %780, %781 : vector<2x32xf32>
    %783 = vector.extract_strided_slice %774 {offsets = [0, 32], sizes = [2, 32], strides = [1, 1]} : vector<2x96xf32> to vector<2x32xf32>
    %784 = vector.extract_strided_slice %773 {offsets = [0, 32], sizes = [2, 32], strides = [1, 1]} : vector<2x96xf32> to vector<2x32xf32>
    %785 = arith.addf %783, %784 : vector<2x32xf32>
    %786 = arith.negf %785 : vector<2x32xf32>
    %787 = math.exp %786 : vector<2x32xf32>
    %cst_125 = arith.constant 1.000000e+00 : f32
    %788 = vector.broadcast %cst_125 : f32 to vector<2x32xf32>
    %789 = arith.addf %788, %787 : vector<2x32xf32>
    %790 = arith.divf %788, %789 : vector<2x32xf32>
    %791 = vector.extract_strided_slice %774 {offsets = [0, 64], sizes = [2, 32], strides = [1, 1]} : vector<2x96xf32> to vector<2x32xf32>
    %792 = vector.extract_strided_slice %773 {offsets = [0, 64], sizes = [2, 32], strides = [1, 1]} : vector<2x96xf32> to vector<2x32xf32>
    %793 = arith.mulf %782, %792 : vector<2x32xf32>
    %794 = arith.addf %791, %793 : vector<2x32xf32>
    %795 = math.tanh %794 : vector<2x32xf32>
    %cst_126 = arith.constant 1.000000e+00 : f32
    %796 = vector.broadcast %cst_126 : f32 to vector<2x32xf32>
    %797 = arith.subf %796, %790 : vector<2x32xf32>
    %798 = arith.mulf %797, %795 : vector<2x32xf32>
    %799 = arith.mulf %790, %770 : vector<2x32xf32>
    %800 = arith.addf %798, %799 : vector<2x32xf32>
    %cst_127 = arith.constant dense<0.000000e+00> : vector<2x96xf32>
    %801 = tpu.matmul %800, %589, %cst_127 {dimension_numbers = #tpu.dot_dimension_numbers<[1], [0], [0], [1], [0, 0, 1, 1], [], []>} : vector<2x32xf32>, vector<32x96xf32>, vector<2x96xf32> -> vector<2x96xf32>
    %802 = vector.broadcast %590 : vector<1x96xf32> to vector<2x96xf32>
    %803 = arith.addf %801, %802 : vector<2x96xf32>
    %804 = vector.extract_strided_slice %13 {offsets = [14, 0], sizes = [2, 96], strides = [1, 1]} : vector<16x96xf32> to vector<2x96xf32>
    %805 = vector.extract_strided_slice %804 {offsets = [0, 0], sizes = [2, 32], strides = [1, 1]} : vector<2x96xf32> to vector<2x32xf32>
    %806 = vector.extract_strided_slice %803 {offsets = [0, 0], sizes = [2, 32], strides = [1, 1]} : vector<2x96xf32> to vector<2x32xf32>
    %807 = arith.addf %805, %806 : vector<2x32xf32>
    %808 = arith.negf %807 : vector<2x32xf32>
    %809 = math.exp %808 : vector<2x32xf32>
    %cst_128 = arith.constant 1.000000e+00 : f32
    %810 = vector.broadcast %cst_128 : f32 to vector<2x32xf32>
    %811 = arith.addf %810, %809 : vector<2x32xf32>
    %812 = arith.divf %810, %811 : vector<2x32xf32>
    %813 = vector.extract_strided_slice %804 {offsets = [0, 32], sizes = [2, 32], strides = [1, 1]} : vector<2x96xf32> to vector<2x32xf32>
    %814 = vector.extract_strided_slice %803 {offsets = [0, 32], sizes = [2, 32], strides = [1, 1]} : vector<2x96xf32> to vector<2x32xf32>
    %815 = arith.addf %813, %814 : vector<2x32xf32>
    %816 = arith.negf %815 : vector<2x32xf32>
    %817 = math.exp %816 : vector<2x32xf32>
    %cst_129 = arith.constant 1.000000e+00 : f32
    %818 = vector.broadcast %cst_129 : f32 to vector<2x32xf32>
    %819 = arith.addf %818, %817 : vector<2x32xf32>
    %820 = arith.divf %818, %819 : vector<2x32xf32>
    %821 = vector.extract_strided_slice %804 {offsets = [0, 64], sizes = [2, 32], strides = [1, 1]} : vector<2x96xf32> to vector<2x32xf32>
    %822 = vector.extract_strided_slice %803 {offsets = [0, 64], sizes = [2, 32], strides = [1, 1]} : vector<2x96xf32> to vector<2x32xf32>
    %823 = arith.mulf %812, %822 : vector<2x32xf32>
    %824 = arith.addf %821, %823 : vector<2x32xf32>
    %825 = math.tanh %824 : vector<2x32xf32>
    %cst_130 = arith.constant 1.000000e+00 : f32
    %826 = vector.broadcast %cst_130 : f32 to vector<2x32xf32>
    %827 = arith.subf %826, %820 : vector<2x32xf32>
    %828 = arith.mulf %827, %825 : vector<2x32xf32>
    %829 = arith.mulf %820, %800 : vector<2x32xf32>
    %830 = arith.addf %828, %829 : vector<2x32xf32>
    %831 = tpu.concatenate %620, %650, %680, %710, %740, %770, %800, %830 in 0 : vector<2x32xf32>, vector<2x32xf32>, vector<2x32xf32>, vector<2x32xf32>, vector<2x32xf32>, vector<2x32xf32>, vector<2x32xf32>, vector<2x32xf32> -> vector<16x32xf32>
    %c0_131 = arith.constant 0 : index
    %c0_132 = arith.constant 0 : index
    %832 = vector.load %arg19[%c0_131, %c0_132] : memref<32x64xf32, #tpu.memory_space<vmem>>, vector<32x64xf32>
    %cst_133 = arith.constant dense<0.000000e+00> : vector<16x64xf32>
    %833 = tpu.matmul %831, %832, %cst_133 {dimension_numbers = #tpu.dot_dimension_numbers<[1], [0], [0], [1], [0, 0, 1, 1], [], []>} : vector<16x32xf32>, vector<32x64xf32>, vector<16x64xf32> -> vector<16x64xf32>
    %c0_134 = arith.constant 0 : index
    %c0_135 = arith.constant 0 : index
    %834 = vector.load %arg20[%c0_134, %c0_135] : memref<1x64xf32, #tpu.memory_space<vmem>>, vector<1x64xf32>
    %835 = vector.broadcast %834 : vector<1x64xf32> to vector<16x64xf32>
    %836 = arith.addf %833, %835 : vector<16x64xf32>
    %c0_136 = arith.constant 0 : index
    %c0_137 = arith.constant 0 : index
    %837 = vector.load %arg21[%c0_136, %c0_137] : memref<16x64xf32, #tpu.memory_space<vmem>>, vector<16x64xf32>
    tpu.vector_store %arg21[%c0_136, %c0_137], %836 {strides = array<i32>} : memref<16x64xf32, #tpu.memory_space<vmem>>, vector<16x64xf32>,
    %838 = tpu.concatenate %576, %577, %583 in 1 : vector<2x16xf32>, vector<2x16xf32>, vector<2x16xf32> -> vector<2x48xf32>
    %c0_138 = arith.constant 0 : index
    %c0_139 = arith.constant 0 : index
    %839 = vector.load %arg22[%c0_138, %c0_139] : memref<2x48xf32, #tpu.memory_space<vmem>>, vector<2x48xf32>
    tpu.vector_store %arg22[%c0_138, %c0_139], %838 {strides = array<i32>} : memref<2x48xf32, #tpu.memory_space<vmem>>, vector<2x48xf32>,
    return
  }
  func.func @transform_0(%arg0: i32) -> (i32, i32) {
    %c0_i32 = arith.constant 0 : i32
    %c0_i32_0 = arith.constant 0 : i32
    %c0_i32_1 = arith.constant 0 : i32
    return %c0_i32, %c0_i32_0 : i32, i32
  }
  func.func @transform_1(%arg0: i32) -> (i32, i32) {
    %c0_i32 = arith.constant 0 : i32
    %c0_i32_0 = arith.constant 0 : i32
    %c0_i32_1 = arith.constant 0 : i32
    return %c0_i32, %c0_i32_0 : i32, i32
  }
  func.func @transform_2(%arg0: i32) -> (i32, i32) {
    %c0_i32 = arith.constant 0 : i32
    %c0_i32_0 = arith.constant 0 : i32
    %c0_i32_1 = arith.constant 0 : i32
    return %c0_i32, %c0_i32_0 : i32, i32
  }
  func.func @transform_3(%arg0: i32) -> (i32, i32) {
    %c0_i32 = arith.constant 0 : i32
    %c0_i32_0 = arith.constant 0 : i32
    %c0_i32_1 = arith.constant 0 : i32
    return %c0_i32, %c0_i32_0 : i32, i32
  }
  func.func @transform_4(%arg0: i32) -> (i32, i32) {
    %c0_i32 = arith.constant 0 : i32
    %c0_i32_0 = arith.constant 0 : i32
    %c0_i32_1 = arith.constant 0 : i32
    return %c0_i32, %c0_i32_0 : i32, i32
  }
  func.func @transform_5(%arg0: i32) -> (i32, i32) {
    %c0_i32 = arith.constant 0 : i32
    %c0_i32_0 = arith.constant 0 : i32
    %c0_i32_1 = arith.constant 0 : i32
    return %c0_i32, %c0_i32_0 : i32, i32
  }
  func.func @transform_6(%arg0: i32) -> (i32, i32) {
    %c0_i32 = arith.constant 0 : i32
    %c0_i32_0 = arith.constant 0 : i32
    %c0_i32_1 = arith.constant 0 : i32
    return %c0_i32, %c0_i32_0 : i32, i32
  }
  func.func @transform_7(%arg0: i32) -> (i32, i32) {
    %c0_i32 = arith.constant 0 : i32
    %c0_i32_0 = arith.constant 0 : i32
    %c0_i32_1 = arith.constant 0 : i32
    return %c0_i32, %c0_i32_0 : i32, i32
  }
  func.func @transform_8(%arg0: i32) -> (i32, i32) {
    %c0_i32 = arith.constant 0 : i32
    %c0_i32_0 = arith.constant 0 : i32
    %c0_i32_1 = arith.constant 0 : i32
    return %c0_i32, %c0_i32_0 : i32, i32
  }
  func.func @transform_9(%arg0: i32) -> (i32, i32) {
    %c0_i32 = arith.constant 0 : i32
    %c0_i32_0 = arith.constant 0 : i32
    %c0_i32_1 = arith.constant 0 : i32
    return %c0_i32, %c0_i32_0 : i32, i32
  }
  func.func @transform_10(%arg0: i32) -> (i32, i32) {
    %c0_i32 = arith.constant 0 : i32
    %c0_i32_0 = arith.constant 0 : i32
    %c0_i32_1 = arith.constant 0 : i32
    return %c0_i32, %c0_i32_0 : i32, i32
  }
  func.func @transform_11(%arg0: i32) -> (i32, i32) {
    %c0_i32 = arith.constant 0 : i32
    %c0_i32_0 = arith.constant 0 : i32
    %c0_i32_1 = arith.constant 0 : i32
    return %c0_i32, %c0_i32_0 : i32, i32
  }
  func.func @transform_12(%arg0: i32) -> (i32, i32) {
    %c0_i32 = arith.constant 0 : i32
    %c0_i32_0 = arith.constant 0 : i32
    %c0_i32_1 = arith.constant 0 : i32
    return %c0_i32, %c0_i32_0 : i32, i32
  }
  func.func @transform_13(%arg0: i32) -> (i32, i32) {
    %c0_i32 = arith.constant 0 : i32
    %c0_i32_0 = arith.constant 0 : i32
    %c0_i32_1 = arith.constant 0 : i32
    return %c0_i32, %c0_i32_0 : i32, i32
  }
  func.func @transform_14(%arg0: i32) -> (i32, i32) {
    %c0_i32 = arith.constant 0 : i32
    %c0_i32_0 = arith.constant 0 : i32
    %c0_i32_1 = arith.constant 0 : i32
    return %c0_i32, %c0_i32_0 : i32, i32
  }
  func.func @transform_15(%arg0: i32) -> (i32, i32) {
    %c0_i32 = arith.constant 0 : i32
    %c0_i32_0 = arith.constant 0 : i32
    %c0_i32_1 = arith.constant 0 : i32
    return %c0_i32, %c0_i32_0 : i32, i32
  }
  func.func @transform_16(%arg0: i32) -> (i32, i32) {
    %c0_i32 = arith.constant 0 : i32
    %c0_i32_0 = arith.constant 0 : i32
    %c0_i32_1 = arith.constant 0 : i32
    return %c0_i32, %c0_i32_0 : i32, i32
  }
  func.func @transform_17(%arg0: i32) -> (i32, i32) {
    %c0_i32 = arith.constant 0 : i32
    %c0_i32_0 = arith.constant 0 : i32
    %c0_i32_1 = arith.constant 0 : i32
    return %c0_i32, %c0_i32_0 : i32, i32
  }
  func.func @transform_18(%arg0: i32) -> (i32, i32) {
    %c0_i32 = arith.constant 0 : i32
    %c0_i32_0 = arith.constant 0 : i32
    %c0_i32_1 = arith.constant 0 : i32
    return %c0_i32, %c0_i32_0 : i32, i32
  }
  func.func @transform_19(%arg0: i32) -> (i32, i32) {
    %c0_i32 = arith.constant 0 : i32
    %c0_i32_0 = arith.constant 0 : i32
    %c0_i32_1 = arith.constant 0 : i32
    return %c0_i32, %c0_i32_0 : i32, i32
  }
  func.func @transform_20(%arg0: i32) -> (i32, i32) {
    %c0_i32 = arith.constant 0 : i32
    %c0_i32_0 = arith.constant 0 : i32
    %c0_i32_1 = arith.constant 0 : i32
    return %c0_i32, %c0_i32_0 : i32, i32
  }
  func.func @transform_21(%arg0: i32) -> (i32, i32) {
    %c0_i32 = arith.constant 0 : i32
    %c0_i32_0 = arith.constant 0 : i32
    %c0_i32_1 = arith.constant 0 : i32
    return %c0_i32, %c0_i32_0 : i32, i32
  }
}

</mosaic_0001>

<bundles_post_ra>
// kernel: vae_forward.1
= control target key start
LH: loop header
LB: loop body
LE: loop exit
PB: predicated region body
PF: predicated region fallthrough
CT: control target
= control target key end

     0   :  { %v3707_v3 = vmov 0.0   ;;  %vm87_vm0 = vcmask 130048   ;;  %v77_v38 = vlaneseq  ;;  %v3708_v57 = vmov 0   ;;  %s4609_s4 = inlined_call_operand.vmem [shape: f32[16,192], index: 4, kind: input, shape index: {}]   ;;  %s4610_s8 = inlined_call_operand.vmem [shape: f32[64,192], index: 8, kind: input, shape index: {}]   ;;  %s4611_s0 = inlined_call_operand.vmem [shape: f32[16,16], index: 0, kind: input, shape index: {}]   ;;  %s4612_s6 = inlined_call_operand.vmem [shape: f32[16,96], index: 6, kind: input, shape index: {}]   ;;  %s4613_s1 = inlined_call_operand.vmem [shape: f32[16,16], index: 1, kind: input, shape index: {}]   ;;  %s4614_s5 = inlined_call_operand.vmem [shape: f32[1,192], index: 5, kind: input, shape index: {}]   ;;  %s4615_s7 = inlined_call_operand.vmem [shape: f32[1,96], index: 7, kind: input, shape index: {}]   ;;  %s4616_s9 = inlined_call_operand.vmem [shape: f32[1,192], index: 9, kind: input, shape index: {}]   ;;  %s4617_s2 = inlined_call_operand.vmem [shape: s32[2,1], index: 2, kind: input, shape index: {}]   ;;  %s4618_s12 = inlined_call_operand.vmem [shape: f32[64,128], index: 12, kind: input, shape index: {}]   ;;  %s4619_s14 = inlined_call_operand.vmem [shape: f32[128,32], index: 14, kind: input, shape index: {}]   ;;  %s4620_s13 = inlined_call_operand.vmem [shape: f32[1,128], index: 13, kind: input, shape index: {}]   ;;  %s4621_s15 = inlined_call_operand.vmem [shape: f32[1,32], index: 15, kind: input, shape index: {}]   ;;  %s4622_s16 = inlined_call_operand.vmem [shape: f32[16,32], index: 16, kind: input, shape index: {}]   ;;  %s4623_s10 = inlined_call_operand.vmem [shape: f32[32,96], index: 10, kind: input, shape index: {}]   ;;  %s4624_s3 = inlined_call_operand.vmem [shape: f32[2,16], index: 3, kind: input, shape index: {}]   ;;  %s4625_s17 = inlined_call_operand.vmem [shape: f32[1,32], index: 17, kind: input, shape index: {}]   ;;  %s4626_s11 = inlined_call_operand.vmem [shape: f32[1,96], index: 11, kind: input, shape index: {}]   ;;  %s4627_s18 = inlined_call_operand.vmem [shape: f32[32,64], index: 18, kind: input, shape index: {}]   ;;  %s4628_s21 = inlined_call_operand.vmem [shape: f32[2,48], index: 21, kind: output, shape index: {1}]   ;;  %s4629_s19 = inlined_call_operand.vmem [shape: f32[1,64], index: 19, kind: input, shape index: {}]   ;;  %s4630_s20 = inlined_call_operand.vmem [shape: f32[16,64], index: 20, kind: output, shape index: {0}]  }
   0x1   :  { %4636 = sst [smem:[#allocation2_spill]] %s4609_s4  ;;  %158 = vmatprep.mubr.f32.mxu0 %v3707_v3  ;;  %v2942_v53 = vld [vmem:[%s4615_s7] ss:$0 sm:$0xff]  ;;  %3494 = vset.pattern.permute.xlu1 %v3708_v57  ;;  %s3709_s7 = smov 64   ;;  %vm442_vm3 = vcmask 261120   ;;  %vm290_vm4 = vcmask 523264  }
   0x2   :  { %4637 = sst [smem:[#allocation3_spill]] %s4610_s8  ;;  %s4642_s26 = sld [smem:[#allocation2_spill]]  ;;  %v78_v39 = vshrl.u32 %v77_v38, 7  ;;  %v278_v56 = vld [vmem:[%s4616_s9] sm:$0x3]  ;;  %3495 = vset.pattern.permute.xlu0 %v3708_v57 }
   0x3   :  { %4638 = sst [smem:[#allocation4_spill]] %s4611_s0  ;;  %s4643_s22 = sld [smem:[#allocation3_spill]] }
   0x4   :  { %4639 = sst [smem:[#allocation5_spill]] %s4612_s6  ;;  %s4644_s30 = sld [smem:[#allocation4_spill]]  ;;  %v83_v40 = vsub.s32 1, %v78_v39  ;;  %v79_v43 = vsub.s32 0, %v78_v39 }
   0x5   :  { %4640 = sst [smem:[#allocation6_spill]] %s4613_s1  ;;  %s4645_s1 = sld [smem:[#allocation5_spill]] }
   0x6   :  { %4641 = sst [smem:[#allocation7_spill]] %s4614_s5  ;;  %s4646_s0 = sld [smem:[#allocation6_spill]]  ;;  %v3974_v58 = vrot.slane %v278_v56, %v79_v43  ;;  %v3976_v59 = vrot.slane %v278_v56, %v83_v40 }
   0x7   :  { %s4647_s27 = sld [smem:[#allocation7_spill]]  ;;  %s3711_s9 = smov 32  }
   0x8   :  { %v72_v0 = vld [vmem:[%s4642_s26 + $0x8] sm:$0xff]  ;;  %v74_v1 = vld [vmem:[%s4642_s26 + $0x18] sm:$0xff]  ;;  %v71_v2 = vld [vmem:[%s4642_s26] sm:$0xff] }
   0x9   :  { %v3255_v4 = vpack.c.bf16 %v74_v1, %v72_v0  ;;  %v73_v5 = vld [vmem:[%s4642_s26 + $0x10] sm:$0xff]  ;;  %v263_v6 = vld [vmem:[%s4643_s22 + $0x8] sm:$0xff]  ;;  %v265_v8 = vld [vmem:[%s4643_s22 + $0x18] sm:$0xff] }
   0xa   :  { %v3257_v7 = vpack.c.bf16 %v73_v5, %v71_v2  ;;  %v262_v9 = vld [vmem:[%s4643_s22] sm:$0xff]  ;;  %v264_v10 = vld [vmem:[%s4643_s22 + $0x10] sm:$0xff]  ;;  %v3850_v11 = vpack.c.bf16 %v265_v8, %v263_v6  ;;  %v267_v12 = vld [vmem:[%s4643_s22 + $0x28] sm:$0xff] }
   0xb   :  { %3256 = vmatprep.subr.bf16.mxu0 %v3255_v4  ;;  %v269_v13 = vld [vmem:[%s4643_s22 + $0x38] sm:$0xff]  ;;  %v67_v14 = vld [vmem:[%s4644_s30] sm:$0xff]  ;;  %v3861_v15 = vpack.c.bf16 %v264_v10, %v262_v9  ;;  %v268_v18 = vld [vmem:[%s4643_s22 + $0x30] sm:$0xff] }
   0xc   :  { %3258 = vmatpush1.bf16.msra.mxu0 %v3257_v7  ;;  %v3864_v16 = vpack.c.bf16 %v269_v13, %v267_v12  ;;  %v266_v17 = vld [vmem:[%s4643_s22 + $0x20] sm:$0xff]  ;;  %v271_v19 = vld [vmem:[%s4643_s22 + $0x48] sm:$0xff]  ;;  %v273_v20 = vld [vmem:[%s4643_s22 + $0x58] sm:$0xff] }
   0xd   :  { %3264 = vmatprep.subr.bf16.mxu0 %v3850_v11  ;;  %v171_v21 = vld [vmem:[%s4645_s1] sm:$0xff]  ;;  %v172_v22 = vld [vmem:[%s4645_s1 + $0x8] sm:$0xff]  ;;  %v3886_v23 = vpack.c.bf16 %v268_v18, %v266_v17  ;;  %v3896_v27 = vpack.c.bf16 %v273_v20, %v271_v19  ;;  %v272_v29 = vld [vmem:[%s4643_s22 + $0x50] sm:$0xff]  ;;  %s3710_s1 = smov 96  }
   0xe   :  { %v68_v24 = vld [vmem:[%s4644_s30 + $0x8] sm:$0xff]  ;;  %v3259_v25 = vpack.c.bf16 %v172_v22, %v171_v21  ;;  %v69_v26 = vld [vmem:[%s4646_s0] sm:$0xff]  ;;  %v277_v31 = vld [vmem:[%s4643_s22 + $0x78] sm:$0xff] }
   0xf   :  { %2940 = vmatmul.mubr.msk.f32.vlgmr.msra.gmra.mrb[0].mxu0 %vm87_vm0, %v67_v14  ;;  %v270_v28 = vld [vmem:[%s4643_s22 + $0x40] sm:$0xff]  ;;  %3092 = vmatprep.mubr.msk.f32.mxu1 %vm87_vm0, %v69_v26  ;;  %v275_v30 = vld [vmem:[%s4643_s22 + $0x68] sm:$0xff]  ;;  %v276_v36 = vld [vmem:[%s4643_s22 + $0x70] sm:$0xff] }
  0x10   :  { %3266 = vmatpush1.bf16.msra.mxu0 %v3861_v15  ;;  %164 = vmatprep.mubr.f32.mxu0 %v3707_v3  ;;  %v70_v32 = vld [vmem:[%s4646_s0 + $0x8] sm:$0xff]  ;;  %v3916_v33 = vpack.c.bf16 %v272_v29, %v270_v28  ;;  %v3920_v34 = vpack.c.bf16 %v277_v31, %v275_v30  ;;  %v274_v35 = vld [vmem:[%s4643_s22 + $0x60] sm:$0xff] }
  0x11   :  { %3268 = vmatprep.subr.bf16.mxu0 %v3864_v16  ;;  %3260 = vmatprep.subr.bf16.mxu1 %v3259_v25  ;;  %v3933_v37 = vpack.c.bf16 %v276_v36, %v274_v35  ;;  %v75_v41 = vld [vmem:[%s4647_s27] sm:$0x3] }
  0x12   :  { %3262 = vmatpush3.bf16.msra.mxu1 %v3259_v25  ;;  %v84_v42 = vrot.slane %v75_v41, %v83_v40  ;;  %v80_v47 = vrot.slane %v75_v41, %v79_v43  ;;  %v3989_v6 = vld [vmem:[%s4617_s2] sm:$0x3] }
  0x13   :  { %2941 = vmatmul.mubr.msk.f32.gmra.mrb[2].mxu0 %vm87_vm0, %v68_v24  ;;  %3280 = vmatprep.subr.bf16.mxu1 %v3850_v11  ;;  %vm430_vm1 = vcmp.gt.s32.totalorder %v3989_v6, 0  ;;  %vm591_vm5 = vcmp.gt.s32.totalorder %v3989_v6, 1  ;;  %vm768_vm7 = vcmp.gt.s32.totalorder %v3989_v6, 2  ;;  %vm942_vm9 = vcmp.gt.s32.totalorder %v3989_v6, 3 }
  0x14   :  { %3270 = vmatpush1.bf16.msra.mxu0 %v3886_v23  ;;  %358 = vmatprep.mubr.f32.mxu0 %v3707_v3  ;;  %v431_v13 = vsel %vm430_vm1, 1, %v3708_v57  ;;  %vm1108_vm11 = vcmp.gt.s32.totalorder %v3989_v6, 4  ;;  %vm1268_vm13 = vcmp.gt.s32.totalorder %v3989_v6, 5 }
  0x15   :  { %3272 = vmatprep.subr.bf16.mxu0 %v3896_v27  ;;  %3093 = vmatmul.mubr.msk.f32.vlgmr.msra.gmra.mrb[0].mxu1 %vm87_vm0, %v70_v32 }
  0x16   :  { %3282 = vmatpush1.bf16.msra.mxu1 %v3861_v15  ;;  %511 = vmatprep.mubr.f32.mxu1 %v3707_v3 }
  0x17   :  { %3284 = vmatprep.subr.bf16.mxu1 %v3864_v16 }
  0x18   :  { %3274 = vmatpush1.bf16.msra.mxu0 %v3916_v33 }
  0x19   :  { %3276 = vmatprep.subr.bf16.mxu0 %v3920_v34 }
  0x1a   :  { %3286 = vmatpush1.bf16.msra.mxu1 %v3886_v23 }
  0x1b   :  { %3288 = vmatprep.subr.bf16.mxu1 %v3896_v27 }
  0x1c   :  { %3278 = vmatpush1.bf16.msra.mxu0 %v3933_v37 }
  0x1d   :  { %3296 = vmatprep.subr.bf16.mxu0 %v3850_v11 }
  0x1e   :  { %3290 = vmatpush1.bf16.msra.mxu1 %v3916_v33 }
  0x1f   :  { %359 = vmatmul.mubr.f32.vlgmr.msra.gmra.mrb[4].mxu0 %v3707_v3  ;;  %3292 = vmatprep.subr.bf16.mxu1 %v3920_v34 }
  0x20   :  { %3298 = vmatpush1.bf16.msra.mxu0 %v3861_v15  ;;  %684 = vmatprep.mubr.f32.mxu0 %v3707_v3 }
  0x21   :  { %3300 = vmatprep.subr.bf16.mxu0 %v3864_v16 }
  0x22   :  { %3294 = vmatpush1.bf16.msra.mxu1 %v3933_v37 }
  0x23   :  { %3312 = vmatprep.subr.bf16.mxu1 %v3850_v11 }
  0x24   :  { %3302 = vmatpush1.bf16.msra.mxu0 %v3886_v23 }
  0x25   :  { %3304 = vmatprep.subr.bf16.mxu0 %v3896_v27 }
  0x28   :  { %3306 = vmatpush1.bf16.msra.mxu0 %v3916_v33 }
  0x29   :  { %3308 = vmatprep.subr.bf16.mxu0 %v3920_v34 }
  0x2c   :  { %3310 = vmatpush1.bf16.msra.mxu0 %v3933_v37 }
  0x2d   :  { %3328 = vmatprep.subr.bf16.mxu0 %v3850_v11 }
  0xe2   :  { %v160_v44 = vpop.f32.mrb[0].mxu0 }
  0xe3   :  { %v162_v45 = vpop.f32.mrb[1].mxu0  ;;  %v3983_v0 = vadd.f32 %v160_v44, %v80_v47 }
  0xe4   :  { %v3958_v46 = vadd.f32 %v162_v45, %v84_v42 }
  0xe6   :  { %v166_v48 = vpop.f32.mrb[2].mxu0 }
  0xe7   :  { %v3960_v49 = vadd.f32 %v166_v48, %v80_v47  ;;  %v168_v50 = vpop.f32.mrb[3].mxu0 }
  0xe8   :  { %v3962_v51 = vadd.f32 %v168_v50, %v84_v42  ;;  %v3094_v52 = vpop.f32.mrb[0].mxu1 }
  0xe9   :  { %v3967_v54 = vadd.f32 %v3094_v52, %v2942_v53  ;;  %v252_v55 = vpop.f32.mrb[1].mxu1 }
  0xea   :  { %v3991_v10 = vadd.f32 %v2942_v53, %v252_v55 }
  0xf2   :  { %v360_v60 = vpop.f32.mrb[4].mxu0 }
  0xf3   :  { %v361_v61 = vadd.f32 %v360_v60, %v3974_v58  ;;  %v362_v62 = vpop.f32.mrb[5].mxu0 }
  0xf4   :  { %v363_v63 = vadd.f32 %v362_v62, %v3976_v59 }
  0xf5   :  { %373 = vrot.lane.b32.xlu0 %v361_v61, %s3709_s7  ;;  %v365_v1 = vadd.f32 %v361_v61, %v3983_v0 }
  0xf6   :  { %412 = vrot.lane.b32.xlu1 %v363_v63, %s3710_s1 }
  0xf7   :  { %v2945_v2 = vmul.f32 -1.442695, %v365_v1 }
  0xf9   :  { %391 = vrot.lane.b32.xlu0 %v361_v61, %s3711_s9  ;;  %3496 = vpow2.f32 %v2945_v2 }
 0x103   :  { %v3497_v4 = vpop.eup %3496 }
 0x104   :  { %v369_v5 = vadd.f32 1.0, %v3497_v4 }
 0x106   :  { %3498 = vrcp.f32 %v369_v5 }
 0x110   :  { %v3499_v7 = vpop.eup %3498 }
 0x111   :  { %v383_v31 = vsub.f32 1.0, %v3499_v7  ;;  %v389_v38 = vmul.f32 0.0, %v3499_v7 }
 0x167   :  { %v374_v8 = vpop.permute.xlu0 %373 }
 0x168   :  { %v376_v9 = vmul.f32 %v3499_v7, %v374_v8  ;;  %v413_v21 = vpop.permute.xlu1 %412 }
 0x16a   :  { %378 = vrot.lane.b32.xlu1 %v376_v9, %s3709_s7 }
 0x16b   :  { %v392_v12 = vpop.permute.xlu0 %391 }
 0x16c   :  { %v394_v14 = vadd.f32 %v392_v12, %v3991_v10 }
 0x16e   :  { %v2946_v17 = vmul.f32 -1.442695, %v394_v14  ;;  %433 = vperm.xlu1 %3494, %v431_v13  }
 0x170   :  { %3500 = vpow2.f32 %v2946_v17 }
 0x172   :  { %402 = vrot.lane.b32.xlu1 %v363_v63, %s3711_s9 }
 0x17a   :  { %v3501_v18 = vpop.eup %3500 }
 0x17b   :  { %v398_v19 = vadd.f32 1.0, %v3501_v18 }
 0x17d   :  { %3502 = vrcp.f32 %v398_v19 }
 0x187   :  { %v3503_v20 = vpop.eup %3502 }
 0x188   :  { %v415_v22 = vmul.f32 %v3503_v20, %v413_v21 }
 0x18a   :  { %417 = vrot.lane.b32.xlu0 %v415_v22, %s3709_s7 }
 0x1dc   :  { %v379_v24 = vpop.permute.xlu1 %378 }
 0x1dd   :  { %v381_v25 = vadd.f32 %v379_v24, %v3983_v0 }
 0x1df   :  { %3504 = vtanh.f32 %v381_v25 }
 0x1e9   :  { %v3505_v26 = vpop.eup %3504 }
 0x1ea   :  { %385 = vrot.lane.b32.xlu0 %v3505_v26, %s3710_s1 }
 0x1ed   :  { %v434_v35 = vpop.permute.xlu1 %433 }
 0x1ee   :  { %vm435_vm2 = vcmp.eq.s32.totalorder %v434_v35, 1 }
 0x1f1   :  { %v403_v41 = vpop.permute.xlu1 %402 }
 0x1f2   :  { %v405_v42 = vadd.f32 %v403_v41, %v3991_v10 }
 0x1f4   :  { %v2947_v43 = vmul.f32 -1.442695, %v405_v42 }
 0x1fc   :  { %v418_v28 = vpop.permute.xlu0 %417 }
 0x1fd   :  { %v420_v29 = vadd.f32 %v418_v28, %v3991_v10  ;;  %v592_v28 = vsel %vm591_vm5, 1, %v3708_v57  ;;  %vm3713_vm5 = vmmov 0  }
 0x1ff   :  { %3506 = vtanh.f32 %v420_v29 }
 0x200   :  { %3508 = vpow2.f32 %v2947_v43 }
 0x209   :  { %v3507_v30 = vpop.eup %3506 }
 0x20a   :  { %424 = vrot.lane.b32.xlu0 %v3507_v30, %s3710_s1  ;;  %v3509_v44 = vpop.eup %3508 }
 0x20b   :  { %v409_v45 = vadd.f32 1.0, %v3509_v44 }
 0x20d   :  { %3510 = vrcp.f32 %v409_v45 }
 0x217   :  { %v3511_v47 = vpop.eup %3510 }
 0x218   :  { %v422_v50 = vsub.f32 1.0, %v3511_v47  ;;  %v428_v53 = vmul.f32 0.0, %v3511_v47 }
 0x25c   :  { %v386_v32 = vpop.permute.xlu0 %385 }
 0x25d   :  { %v388_v36 = vmul.f32 %v386_v32, %v383_v31 }
 0x25f   :  { %v390_v39 = vadd.f32 %v389_v38, %v388_v36 }
 0x261   :  { %v4004_v40 = vsel %vm435_vm2, %v390_v39, 0.0 }
 0x262   :  { %439 = vrot.lane.b32.xlu1 %v4004_v40, %s3710_s1 }
 0x27c   :  { %v425_v48 = vpop.permute.xlu0 %424 }
 0x27d   :  { %v427_v52 = vmul.f32 %v425_v48, %v422_v50 }
 0x27f   :  { %v429_v55 = vadd.f32 %v428_v53, %v427_v52  ;;  %v544_v53 = vrot.slane %v4004_v40, 6 }
 0x281   :  { %v4010_v56 = vsel %vm435_vm2, %v429_v55, 0.0 }
 0x282   :  { %v587_v47 = vrot.slane %v4010_v56, 6 }
 0x2d4   :  { %v4012_v60 = vpop.permute.xlu1 %439 }
 0x2d5   :  { %v443_v61 = vsel %vm442_vm3, %v4012_v60, %v4010_v56 }
 0x2d6   :  { %2948 = vmatmul.mubr.msk.f32.vlgmr.msra.gmra.mrb[2].mxu1 %vm290_vm4, %v443_v61 }
 0x2d7   :  { %3314 = vmatpush1.bf16.msra.mxu1 %v3861_v15  ;;  %858 = vmatprep.mubr.f32.mxu1 %v3707_v3 }
 0x2d8   :  { %3316 = vmatprep.subr.bf16.mxu1 %v3864_v16 }
 0x2db   :  { %3318 = vmatpush1.bf16.msra.mxu1 %v3886_v23 }
 0x2dc   :  { %3320 = vmatprep.subr.bf16.mxu1 %v3896_v27 }
 0x2df   :  { %3322 = vmatpush1.bf16.msra.mxu1 %v3916_v33 }
 0x2e0   :  { %3324 = vmatprep.subr.bf16.mxu1 %v3920_v34 }
 0x2e3   :  { %3326 = vmatpush1.bf16.msra.mxu1 %v3933_v37 }
 0x2e4   :  { %3344 = vmatprep.subr.bf16.mxu1 %v3850_v11 }
 0x3a9   :  { %v513_v62 = vpop.f32.mrb[2].mxu1 }
 0x3aa   :  { %v514_v63 = vadd.f32 %v513_v62, %v3974_v58  ;;  %v515_v1 = vpop.f32.mrb[3].mxu1 }
 0x3ab   :  { %v516_v2 = vadd.f32 %v515_v1, %v3976_v59 }
 0x3ac   :  { %v519_v4 = vrot.slane %v514_v63, 6 }
 0x3ad   :  { %v559_v5 = vrot.slane %v516_v2, 6 }
 0x3ae   :  { %548 = vrot.lane.b32.xlu0 %v519_v4, %s3711_s9  ;;  %v521_v7 = vadd.f32 %v519_v4, %v3983_v0 }
 0x3af   :  { %570 = vrot.lane.b32.xlu1 %v559_v5, %s3710_s1 }
 0x3b0   :  { %v2949_v8 = vmul.f32 -1.442695, %v521_v7 }
 0x3b2   :  { %528 = vrot.lane.b32.xlu0 %v519_v4, %s3709_s7  ;;  %3512 = vpow2.f32 %v2949_v8 }
 0x3b6   :  { %560 = vrot.lane.b32.xlu0 %v559_v5, %s3711_s9 }
 0x3bc   :  { %v3513_v14 = vpop.eup %3512 }
 0x3bd   :  { %v525_v19 = vadd.f32 1.0, %v3513_v14 }
 0x420   :  { %v549_v9 = vpop.permute.xlu0 %548 }
 0x421   :  { %v551_v12 = vadd.f32 %v549_v9, %v3991_v10  ;;  %v571_v21 = vpop.permute.xlu1 %570 }
 0x423   :  { %v2950_v13 = vmul.f32 -1.442695, %v551_v12 }
 0x424   :  { %v529_v24 = vpop.permute.xlu0 %528 }
 0x425   :  { %3514 = vpow2.f32 %v2950_v13 }
 0x428   :  { %v561_v38 = vpop.permute.xlu0 %560 }
 0x429   :  { %v563_v39 = vadd.f32 %v561_v38, %v3991_v10 }
 0x42b   :  { %v2951_v41 = vmul.f32 -1.442695, %v563_v39 }
 0x42f   :  { %v3515_v17 = vpop.eup %3514 }
 0x430   :  { %v555_v18 = vadd.f32 1.0, %v3515_v17 }
 0x432   :  { %3516 = vrcp.f32 %v555_v18 }
 0x433   :  { %3518 = vrcp.f32 %v525_v19 }
 0x43c   :  { %v3517_v20 = vpop.eup %3516 }
 0x43d   :  { %v573_v22 = vmul.f32 %v3517_v20, %v571_v21  ;;  %v3519_v25 = vpop.eup %3518 }
 0x43e   :  { %v531_v26 = vmul.f32 %v3519_v25, %v529_v24  ;;  %v538_v61 = vsub.f32 1.0, %v3519_v25  ;;  %v546_v63 = vmul.f32 %v3519_v25, %v544_v53 }
 0x43f   :  { %575 = vrot.lane.b32.xlu1 %v573_v22, %s3709_s7 }
 0x443   :  { %533 = vrot.lane.b32.xlu1 %v531_v26, %s3709_s7 }
 0x447   :  { %594 = vperm.xlu1 %3494, %v592_v28  }
 0x4b1   :  { %v576_v29 = vpop.permute.xlu1 %575 }
 0x4b2   :  { %v578_v30 = vadd.f32 %v576_v29, %v3991_v10 }
 0x4b4   :  { %3520 = vtanh.f32 %v578_v30 }
 0x4b5   :  { %v534_v31 = vpop.permute.xlu1 %533 }
 0x4b6   :  { %v536_v32 = vadd.f32 %v534_v31, %v3983_v0 }
 0x4b8   :  { %3522 = vtanh.f32 %v536_v32 }
 0x4b9   :  { %3524 = vpow2.f32 %v2951_v41 }
 0x4be   :  { %v3521_v35 = vpop.eup %3520 }
 0x4bf   :  { %582 = vrot.lane.b32.xlu0 %v3521_v35, %s3710_s1 }
 0x4c2   :  { %v3523_v36 = vpop.eup %3522 }
 0x4c3   :  { %540 = vrot.lane.b32.xlu0 %v3523_v36, %s3710_s1  ;;  %v3525_v42 = vpop.eup %3524 }
 0x4c4   :  { %v567_v43 = vadd.f32 1.0, %v3525_v42 }
 0x4c6   :  { %3526 = vrcp.f32 %v567_v43  ;;  %v595_v7 = vpop.permute.xlu1 %594 }
 0x4c7   :  { %608 = vrot.lane.b32.xlu0 %v4010_v56, %s3710_s1  ;;  %vm596_vm6 = vcmp.eq.s32.totalorder %v595_v7, 1 }
 0x4d0   :  { %v3527_v44 = vpop.eup %3526 }
 0x4d1   :  { %v580_v45 = vsub.f32 1.0, %v3527_v44  ;;  %v589_v50 = vmul.f32 %v3527_v44, %v587_v47 }
 0x531   :  { %v583_v48 = vpop.permute.xlu0 %582 }
 0x532   :  { %v585_v52 = vmul.f32 %v583_v48, %v580_v45 }
 0x534   :  { %v590_v55 = vadd.f32 %v589_v50, %v585_v52  ;;  %v769_v52 = vsel %vm768_vm7, 1, %v3708_v57  ;;  %vm2825_vm7 = vcmask 1043456  }
 0x535   :  { %v541_v62 = vpop.permute.xlu0 %540 }
 0x536   :  { %v543_v1 = vmul.f32 %v541_v62, %v538_v61  ;;  %v604_v2 = vrot.slane %v590_v55, 2 }
 0x538   :  { %v547_v4 = vadd.f32 %v546_v63, %v543_v1  ;;  %605 = vrot.lane.b32.xlu1 %v604_v2, %s3710_s1 }
 0x539   :  { %v609_v56 = vpop.permute.xlu0 %608 }
 0x53a   :  { %v598_v5 = vrot.slane %v547_v4, 2 }
 0x53c   :  { %599 = vrot.lane.b32.xlu1 %v598_v5, %s3710_s1 }
 0x5aa   :  { %v606_v8 = vpop.permute.xlu1 %605 }
 0x5ab   :  { %v4050_v9 = vsel %vm596_vm6, %v606_v8, %v609_v56 }
 0x5ac   :  { %613 = vrot.lane.b32.xlu0 %v4050_v9, %s3711_s9  ;;  %v762_v43 = vrot.slane %v4050_v9, 4 }
 0x5ae   :  { %v600_v40 = vpop.permute.xlu1 %599 }
 0x5af   :  { %v4055_v12 = vsel %vm596_vm6, %v600_v40, %v4012_v60 }
 0x5b0   :  { %v718_v55 = vrot.slane %v4055_v12, 4 }
 0x61e   :  { %v614_v13 = vpop.permute.xlu0 %613 }
 0x61f   :  { %v616_v14 = vsel %vm442_vm3, %v4055_v12, %v614_v13 }
 0x620   :  { %2952 = vmatmul.mubr.msk.f32.vlgmr.msra.gmra.mrb[6].mxu0 %vm290_vm4, %v616_v14 }
 0x621   :  { %3330 = vmatpush1.bf16.msra.mxu0 %v3861_v15  ;;  %1032 = vmatprep.mubr.f32.mxu0 %v3707_v3 }
 0x622   :  { %3332 = vmatprep.subr.bf16.mxu0 %v3864_v16 }
 0x625   :  { %3334 = vmatpush1.bf16.msra.mxu0 %v3886_v23 }
 0x626   :  { %3336 = vmatprep.subr.bf16.mxu0 %v3896_v27 }
 0x629   :  { %3338 = vmatpush1.bf16.msra.mxu0 %v3916_v33 }
 0x62a   :  { %3340 = vmatprep.subr.bf16.mxu0 %v3920_v34 }
 0x62d   :  { %3342 = vmatpush1.bf16.msra.mxu0 %v3933_v37 }
 0x62e   :  { %3360 = vmatprep.subr.bf16.mxu0 %v3850_v11 }
 0x6f3   :  { %v686_v60 = vpop.f32.mrb[6].mxu0 }
 0x6f4   :  { %v687_v17 = vadd.f32 %v686_v60, %v3974_v58  ;;  %v688_v18 = vpop.f32.mrb[7].mxu0 }
 0x6f5   :  { %v689_v19 = vadd.f32 %v688_v18, %v3976_v59 }
 0x6f6   :  { %v692_v20 = vrot.slane %v687_v17, 4 }
 0x6f7   :  { %v735_v21 = vrot.slane %v689_v19, 4 }
 0x6f8   :  { %724 = vrot.lane.b32.xlu1 %v692_v20, %s3711_s9  ;;  %v694_v22 = vadd.f32 %v692_v20, %v3983_v0 }
 0x6f9   :  { %746 = vrot.lane.b32.xlu0 %v735_v21, %s3710_s1 }
 0x6fa   :  { %v2953_v24 = vmul.f32 -1.442695, %v694_v22 }
 0x6fc   :  { %701 = vrot.lane.b32.xlu1 %v692_v20, %s3709_s7  ;;  %3528 = vpow2.f32 %v2953_v24 }
 0x700   :  { %736 = vrot.lane.b32.xlu1 %v735_v21, %s3711_s9 }
 0x706   :  { %v3529_v29 = vpop.eup %3528 }
 0x707   :  { %v698_v32 = vadd.f32 1.0, %v3529_v29 }
 0x76a   :  { %v725_v25 = vpop.permute.xlu1 %724 }
 0x76b   :  { %v727_v26 = vadd.f32 %v725_v25, %v3991_v10  ;;  %v747_v36 = vpop.permute.xlu0 %746 }
 0x76d   :  { %v2954_v28 = vmul.f32 -1.442695, %v727_v26 }
 0x76e   :  { %v702_v39 = vpop.permute.xlu1 %701 }
 0x76f   :  { %3530 = vpow2.f32 %v2954_v28 }
 0x772   :  { %v737_v61 = vpop.permute.xlu1 %736 }
 0x773   :  { %v739_v62 = vadd.f32 %v737_v61, %v3991_v10 }
 0x775   :  { %v2955_v63 = vmul.f32 -1.442695, %v739_v62 }
 0x779   :  { %v3531_v30 = vpop.eup %3530 }
 0x77a   :  { %v731_v31 = vadd.f32 1.0, %v3531_v30 }
 0x77c   :  { %3532 = vrcp.f32 %v731_v31 }
 0x77d   :  { %3534 = vrcp.f32 %v698_v32 }
 0x786   :  { %v3533_v35 = vpop.eup %3532 }
 0x787   :  { %v749_v38 = vmul.f32 %v3533_v35, %v747_v36  ;;  %v3535_v41 = vpop.eup %3534 }
 0x788   :  { %v704_v42 = vmul.f32 %v3535_v41, %v702_v39  ;;  %v711_v18 = vsub.f32 1.0, %v3535_v41 }
 0x789   :  { %751 = vrot.lane.b32.xlu0 %v749_v38, %s3709_s7 }
 0x78d   :  { %706 = vrot.lane.b32.xlu0 %v704_v42, %s3709_s7 }
 0x791   :  { %763 = vrot.lane.b32.xlu0 %v762_v43, %s3711_s9 }
 0x7fb   :  { %v752_v44 = vpop.permute.xlu0 %751 }
 0x7fc   :  { %v754_v45 = vadd.f32 %v752_v44, %v3991_v10 }
 0x7fe   :  { %3536 = vtanh.f32 %v754_v45 }
 0x7ff   :  { %v707_v47 = vpop.permute.xlu0 %706 }
 0x800   :  { %v709_v48 = vadd.f32 %v707_v47, %v3983_v0 }
 0x802   :  { %3538 = vtanh.f32 %v709_v48 }
 0x803   :  { %3540 = vpow2.f32 %v2955_v63  ;;  %v764_v5 = vpop.permute.xlu0 %763 }
 0x808   :  { %v3537_v50 = vpop.eup %3536 }
 0x809   :  { %758 = vrot.lane.b32.xlu1 %v3537_v50, %s3710_s1 }
 0x80c   :  { %v3539_v53 = vpop.eup %3538 }
 0x80d   :  { %771 = vperm.xlu1 %3494, %v769_v52   ;;  %713 = vrot.lane.b32.xlu0 %v3539_v53, %s3710_s1  ;;  %v3541_v1 = vpop.eup %3540 }
 0x80e   :  { %v743_v2 = vadd.f32 1.0, %v3541_v1 }
 0x810   :  { %3542 = vrcp.f32 %v743_v2 }
 0x811   :  { %719 = vrot.lane.b32.xlu1 %v718_v55, %s3711_s9 }
 0x81a   :  { %v3543_v4 = vpop.eup %3542 }
 0x81b   :  { %v756_v7 = vsub.f32 1.0, %v3543_v4  ;;  %v766_v8 = vmul.f32 %v3543_v4, %v764_v5 }
 0x87b   :  { %v759_v56 = vpop.permute.xlu1 %758 }
 0x87c   :  { %v761_v40 = vmul.f32 %v759_v56, %v756_v7  ;;  %v943_v56 = vsel %vm942_vm9, 1, %v3708_v57  ;;  %vm2930_vm9 = vcmask 386048  }
 0x87e   :  { %v767_v13 = vadd.f32 %v766_v8, %v761_v40 }
 0x87f   :  { %v714_v17 = vpop.permute.xlu0 %713 }
 0x880   :  { %v781_v14 = vrot.slane %v767_v13, 4  ;;  %v716_v20 = vmul.f32 %v714_v17, %v711_v18 }
 0x882   :  { %782 = vrot.lane.b32.xlu0 %v781_v14, %s3710_s1 }
 0x88c   :  { %v772_v60 = vpop.permute.xlu1 %771 }
 0x88d   :  { %vm773_vm8 = vcmp.eq.s32.totalorder %v772_v60, 1 }
 0x890   :  { %v720_v19 = vpop.permute.xlu1 %719 }
 0x891   :  { %v722_v21 = vmul.f32 %v3535_v41, %v720_v19 }
 0x893   :  { %v723_v22 = vadd.f32 %v722_v21, %v716_v20 }
 0x895   :  { %v775_v24 = vrot.slane %v723_v22, 4 }
 0x897   :  { %776 = vrot.lane.b32.xlu1 %v775_v24, %s3710_s1 }
 0x8f4   :  { %v783_v25 = vpop.permute.xlu0 %782 }
 0x8f5   :  { %v4093_v26 = vsel %vm773_vm8, %v783_v25, %v4050_v9 }
 0x8f6   :  { %787 = vrot.lane.b32.xlu0 %v4093_v26, %s3711_s9  ;;  %v936_v63 = vrot.slane %v4093_v26, 2 }
 0x909   :  { %v777_v28 = vpop.permute.xlu1 %776 }
 0x90a   :  { %v4098_v29 = vsel %vm773_vm8, %v777_v28, %v4055_v12  ;;  %vm2827_vm8 = vcmask 1045504  }
 0x90b   :  { %v892_v40 = vrot.slane %v4098_v29, 2 }
 0x968   :  { %v788_v30 = vpop.permute.xlu0 %787 }
 0x969   :  { %v790_v31 = vsel %vm442_vm3, %v4098_v29, %v788_v30 }
 0x96a   :  { %2956 = vmatmul.mubr.msk.f32.vlgmr.msra.gmra.mrb[4].mxu1 %vm290_vm4, %v790_v31 }
 0x96b   :  { %3346 = vmatpush1.bf16.msra.mxu1 %v3861_v15  ;;  %1188 = vmatprep.mubr.f32.mxu1 %v3707_v3 }
 0x96c   :  { %3348 = vmatprep.subr.bf16.mxu1 %v3864_v16 }
 0x96f   :  { %3350 = vmatpush1.bf16.msra.mxu1 %v3886_v23 }
 0x970   :  { %3352 = vmatprep.subr.bf16.mxu1 %v3896_v27 }
 0x973   :  { %3354 = vmatpush1.bf16.msra.mxu1 %v3916_v33 }
 0x974   :  { %3356 = vmatprep.subr.bf16.mxu1 %v3920_v34 }
 0x977   :  { %3358 = vmatpush1.bf16.msra.mxu1 %v3933_v37 }
 0x978   :  { %3376 = vmatprep.subr.bf16.mxu1 %v3850_v11 }
 0xa3d   :  { %v860_v9 = vpop.f32.mrb[4].mxu1 }
 0xa3e   :  { %v861_v12 = vadd.f32 %v860_v9, %v3974_v58  ;;  %v862_v32 = vpop.f32.mrb[5].mxu1 }
 0xa3f   :  { %v863_v35 = vadd.f32 %v862_v32, %v3976_v59 }
 0xa40   :  { %v866_v36 = vrot.slane %v861_v12, 2 }
 0xa41   :  { %v909_v38 = vrot.slane %v863_v35, 2 }
 0xa42   :  { %898 = vrot.lane.b32.xlu1 %v866_v36, %s3711_s9  ;;  %v868_v39 = vadd.f32 %v866_v36, %v3983_v0 }
 0xa43   :  { %920 = vrot.lane.b32.xlu0 %v909_v38, %s3710_s1 }
 0xa44   :  { %v2957_v41 = vmul.f32 -1.442695, %v868_v39 }
 0xa46   :  { %875 = vrot.lane.b32.xlu1 %v866_v36, %s3709_s7  ;;  %3544 = vpow2.f32 %v2957_v41 }
 0xa4a   :  { %910 = vrot.lane.b32.xlu1 %v909_v38, %s3711_s9 }
 0xa50   :  { %v3545_v44 = vpop.eup %3544 }
 0xa51   :  { %v872_v48 = vadd.f32 1.0, %v3545_v44 }
 0xab4   :  { %v899_v11 = vpop.permute.xlu1 %898 }
 0xab5   :  { %v901_v42 = vadd.f32 %v899_v11, %v3991_v10  ;;  %v921_v52 = vpop.permute.xlu0 %920 }
 0xab7   :  { %v2958_v43 = vmul.f32 -1.442695, %v901_v42 }
 0xab8   :  { %v876_v55 = vpop.permute.xlu1 %875 }
 0xab9   :  { %3546 = vpow2.f32 %v2958_v43 }
 0xabc   :  { %v911_v13 = vpop.permute.xlu1 %910 }
 0xabd   :  { %v913_v14 = vadd.f32 %v911_v13, %v3991_v10 }
 0xabf   :  { %v2959_v60 = vmul.f32 -1.442695, %v913_v14 }
 0xac3   :  { %v3547_v45 = vpop.eup %3546 }
 0xac4   :  { %v905_v47 = vadd.f32 1.0, %v3547_v45 }
 0xac6   :  { %3548 = vrcp.f32 %v905_v47 }
 0xac7   :  { %3550 = vrcp.f32 %v872_v48 }
 0xad0   :  { %v3549_v50 = vpop.eup %3548 }
 0xad1   :  { %v923_v53 = vmul.f32 %v3549_v50, %v921_v52  ;;  %v3551_v61 = vpop.eup %3550 }
 0xad2   :  { %v878_v62 = vmul.f32 %v3551_v61, %v876_v55  ;;  %v885_v12 = vsub.f32 1.0, %v3551_v61 }
 0xad3   :  { %925 = vrot.lane.b32.xlu0 %v923_v53, %s3709_s7 }
 0xad7   :  { %880 = vrot.lane.b32.xlu0 %v878_v62, %s3709_s7 }
 0xadb   :  { %937 = vrot.lane.b32.xlu0 %v936_v63, %s3711_s9 }
 0xb45   :  { %v926_v1 = vpop.permute.xlu0 %925 }
 0xb46   :  { %v928_v2 = vadd.f32 %v926_v1, %v3991_v10 }
 0xb48   :  { %3552 = vtanh.f32 %v928_v2 }
 0xb49   :  { %v881_v4 = vpop.permute.xlu0 %880 }
 0xb4a   :  { %v883_v5 = vadd.f32 %v881_v4, %v3983_v0  ;;  %v1109_v4 = vsel %vm1108_vm11, 1, %v3708_v57 }
 0xb4c   :  { %3554 = vtanh.f32 %v883_v5 }
 0xb4d   :  { %3556 = vpow2.f32 %v2959_v60  ;;  %v938_v20 = vpop.permute.xlu0 %937 }
 0xb52   :  { %v3553_v7 = vpop.eup %3552 }
 0xb53   :  { %932 = vrot.lane.b32.xlu1 %v3553_v7, %s3710_s1 }
 0xb56   :  { %v3555_v8 = vpop.eup %3554 }
 0xb57   :  { %945 = vperm.xlu1 %3494, %v943_v56   ;;  %887 = vrot.lane.b32.xlu0 %v3555_v8, %s3710_s1  ;;  %v3557_v17 = vpop.eup %3556 }
 0xb58   :  { %v917_v18 = vadd.f32 1.0, %v3557_v17 }
 0xb5a   :  { %3558 = vrcp.f32 %v917_v18 }
 0xb5b   :  { %893 = vrot.lane.b32.xlu1 %v892_v40, %s3711_s9 }
 0xb64   :  { %v3559_v19 = vpop.eup %3558 }
 0xb65   :  { %v930_v21 = vsub.f32 1.0, %v3559_v19  ;;  %v940_v24 = vmul.f32 %v3559_v19, %v938_v20 }
 0xbc5   :  { %v933_v22 = vpop.permute.xlu1 %932 }
 0xbc6   :  { %v935_v25 = vmul.f32 %v933_v22, %v930_v21 }
 0xbc8   :  { %v941_v28 = vadd.f32 %v940_v24, %v935_v25 }
 0xbc9   :  { %v888_v9 = vpop.permute.xlu0 %887 }
 0xbca   :  { %v955_v30 = vrot.slane %v941_v28, 6  ;;  %v890_v10 = vmul.f32 %v888_v9, %v885_v12 }
 0xbcc   :  { %956 = vrot.lane.b32.xlu0 %v955_v30, %s3710_s1 }
 0xbd6   :  { %v946_v31 = vpop.permute.xlu1 %945 }
 0xbd7   :  { %vm947_vm10 = vcmp.eq.s32.totalorder %v946_v31, 1 }
 0xbda   :  { %v894_v32 = vpop.permute.xlu1 %893 }
 0xbdb   :  { %v896_v35 = vmul.f32 %v3551_v61, %v894_v32 }
 0xbdd   :  { %v897_v36 = vadd.f32 %v896_v35, %v890_v10 }
 0xbdf   :  { %v949_v38 = vrot.slane %v897_v36, 6 }
 0xbe1   :  { %950 = vrot.lane.b32.xlu1 %v949_v38, %s3710_s1 }
 0xc3e   :  { %v957_v39 = vpop.permute.xlu0 %956 }
 0xc3f   :  { %v959_v41 = vsel %vm947_vm10, %v957_v39, %v4093_v26 }
 0xc40   :  { %961 = vrot.lane.b32.xlu0 %v959_v41, %s3711_s9 }
 0xc53   :  { %v951_v11 = vpop.permute.xlu1 %950 }
 0xc54   :  { %v953_v42 = vsel %vm947_vm10, %v951_v11, %v4098_v29 }
 0xcb2   :  { %v4138_v43 = vpop.permute.xlu0 %961 }
 0xcb3   :  { %v964_v44 = vsel %vm442_vm3, %v953_v42, %v4138_v43 }
 0xcb4   :  { %2960 = vmatmul.mubr.msk.f32.vlgmr.msra.gmra.mrb[8].mxu0 %vm290_vm4, %v964_v44 }
 0xcb5   :  { %3362 = vmatpush1.bf16.msra.mxu0 %v3861_v15  ;;  %1361 = vmatprep.mubr.f32.mxu0 %v3707_v3 }
 0xcb6   :  { %3364 = vmatprep.subr.bf16.mxu0 %v3864_v16 }
 0xcb9   :  { %3366 = vmatpush1.bf16.msra.mxu0 %v3886_v23 }
 0xcba   :  { %3368 = vmatprep.subr.bf16.mxu0 %v3896_v27 }
 0xcbd   :  { %3370 = vmatpush1.bf16.msra.mxu0 %v3916_v33 }
 0xcbe   :  { %3372 = vmatprep.subr.bf16.mxu0 %v3920_v34 }
 0xcc1   :  { %3374 = vmatpush1.bf16.msra.mxu0 %v3933_v37 }
 0xd87   :  { %v1034_v26 = vpop.f32.mrb[8].mxu0 }
 0xd88   :  { %v1035_v29 = vadd.f32 %v1034_v26, %v3974_v58  ;;  %v1036_v45 = vpop.f32.mrb[9].mxu0 }
 0xd89   :  { %v1037_v47 = vadd.f32 %v1036_v45, %v3976_v59 }
 0xd8a   :  { %1069 = vrot.lane.b32.xlu0 %v1035_v29, %s3711_s9  ;;  %1047 = vrot.lane.b32.xlu1 %v1035_v29, %s3709_s7  ;;  %v1039_v48 = vadd.f32 %v1035_v29, %v3960_v49 }
 0xd8c   :  { %v2961_v50 = vmul.f32 -1.442695, %v1039_v48 }
 0xd8e   :  { %1090 = vrot.lane.b32.xlu1 %v1037_v47, %s3710_s1  ;;  %3560 = vpow2.f32 %v2961_v50 }
 0xd98   :  { %v3561_v52 = vpop.eup %3560 }
 0xd99   :  { %v1043_v53 = vadd.f32 1.0, %v3561_v52 }
 0xd9b   :  { %3562 = vrcp.f32 %v1043_v53 }
 0xda5   :  { %v3563_v55 = vpop.eup %3562 }
 0xda6   :  { %v1057_v21 = vsub.f32 1.0, %v3563_v55 }
 0xdfc   :  { %v1070_v61 = vpop.permute.xlu0 %1069  ;;  %v1048_v62 = vpop.permute.xlu1 %1047 }
 0xdfd   :  { %v1072_v63 = vadd.f32 %v1070_v61, %v3967_v54  ;;  %v1050_v1 = vmul.f32 %v3563_v55, %v1048_v62 }
 0xdff   :  { %v2962_v2 = vmul.f32 -1.442695, %v1072_v63  ;;  %1052 = vrot.lane.b32.xlu0 %v1050_v1, %s3709_s7 }
 0xe00   :  { %v1091_v8 = vpop.permute.xlu1 %1090 }
 0xe01   :  { %3564 = vpow2.f32 %v2962_v2 }
 0xe03   :  { %1111 = vperm.xlu0 %3495, %v1109_v4  }
 0xe07   :  { %1080 = vrot.lane.b32.xlu0 %v1037_v47, %s3711_s9 }
 0xe0b   :  { %v3565_v5 = vpop.eup %3564 }
 0xe0c   :  { %v1076_v7 = vadd.f32 1.0, %v3565_v5  ;;  %v1269_v5 = vsel %vm1268_vm13, 1, %v3708_v57 }
 0xe0e   :  { %3566 = vrcp.f32 %v1076_v7 }
 0xe18   :  { %v3567_v56 = vpop.eup %3566 }
 0xe19   :  { %v1093_v40 = vmul.f32 %v3567_v56, %v1091_v8 }
 0xe1b   :  { %1095 = vrot.lane.b32.xlu1 %v1093_v40, %s3709_s7 }
 0xe71   :  { %v1053_v13 = vpop.permute.xlu0 %1052 }
 0xe72   :  { %v1055_v14 = vadd.f32 %v1053_v13, %v3960_v49 }
 0xe74   :  { %3568 = vtanh.f32 %v1055_v14 }
 0xe7e   :  { %v3569_v60 = vpop.eup %3568 }
 0xe7f   :  { %1059 = vrot.lane.b32.xlu1 %v3569_v60, %s3710_s1 }
 0xe82   :  { %v1112_v24 = vpop.permute.xlu0 %1111 }
 0xe83   :  { %1064 = vrot.lane.b32.xlu1 %v953_v42, %s3711_s9  ;;  %vm1113_vm12 = vcmp.eq.s32.totalorder %v1112_v24, 1 }
 0xe86   :  { %v1081_v9 = vpop.permute.xlu0 %1080 }
 0xe87   :  { %v1083_v12 = vadd.f32 %v1081_v9, %v3967_v54 }
 0xe89   :  { %v2963_v32 = vmul.f32 -1.442695, %v1083_v12 }
 0xe8d   :  { %v1096_v17 = vpop.permute.xlu1 %1095 }
 0xe8e   :  { %v1098_v18 = vadd.f32 %v1096_v17, %v3967_v54 }
 0xe90   :  { %3570 = vtanh.f32 %v1098_v18 }
 0xe91   :  { %3572 = vpow2.f32 %v2963_v32 }
 0xe9a   :  { %v3571_v19 = vpop.eup %3570 }
 0xe9b   :  { %1102 = vrot.lane.b32.xlu1 %v3571_v19, %s3710_s1  ;;  %v3573_v10 = vpop.eup %3572 }
 0xe9c   :  { %v1087_v35 = vadd.f32 1.0, %v3573_v10 }
 0xe9e   :  { %3574 = vrcp.f32 %v1087_v35 }
 0xea8   :  { %v3575_v36 = vpop.eup %3574 }
 0xea9   :  { %v1100_v39 = vsub.f32 1.0, %v3575_v36  ;;  %v1106_v11 = vmul.f32 %v3575_v36, %v4138_v43 }
 0xef1   :  { %v1060_v20 = vpop.permute.xlu1 %1059 }
 0xef2   :  { %v1062_v25 = vmul.f32 %v1060_v20, %v1057_v21 }
 0xef5   :  { %v1065_v22 = vpop.permute.xlu1 %1064 }
 0xef6   :  { %v1067_v28 = vmul.f32 %v3563_v55, %v1065_v22 }
 0xef8   :  { %v1068_v30 = vadd.f32 %v1067_v28, %v1062_v25 }
 0xefa   :  { %v4169_v31 = vsel %vm1113_vm12, %v1068_v30, %v1065_v22 }
 0xefb   :  { %1117 = vrot.lane.b32.xlu0 %v4169_v31, %s3710_s1  ;;  %v1221_v30 = vrot.slane %v4169_v31, 6 }
 0xf0d   :  { %v1103_v38 = vpop.permute.xlu1 %1102 }
 0xf0e   :  { %v1105_v41 = vmul.f32 %v1103_v38, %v1100_v39 }
 0xf10   :  { %v1107_v42 = vadd.f32 %v1106_v11, %v1105_v41 }
 0xf12   :  { %v4177_v44 = vsel %vm1113_vm12, %v1107_v42, %v4138_v43 }
 0xf13   :  { %v1264_v21 = vrot.slane %v4177_v44, 6 }
 0xf6d   :  { %v4179_v26 = vpop.permute.xlu0 %1117 }
 0xf6e   :  { %v1120_v29 = vsel %vm442_vm3, %v4179_v26, %v4177_v44 }
 0xf6f   :  { %2964 = vmatmul.mubr.msk.f32.vlgmr.msra.gmra.mrb[6].mxu1 %vm290_vm4, %v1120_v29 }
 0xf70   :  { %3378 = vmatpush1.bf16.msra.mxu1 %v3861_v15  ;;  %1535 = vmatprep.mubr.f32.mxu1 %v3707_v3 }
 0xf71   :  { %3380 = vmatprep.subr.bf16.mxu1 %v3864_v16 }
 0xf74   :  { %3382 = vmatpush1.bf16.msra.mxu1 %v3886_v23 }
 0xf75   :  { %3384 = vmatprep.subr.bf16.mxu1 %v3896_v27 }
 0xf78   :  { %3386 = vmatpush1.bf16.msra.mxu1 %v3916_v33 }
 0xf79   :  { %3388 = vmatprep.subr.bf16.mxu1 %v3920_v34 }
 0xf7c   :  { %3390 = vmatpush1.bf16.msra.mxu1 %v3933_v37 }
0x1042   :  { %v1190_v43 = vpop.f32.mrb[6].mxu1 }
0x1043   :  { %v1191_v45 = vadd.f32 %v1190_v43, %v3974_v58  ;;  %v1192_v47 = vpop.f32.mrb[7].mxu1 }
0x1044   :  { %v1193_v15 = vadd.f32 %v1192_v47, %v3976_v59 }
0x1045   :  { %v1196_v48 = vrot.slane %v1191_v45, 6 }
0x1046   :  { %v1236_v50 = vrot.slane %v1193_v15, 6 }
0x1047   :  { %1225 = vrot.lane.b32.xlu1 %v1196_v48, %s3711_s9  ;;  %v1198_v16 = vadd.f32 %v1196_v48, %v3960_v49 }
0x1048   :  { %1247 = vrot.lane.b32.xlu0 %v1236_v50, %s3710_s1 }
0x1049   :  { %v2965_v23 = vmul.f32 -1.442695, %v1198_v16 }
0x104b   :  { %1205 = vrot.lane.b32.xlu1 %v1196_v48, %s3709_s7  ;;  %3576 = vpow2.f32 %v2965_v23 }
0x104f   :  { %1237 = vrot.lane.b32.xlu1 %v1236_v50, %s3711_s9 }
0x1055   :  { %v3577_v37 = vpop.eup %3576 }
0x1056   :  { %v1202_v55 = vadd.f32 1.0, %v3577_v37 }
0x10b9   :  { %v1226_v27 = vpop.permute.xlu1 %1225 }
0x10ba   :  { %v1228_v33 = vadd.f32 %v1226_v27, %v3967_v54  ;;  %v1248_v62 = vpop.permute.xlu0 %1247 }
0x10bc   :  { %v2966_v34 = vmul.f32 -1.442695, %v1228_v33 }
0x10bd   :  { %v1206_v1 = vpop.permute.xlu1 %1205 }
0x10be   :  { %3578 = vpow2.f32 %v2966_v34 }
0x10c1   :  { %v1238_v6 = vpop.permute.xlu1 %1237 }
0x10c2   :  { %v1240_v60 = vadd.f32 %v1238_v6, %v3967_v54 }
0x10c4   :  { %v2967_v17 = vmul.f32 -1.442695, %v1240_v60 }
0x10c8   :  { %v3579_v52 = vpop.eup %3578 }
0x10c9   :  { %v1232_v53 = vadd.f32 1.0, %v3579_v52 }
0x10cb   :  { %3580 = vrcp.f32 %v1232_v53 }
0x10cc   :  { %3582 = vrcp.f32 %v1202_v55 }
0x10d5   :  { %v3581_v61 = vpop.eup %3580 }
0x10d6   :  { %v1250_v63 = vmul.f32 %v3581_v61, %v1248_v62  ;;  %v3583_v2 = vpop.eup %3582 }
0x10d7   :  { %v1208_v4 = vmul.f32 %v3583_v2, %v1206_v1  ;;  %v1215_v12 = vsub.f32 1.0, %v3583_v2  ;;  %v1223_v35 = vmul.f32 %v3583_v2, %v1221_v30 }
0x10d8   :  { %1252 = vrot.lane.b32.xlu0 %v1250_v63, %s3709_s7 }
0x10dc   :  { %1210 = vrot.lane.b32.xlu0 %v1208_v4, %s3709_s7 }
0x10e0   :  { %1271 = vperm.xlu0 %3495, %v1269_v5  }
0x114a   :  { %v1253_v7 = vpop.permute.xlu0 %1252 }
0x114b   :  { %v1255_v56 = vadd.f32 %v1253_v7, %v3967_v54 }
0x114d   :  { %3584 = vtanh.f32 %v1255_v56 }
0x114e   :  { %v1211_v8 = vpop.permute.xlu0 %1210 }
0x114f   :  { %v1213_v40 = vadd.f32 %v1211_v8, %v3960_v49 }
0x1151   :  { %3586 = vtanh.f32 %v1213_v40 }
0x1152   :  { %3588 = vpow2.f32 %v2967_v17 }
0x1157   :  { %v3585_v13 = vpop.eup %3584 }
0x1158   :  { %1259 = vrot.lane.b32.xlu1 %v3585_v13, %s3710_s1 }
0x115b   :  { %v3587_v14 = vpop.eup %3586 }
0x115c   :  { %1217 = vrot.lane.b32.xlu1 %v3587_v14, %s3710_s1  ;;  %v3589_v18 = vpop.eup %3588  ;;  %v4243_v14 = vld [vmem:[%s4617_s2] sm:$0x3] }
0x115d   :  { %v1244_v19 = vadd.f32 1.0, %v3589_v18  ;;  %vm1445_vm15 = vcmp.gt.s32.totalorder %v4243_v14, 6  ;;  %vm1619_vm2 = vcmp.gt.s32.totalorder %v4243_v14, 7 }
0x115e   :  { %v1446_v60 = vsel %vm1445_vm15, 1, %v3708_v57 }
0x115f   :  { %3590 = vrcp.f32 %v1244_v19  ;;  %v1272_v41 = vpop.permute.xlu0 %1271 }
0x1160   :  { %1285 = vrot.lane.b32.xlu1 %v4177_v44, %s3710_s1  ;;  %vm1273_vm14 = vcmp.eq.s32.totalorder %v1272_v41, 1 }
0x1169   :  { %v3591_v20 = vpop.eup %3590 }
0x116a   :  { %v1257_v22 = vsub.f32 1.0, %v3591_v20  ;;  %v1266_v25 = vmul.f32 %v3591_v20, %v1264_v21 }
0x11ca   :  { %v1260_v24 = vpop.permute.xlu1 %1259 }
0x11cb   :  { %v1262_v28 = vmul.f32 %v1260_v24, %v1257_v22 }
0x11cd   :  { %v1267_v9 = vadd.f32 %v1266_v25, %v1262_v28 }
0x11ce   :  { %v1218_v32 = vpop.permute.xlu1 %1217 }
0x11cf   :  { %v1281_v10 = vrot.slane %v1267_v9, 2  ;;  %v1220_v36 = vmul.f32 %v1218_v32, %v1215_v12 }
0x11d1   :  { %v1224_v38 = vadd.f32 %v1223_v35, %v1220_v36  ;;  %1282 = vrot.lane.b32.xlu0 %v1281_v10, %s3710_s1 }
0x11d2   :  { %v1286_v11 = vpop.permute.xlu1 %1285 }
0x11d3   :  { %v1275_v39 = vrot.slane %v1224_v38, 2 }
0x11d5   :  { %1276 = vrot.lane.b32.xlu0 %v1275_v39, %s3710_s1 }
0x1243   :  { %v1283_v42 = vpop.permute.xlu0 %1282 }
0x1244   :  { %v4216_v44 = vsel %vm1273_vm14, %v1283_v42, %v1286_v11 }
0x1245   :  { %1290 = vrot.lane.b32.xlu1 %v4216_v44, %s3711_s9  ;;  %v1439_v7 = vrot.slane %v4216_v44, 4 }
0x1247   :  { %v1277_v31 = vpop.permute.xlu0 %1276 }
0x1248   :  { %v4221_v29 = vsel %vm1273_vm14, %v1277_v31, %v4179_v26 }
0x1249   :  { %v1395_v18 = vrot.slane %v4221_v29, 4 }
0x12b7   :  { %v1291_v43 = vpop.permute.xlu1 %1290 }
0x12b8   :  { %v1293_v45 = vsel %vm442_vm3, %v4221_v29, %v1291_v43 }
0x12b9   :  { %2968 = vmatmul.mubr.msk.f32.vlgmr.msra.gmra.mrb[10].mxu0 %vm290_vm4, %v1293_v45 }
0x12ba   :  { %3111 = vmatprep.mubr.msk.f32.mxu0 %vm3713_vm5, %v3707_v3 }
0x138c   :  { %v1363_v47 = vpop.f32.mrb[10].mxu0 }
0x138d   :  { %v1364_v15 = vadd.f32 %v1363_v47, %v3974_v58  ;;  %v1365_v48 = vpop.f32.mrb[11].mxu0 }
0x138e   :  { %v1366_v50 = vadd.f32 %v1365_v48, %v3976_v59 }
0x138f   :  { %v1369_v16 = vrot.slane %v1364_v15, 4 }
0x1390   :  { %v1412_v23 = vrot.slane %v1366_v50, 4 }
0x1391   :  { %1401 = vrot.lane.b32.xlu0 %v1369_v16, %s3711_s9  ;;  %v1371_v26 = vadd.f32 %v1369_v16, %v3960_v49 }
0x1392   :  { %1423 = vrot.lane.b32.xlu1 %v1412_v23, %s3710_s1 }
0x1393   :  { %v2969_v27 = vmul.f32 -1.442695, %v1371_v26 }
0x1395   :  { %1378 = vrot.lane.b32.xlu0 %v1369_v16, %s3709_s7  ;;  %3592 = vpow2.f32 %v2969_v27 }
0x1399   :  { %1413 = vrot.lane.b32.xlu0 %v1412_v23, %s3711_s9 }
0x139f   :  { %v3593_v52 = vpop.eup %3592 }
0x13a0   :  { %v1375_v61 = vadd.f32 1.0, %v3593_v52 }
0x1403   :  { %v1402_v33 = vpop.permute.xlu0 %1401 }
0x1404   :  { %v1404_v34 = vadd.f32 %v1402_v33, %v3967_v54  ;;  %v1424_v63 = vpop.permute.xlu1 %1423 }
0x1406   :  { %v2970_v37 = vmul.f32 -1.442695, %v1404_v34 }
0x1407   :  { %v1379_v2 = vpop.permute.xlu0 %1378 }
0x1408   :  { %3594 = vpow2.f32 %v2970_v37 }
0x140b   :  { %v1414_v19 = vpop.permute.xlu0 %1413 }
0x140c   :  { %v1416_v20 = vadd.f32 %v1414_v19, %v3967_v54 }
0x140e   :  { %v2971_v21 = vmul.f32 -1.442695, %v1416_v20 }
0x1412   :  { %v3595_v53 = vpop.eup %3594 }
0x1413   :  { %v1408_v55 = vadd.f32 1.0, %v3595_v53 }
0x1415   :  { %3596 = vrcp.f32 %v1408_v55 }
0x1416   :  { %3598 = vrcp.f32 %v1375_v61 }
0x141f   :  { %v3597_v62 = vpop.eup %3596 }
0x1420   :  { %v1426_v1 = vmul.f32 %v3597_v62, %v1424_v63  ;;  %v3599_v4 = vpop.eup %3598 }
0x1421   :  { %v1381_v5 = vmul.f32 %v3599_v4, %v1379_v2  ;;  %v1388_v39 = vsub.f32 1.0, %v3599_v4 }
0x1422   :  { %1428 = vrot.lane.b32.xlu1 %v1426_v1, %s3709_s7 }
0x1426   :  { %1383 = vrot.lane.b32.xlu1 %v1381_v5, %s3709_s7 }
0x142a   :  { %1440 = vrot.lane.b32.xlu1 %v1439_v7, %s3711_s9 }
0x1494   :  { %v1429_v56 = vpop.permute.xlu1 %1428 }
0x1495   :  { %v1431_v8 = vadd.f32 %v1429_v56, %v3967_v54 }
0x1497   :  { %3600 = vtanh.f32 %v1431_v8  ;;  %v1620_v8 = vsel %vm1619_vm2, 1, %v3708_v57 }
0x1498   :  { %v1384_v40 = vpop.permute.xlu1 %1383 }
0x1499   :  { %v1386_v13 = vadd.f32 %v1384_v40, %v3960_v49 }
0x149b   :  { %3602 = vtanh.f32 %v1386_v13 }
0x149c   :  { %3604 = vpow2.f32 %v2971_v21  ;;  %v1441_v28 = vpop.permute.xlu1 %1440 }
0x14a1   :  { %v3601_v6 = vpop.eup %3600 }
0x14a2   :  { %1435 = vrot.lane.b32.xlu0 %v3601_v6, %s3710_s1 }
0x14a5   :  { %v3603_v17 = vpop.eup %3602 }
0x14a6   :  { %1448 = vperm.xlu0 %3495, %v1446_v60   ;;  %1390 = vrot.lane.b32.xlu1 %v3603_v17, %s3710_s1  ;;  %v3605_v22 = vpop.eup %3604 }
0x14a7   :  { %v1420_v24 = vadd.f32 1.0, %v3605_v22 }
0x14a9   :  { %3606 = vrcp.f32 %v1420_v24 }
0x14aa   :  { %1396 = vrot.lane.b32.xlu0 %v1395_v18, %s3711_s9 }
0x14b3   :  { %v3607_v25 = vpop.eup %3606 }
0x14b4   :  { %v1433_v30 = vsub.f32 1.0, %v3607_v25  ;;  %v1443_v12 = vmul.f32 %v3607_v25, %v1441_v28 }
0x1514   :  { %v1436_v9 = vpop.permute.xlu0 %1435 }
0x1515   :  { %v1438_v32 = vmul.f32 %v1436_v9, %v1433_v30 }
0x1517   :  { %v1444_v10 = vadd.f32 %v1443_v12, %v1438_v32 }
0x1518   :  { %v1391_v38 = vpop.permute.xlu1 %1390 }
0x1519   :  { %v1458_v35 = vrot.slane %v1444_v10, 4  ;;  %v1393_v11 = vmul.f32 %v1391_v38, %v1388_v39  ;;  %v1644_v38 = vld [vmem:[%s4618_s12 + $0x10] sm:$0xff] }
0x151b   :  { %1459 = vrot.lane.b32.xlu1 %v1458_v35, %s3710_s1  ;;  %v3712_v35 = vmov 0.0|0.0  }
0x151c   :  { %3391 = vmatprep.subr.bf16.mxu0 %v3712_v35  ;;  %3403 = vmatprep.subr.bf16.mxu1 %v3712_v35 }
0x1525   :  { %v1449_v36 = vpop.permute.xlu0 %1448 }
0x1526   :  { %vm1450_vm1 = vcmp.eq.s32.totalorder %v1449_v36, 1  ;;  %v1642_v36 = vld [vmem:[%s4618_s12] sm:$0xff] }
0x1529   :  { %v1397_v41 = vpop.permute.xlu0 %1396 }
0x152a   :  { %v1399_v42 = vmul.f32 %v3599_v4, %v1397_v41  ;;  %v1645_v41 = vld [vmem:[%s4618_s12 + $0x18] sm:$0xff] }
0x152c   :  { %v1400_v31 = vadd.f32 %v1399_v42, %v1393_v11  ;;  %v3395_v42 = vpack.c.bf16 %v1645_v41, %v1644_v38  ;;  %v1834_v38 = vld [vmem:[%s4622_s16] sm:$0xff] }
0x152e   :  { %v1452_v43 = vrot.slane %v1400_v31, 4 }
0x1530   :  { %1453 = vrot.lane.b32.xlu0 %v1452_v43, %s3710_s1  ;;  %v1646_v43 = vld [vmem:[%s4618_s12 + $0x20] sm:$0xff] }
0x158d   :  { %v1460_v45 = vpop.permute.xlu1 %1459 }
0x158e   :  { %v4255_v47 = vsel %vm1450_vm1, %v1460_v45, %v4216_v44  ;;  %v1647_v45 = vld [vmem:[%s4618_s12 + $0x28] sm:$0xff] }
0x158f   :  { %1464 = vrot.lane.b32.xlu1 %v4255_v47, %s3711_s9  ;;  %v1613_v40 = vrot.slane %v4255_v47, 2 }
0x15a2   :  { %v1454_v15 = vpop.permute.xlu0 %1453 }
0x15a3   :  { %v4260_v48 = vsel %vm1450_vm1, %v1454_v15, %v4221_v29 }
0x15a4   :  { %v1569_v56 = vrot.slane %v4260_v48, 2 }
0x1601   :  { %v1465_v50 = vpop.permute.xlu1 %1464 }
0x1602   :  { %v1467_v16 = vsel %vm442_vm3, %v4260_v48, %v1465_v50 }
0x1603   :  { %2972 = vmatmul.mubr.msk.f32.vlgmr.msra.gmra.mrb[8].mxu1 %vm290_vm4, %v1467_v16 }
0x1604   :  { %3146 = vmatprep.mubr.msk.f32.mxu1 %vm3713_vm5, %v3707_v3 }
0x16d6   :  { %v1537_v23 = vpop.f32.mrb[8].mxu1 }
0x16d7   :  { %v1538_v26 = vadd.f32 %v1537_v23, %v3974_v58  ;;  %v1539_v27 = vpop.f32.mrb[9].mxu1 }
0x16d8   :  { %v1540_v44 = vadd.f32 %v1539_v27, %v3976_v59 }
0x16d9   :  { %v1543_v33 = vrot.slane %v1538_v26, 2  ;;  %v3398_v26 = vpack.c.bf16 %v1647_v45, %v1646_v43 }
0x16da   :  { %v1586_v34 = vrot.slane %v1540_v44, 2  ;;  %v1649_v44 = vld [vmem:[%s4618_s12 + $0x38] sm:$0xff] }
0x16db   :  { %1575 = vrot.lane.b32.xlu1 %v1543_v33, %s3711_s9  ;;  %1552 = vrot.lane.b32.xlu0 %v1543_v33, %s3709_s7  ;;  %v1545_v29 = vadd.f32 %v1543_v33, %v3960_v49  ;;  %v1648_v33 = vld [vmem:[%s4618_s12 + $0x30] sm:$0xff] }
0x16dd   :  { %v2973_v37 = vmul.f32 -1.442695, %v1545_v29  ;;  %v3401_v29 = vpack.c.bf16 %v1649_v44, %v1648_v33  ;;  %v2979_v44 = vld [vmem:[%s4625_s17] ss:$0 sm:$0xff] }
0x16df   :  { %1597 = vrot.lane.b32.xlu0 %v1586_v34, %s3710_s1  ;;  %3608 = vpow2.f32 %v2973_v37  ;;  %v1731_v37 = vld [vmem:[%s4619_s14] sm:$0xff] }
0x16e9   :  { %v3609_v52 = vpop.eup %3608 }
0x16ea   :  { %v1549_v53 = vadd.f32 1.0, %v3609_v52  ;;  %v1732_v52 = vld [vmem:[%s4619_s14 + $0x8] sm:$0xff] }
0x16ec   :  { %3610 = vrcp.f32 %v1549_v53  ;;  %v1733_v53 = vld [vmem:[%s4619_s14 + $0x10] sm:$0xff] }
0x16f6   :  { %v3611_v55 = vpop.eup %3610 }
0x16f7   :  { %v1562_v19 = vsub.f32 1.0, %v3611_v55 }
0x174d   :  { %v1576_v58 = vpop.permute.xlu1 %1575  ;;  %v1553_v61 = vpop.permute.xlu0 %1552 }
0x174e   :  { %v1578_v62 = vadd.f32 %v1576_v58, %v3967_v54  ;;  %v1555_v59 = vmul.f32 %v3611_v55, %v1553_v61  ;;  %v1734_v58 = vld [vmem:[%s4619_s14 + $0x18] sm:$0xff] }
0x174f   :  { %v3407_v61 = vpack.c.bf16 %v1734_v58, %v1733_v53 }
0x1750   :  { %v2974_v63 = vmul.f32 -1.442695, %v1578_v62  ;;  %1557 = vrot.lane.b32.xlu1 %v1555_v59, %s3709_s7  ;;  %v1735_v62 = vld [vmem:[%s4619_s14 + $0x20] sm:$0xff]  ;;  %v1736_v59 = vld [vmem:[%s4619_s14 + $0x28] sm:$0xff] }
0x1751   :  { %v1598_v5 = vpop.permute.xlu0 %1597 }
0x1752   :  { %3612 = vpow2.f32 %v2974_v63  ;;  %v3410_v63 = vpack.c.bf16 %v1736_v59, %v1735_v62 }
0x175c   :  { %v3613_v1 = vpop.eup %3612 }
0x175d   :  { %v1582_v2 = vadd.f32 1.0, %v3613_v1  ;;  %v1737_v1 = vld [vmem:[%s4619_s14 + $0x30] sm:$0xff] }
0x175f   :  { %3614 = vrcp.f32 %v1582_v2  ;;  %v1738_v2 = vld [vmem:[%s4619_s14 + $0x38] sm:$0xff] }
0x1769   :  { %v3615_v4 = vpop.eup %3614 }
0x176a   :  { %v1600_v7 = vmul.f32 %v3615_v4, %v1598_v5 }
0x176c   :  { %1602 = vrot.lane.b32.xlu0 %v1600_v7, %s3709_s7  ;;  %v3413_v7 = vpack.c.bf16 %v1738_v2, %v1737_v1 }
0x1770   :  { %1570 = vrot.lane.b32.xlu0 %v1569_v56, %s3711_s9  ;;  %v1739_v56 = vld [vmem:[%s4619_s14 + $0x40] sm:$0xff] }
0x1774   :  { %1622 = vperm.xlu0 %3495, %v1620_v8   ;;  %v1740_v8 = vld [vmem:[%s4619_s14 + $0x48] sm:$0xff] }
0x1778   :  { %1614 = vrot.lane.b32.xlu0 %v1613_v40, %s3711_s9  ;;  %v3416_v40 = vpack.c.bf16 %v1740_v8, %v1739_v56 }
0x17c2   :  { %v1558_v13 = vpop.permute.xlu1 %1557 }
0x17c3   :  { %v1560_v6 = vadd.f32 %v1558_v13, %v3960_v49  ;;  %v1742_v13 = vld [vmem:[%s4619_s14 + $0x58] sm:$0xff] }
0x17c5   :  { %3616 = vtanh.f32 %v1560_v6 }
0x17cf   :  { %v3617_v60 = vpop.eup %3616 }
0x17d0   :  { %1564 = vrot.lane.b32.xlu1 %v3617_v60, %s3710_s1  ;;  %v1743_v60 = vld [vmem:[%s4619_s14 + $0x60] sm:$0xff] }
0x17d4   :  { %1587 = vrot.lane.b32.xlu1 %v1586_v34, %s3711_s9 }
0x17de   :  { %v1603_v17 = vpop.permute.xlu0 %1602 }
0x17df   :  { %v1605_v14 = vadd.f32 %v1603_v17, %v3967_v54  ;;  %v1744_v17 = vld [vmem:[%s4619_s14 + $0x68] sm:$0xff] }
0x17e1   :  { %3618 = vtanh.f32 %v1605_v14  ;;  %v3422_v14 = vpack.c.bf16 %v1744_v17, %v1743_v60 }
0x17e2   :  { %v1571_v57 = vpop.permute.xlu0 %1570 }
0x17e3   :  { %v1573_v21 = vmul.f32 %v3611_v55, %v1571_v57  ;;  %v3404_v55 = vpack.c.bf16 %v1732_v52, %v1731_v37  ;;  %v4457_v52 = vld [vmem:[%s4626_s11] ss:$0 sm:$0xff] }
0x17e5   :  { %3405 = vmatpush3.bf16.msra.mxu1 %v3404_v55 }
0x17e6   :  { %3406 = vmatprep.subr.bf16.mxu1 %v3712_v35 }
0x17e9   :  { %3408 = vmatpush3.bf16.msra.mxu1 %v3407_v61 }
0x17ea   :  { %3409 = vmatprep.subr.bf16.mxu1 %v3712_v35 }
0x17eb   :  { %v3619_v18 = vpop.eup %3618 }
0x17ec   :  { %1609 = vrot.lane.b32.xlu1 %v3619_v18, %s3710_s1 }
0x17ed   :  { %3411 = vmatpush3.bf16.msra.mxu1 %v3410_v63 }
0x17ee   :  { %3412 = vmatprep.subr.bf16.mxu1 %v3712_v35 }
0x17f1   :  { %3414 = vmatpush3.bf16.msra.mxu1 %v3413_v7 }
0x17f2   :  { %3415 = vmatprep.subr.bf16.mxu1 %v3712_v35 }
0x17f3   :  { %v4287_v10 = vpop.permute.xlu0 %1622 }
0x17f4   :  { %vm1624_vm6 = vcmp.eq.s32.totalorder %v4287_v10, 1 }
0x17f5   :  { %3417 = vmatpush3.bf16.msra.mxu1 %v3416_v40 }
0x17f6   :  { %3418 = vmatprep.subr.bf16.mxu1 %v3712_v35 }
0x17f7   :  { %v1615_v15 = vpop.permute.xlu0 %1614 }
0x1842   :  { %v1565_v20 = vpop.permute.xlu1 %1564 }
0x1843   :  { %v1567_v22 = vmul.f32 %v1565_v20, %v1562_v19 }
0x1845   :  { %v1574_v24 = vadd.f32 %v1573_v21, %v1567_v22  ;;  %v1745_v21 = vld [vmem:[%s4619_s14 + $0x70] sm:$0xff]  ;;  %v1746_v22 = vld [vmem:[%s4619_s14 + $0x78] sm:$0xff] }
0x1846   :  { %v1588_v25 = vpop.permute.xlu1 %1587 }
0x1847   :  { %v1626_v28 = vrot.slane %v1574_v24, 6  ;;  %v1590_v30 = vadd.f32 %v1588_v25, %v3967_v54  ;;  %v1643_v54 = vld [vmem:[%s4618_s12 + $0x8] sm:$0xff]  ;;  %v3425_v24 = vpack.c.bf16 %v1746_v22, %v1745_v21 }
0x1848   :  { %v3392_v39 = vpack.c.bf16 %v1643_v54, %v1642_v36 }
0x1849   :  { %v2975_v9 = vmul.f32 -1.442695, %v1590_v30  ;;  %1627 = vrot.lane.b32.xlu1 %v1626_v28, %s3710_s1 }
0x184a   :  { %3393 = vmatpush3.bf16.msra.mxu0 %v3392_v39  ;;  %v1835_v39 = vld [vmem:[%s4622_s16 + $0x8] sm:$0xff]  ;;  %s3714_s16 = smov 112  }
0x184b   :  { %3620 = vpow2.f32 %v2975_v9  ;;  %3394 = vmatprep.subr.bf16.mxu0 %v3712_v35  ;;  %v3428_v41 = vpack.c.bf16 %v1835_v39, %v1834_v38 }
0x184e   :  { %3396 = vmatpush3.bf16.msra.mxu0 %v3395_v42  ;;  %v1916_v42 = vld [vmem:[%s4623_s10] sm:$0xff] }
0x184f   :  { %3397 = vmatprep.subr.bf16.mxu0 %v3712_v35 }
0x1852   :  { %3399 = vmatpush3.bf16.msra.mxu0 %v3398_v26  ;;  %v1918_v26 = vld [vmem:[%s4623_s10 + $0x10] sm:$0xff] }
0x1853   :  { %3400 = vmatprep.subr.bf16.mxu0 %v3712_v35 }
0x1855   :  { %v3621_v12 = vpop.eup %3620 }
0x1856   :  { %v1594_v32 = vadd.f32 1.0, %v3621_v12  ;;  %3402 = vmatpush3.bf16.msra.mxu0 %v3401_v29  ;;  %v2978_v12 = vld [vmem:[%s4621_s15] ss:$0 sm:$0xff] }
0x1857   :  { %3427 = vmatprep.subr.bf16.mxu0 %v3712_v35 }
0x1858   :  { %3622 = vrcp.f32 %v1594_v32 }
0x185e   :  { %v1610_v50 = vpop.permute.xlu1 %1609 }
0x1862   :  { %v3623_v11 = vpop.eup %3622 }
0x1863   :  { %v1607_v31 = vsub.f32 1.0, %v3623_v11  ;;  %v1617_v23 = vmul.f32 %v3623_v11, %v1615_v15  ;;  %v1824_v15 = vld [vmem:[%s4624_s3] sm:$0x3] }
0x1865   :  { %v1612_v16 = vmul.f32 %v1610_v50, %v1607_v31  ;;  %v1917_v31 = vld [vmem:[%s4623_s10 + $0x8] sm:$0xff] }
0x1866   :  { %v4416_v43 = vpack.c.bf16 %v1917_v31, %v1916_v42 }
0x1867   :  { %v1618_v27 = vadd.f32 %v1617_v23, %v1612_v16 }
0x1869   :  { %v1632_v34 = vrot.slane %v1618_v27, 6  ;;  %v1919_v27 = vld [vmem:[%s4623_s10 + $0x18] sm:$0xff] }
0x186a   :  { %v4438_v33 = vpack.c.bf16 %v1919_v27, %v1918_v26 }
0x186b   :  { %1633 = vrot.lane.b32.xlu0 %v1632_v34, %s3710_s1 }
0x18bb   :  { %v1628_v4 = vpop.permute.xlu1 %1627 }
0x18bc   :  { %v1630_v5 = vsel %vm1624_vm6, %v1628_v4, %v4260_v48  ;;  %v1741_v48 = vld [vmem:[%s4619_s14 + $0x50] sm:$0xff] }
0x18bd   :  { %1638 = vrot.lane.b32.xlu1 %v1630_v5, %s3711_s9  ;;  %v3419_v6 = vpack.c.bf16 %v1742_v13, %v1741_v48 }
0x18bf   :  { %3420 = vmatpush3.bf16.msra.mxu1 %v3419_v6 }
0x18c0   :  { %3421 = vmatprep.subr.bf16.mxu1 %v3712_v35 }
0x18c3   :  { %3423 = vmatpush3.bf16.msra.mxu1 %v3422_v14 }
0x18c4   :  { %3424 = vmatprep.subr.bf16.mxu1 %v3712_v35 }
0x18c7   :  { %3426 = vmatpush3.bf16.msra.mxu1 %v3425_v24 }
0x18c8   :  { %3442 = vmatprep.subr.bf16.mxu1 %v3712_v35 }
0x18dd   :  { %v1634_v18 = vpop.permute.xlu0 %1633 }
0x18de   :  { %v1636_v57 = vsel %vm1624_vm6, %v1634_v18, %v4255_v47  ;;  %v2976_v47 = vld [vmem:[%s4620_s13] ss:$0 sm:$0xff] }
0x192f   :  { %v1639_v19 = vpop.permute.xlu1 %1638 }
0x1930   :  { %v1641_v20 = vsel %vm442_vm3, %v1636_v57, %v1639_v19 }
0x1931   :  { %3112 = vmatmul.mubr.msk.f32.vlgmr.msra.gmra.mrb[12].mxu0 %vm290_vm4, %v1641_v20 }
0x1932   :  { %3153 = vmatprep.mubr.msk.f32.mxu0 %vm3713_vm5, %v3707_v3  ;;  %3429 = vmatpush3.bf16.msra.mxu0 %v3428_v41 }
0x1933   :  { %3430 = vmatprep.subr.bf16.mxu0 %v3712_v35 }
0x1a04   :  { %v1726_v25 = vpop.f32.mrb[12].mxu0 }
0x1a05   :  { %v1727_v28 = vadd.f32 %v2976_v47, %v1726_v25  ;;  %v3113_v30 = vpop.f32.mrb[13].mxu0 }
0x1a07   :  { %v1730_v9 = vmax.f32 %v1727_v28, 0.0 }
0x1a09   :  { %3147 = vmatmul.mubr.f32.vlgmr.msra.gmra.mrb[10].mxu1 %v1730_v9 }
0x1a0a   :  { %3186 = vmatprep.mubr.msk.f32.mxu1 %vm3713_vm5, %v3707_v3  ;;  %3444 = vmatpush3.bf16.msra.mxu1 %v4416_v43 }
0x1a0b   :  { %3445 = vmatprep.subr.bf16.mxu1 %v3712_v35 }
0x1a0e   :  { %3447 = vmatpush3.bf16.msra.mxu1 %v4438_v33 }
0x1a0f   :  { %3454 = vmatprep.subr.bf16.mxu1 %v3712_v35 }
0x1adc   :  { %v1820_v32 = vpop.f32.mrb[10].mxu1 }
0x1add   :  { %v4400_v10 = vadd.f32 %v2978_v12, %v1820_v32  ;;  %v3148_v36 = vpop.f32.mrb[11].mxu1 }
0x1adf   :  { %v1825_v54 = vmul.f32 0.5, %v4400_v10 }
0x1ae1   :  { %v1826_v11 = vmul.f32 1.442695, %v1825_v54 }
0x1ae3   :  { %3624 = vpow2.f32 %v1826_v11 }
0x1aed   :  { %v3625_v45 = vpop.eup %3624 }
0x1aee   :  { %1829 = vrot.lane.b32.xlu0 %v3625_v45, %s3714_s16 }
0x1b60   :  { %v1830_v50 = vpop.permute.xlu0 %1829 }
0x1b61   :  { %v1832_v16 = vmul.f32 %v1830_v50, %v1824_v15 }
0x1b63   :  { %v4424_v23 = vadd.f32 %v1832_v16, %v4400_v10 }
0x1b65   :  { %3154 = vmatmul.mubr.msk.f32.vlgmr.msra.gmra.mrb[14].mxu0 %vm87_vm0, %v4424_v23  ;;  %vm2823_vm0 = vcmask 1041408  }
0x1b66   :  { %3432 = vmatpush3.bf16.msra.mxu0 %v4416_v43  ;;  %3164 = vmatprep.mubr.msk.f32.mxu0 %vm3713_vm5, %v3707_v3 }
0x1b67   :  { %3433 = vmatprep.subr.bf16.mxu0 %v3712_v35 }
0x1b6a   :  { %3435 = vmatpush3.bf16.msra.mxu0 %v4438_v33 }
0x1b6b   :  { %3436 = vmatprep.subr.bf16.mxu0 %v3712_v35 }
0x1c38   :  { %v1912_v34 = vpop.f32.mrb[14].mxu0 }
0x1c39   :  { %v1913_v29 = vadd.f32 %v2979_v44, %v1912_v34  ;;  %v3155_v37 = vpop.f32.mrb[15].mxu0 }
0x1c3b   :  { %3165 = vmatmul.mubr.msk.f32.vlgmr.msra.gmra.mrb[16].mxu0 %vm442_vm3, %v1913_v29 }
0x1c3c   :  { %3438 = vmatpush3.bf16.msra.mxu0 %v4416_v43  ;;  %3175 = vmatprep.mubr.msk.f32.mxu0 %vm3713_vm5, %v3707_v3 }
0x1c3d   :  { %3439 = vmatprep.subr.bf16.mxu0 %v3712_v35 }
0x1c40   :  { %3441 = vmatpush3.bf16.msra.mxu0 %v4438_v33 }
0x1c41   :  { %3448 = vmatprep.subr.bf16.mxu0 %v3712_v35 }
0x1d0e   :  { %v1996_v53 = vpop.f32.mrb[16].mxu0 }
0x1d0f   :  { %v1997_v55 = vadd.f32 %v4457_v52, %v1996_v53  ;;  %v3166_v58 = vpop.f32.mrb[17].mxu0 }
0x1d11   :  { %2018 = vrot.lane.b32.xlu0 %v1997_v55, %s3711_s9  ;;  %2001 = vrot.lane.b32.xlu1 %v1997_v55, %s3710_s1 }
0x1d83   :  { %v2002_v61 = vpop.permute.xlu1 %2001  ;;  %v2019_v4 = vpop.permute.xlu0 %2018 }
0x1d84   :  { %v2004_v62 = vadd.f32 %v2002_v61, %v3983_v0  ;;  %v2011_v40 = vadd.f32 %v2002_v61, %v3958_v46 }
0x1d86   :  { %v2983_v59 = vmul.f32 -1.442695, %v2004_v62  ;;  %v2984_v48 = vmul.f32 -1.442695, %v2011_v40 }
0x1d88   :  { %3626 = vpow2.f32 %v2983_v59 }
0x1d92   :  { %v3627_v63 = vpop.eup %3626 }
0x1d93   :  { %v2008_v1 = vadd.f32 1.0, %v3627_v63 }
0x1d95   :  { %3628 = vrcp.f32 %v2008_v1 }
0x1d9f   :  { %v3629_v2 = vpop.eup %3628 }
0x1da0   :  { %v2021_v5 = vmul.f32 %v3629_v2, %v2019_v4 }
0x1da2   :  { %2023 = vrot.lane.b32.xlu1 %v2021_v5, %s3709_s7 }
0x1e14   :  { %v2024_v7 = vpop.permute.xlu1 %2023 }
0x1e15   :  { %v2026_v56 = vadd.f32 %v2024_v7, %v3958_v46 }
0x1e17   :  { %3630 = vtanh.f32 %v2026_v56 }
0x1e18   :  { %3632 = vpow2.f32 %v2984_v48 }
0x1e21   :  { %v3631_v8 = vpop.eup %3630 }
0x1e22   :  { %2030 = vrot.lane.b32.xlu0 %v3631_v8, %s3710_s1  ;;  %v3633_v13 = vpop.eup %3632 }
0x1e23   :  { %v2015_v6 = vadd.f32 1.0, %v3633_v13 }
0x1e25   :  { %3634 = vrcp.f32 %v2015_v6 }
0x1e2f   :  { %v3635_v60 = vpop.eup %3634 }
0x1e30   :  { %v2028_v17 = vsub.f32 1.0, %v3635_v60  ;;  %v2034_v18 = vmul.f32 %v3635_v60, %v1913_v29 }
0x1e94   :  { %v2031_v14 = vpop.permute.xlu0 %2030 }
0x1e95   :  { %v2033_v57 = vmul.f32 %v2031_v14, %v2028_v17 }
0x1e97   :  { %v4467_v19 = vadd.f32 %v2034_v18, %v2033_v57 }
0x1e99   :  { %3176 = vmatmul.mubr.msk.f32.vlgmr.msra.gmra.mrb[18].mxu0 %vm442_vm3, %v4467_v19  ;;  %v2144_v50 = vrot.slane %v4467_v19, 6 }
0x1e9a   :  { %3450 = vmatpush3.bf16.msra.mxu0 %v4416_v43  ;;  %3197 = vmatprep.mubr.msk.f32.mxu0 %vm3713_vm5, %v3707_v3 }
0x1e9b   :  { %3451 = vmatprep.subr.bf16.mxu0 %v3712_v35 }
0x1e9e   :  { %3453 = vmatpush3.bf16.msra.mxu0 %v4438_v33 }
0x1e9f   :  { %3460 = vmatprep.subr.bf16.mxu0 %v3712_v35 }
0x1f6c   :  { %v2105_v20 = vpop.f32.mrb[18].mxu0 }
0x1f6d   :  { %v2106_v21 = vadd.f32 %v4457_v52, %v2105_v20  ;;  %v3177_v22 = vpop.f32.mrb[19].mxu0 }
0x1f6f   :  { %v2110_v24 = vrot.slane %v2106_v21, 6 }
0x1f71   :  { %2128 = vrot.lane.b32.xlu0 %v2110_v24, %s3711_s9  ;;  %2111 = vrot.lane.b32.xlu1 %v2110_v24, %s3710_s1 }
0x1fe3   :  { %v2112_v47 = vpop.permute.xlu1 %2111  ;;  %v2129_v32 = vpop.permute.xlu0 %2128 }
0x1fe4   :  { %v2114_v25 = vadd.f32 %v2112_v47, %v3983_v0  ;;  %v2121_v41 = vadd.f32 %v2112_v47, %v3958_v46 }
0x1fe6   :  { %v2986_v28 = vmul.f32 -1.442695, %v2114_v25  ;;  %v2987_v11 = vmul.f32 -1.442695, %v2121_v41 }
0x1fe8   :  { %3636 = vpow2.f32 %v2986_v28 }
0x1ff2   :  { %v3637_v30 = vpop.eup %3636 }
0x1ff3   :  { %v2118_v9 = vadd.f32 1.0, %v3637_v30 }
0x1ff5   :  { %3638 = vrcp.f32 %v2118_v9 }
0x1fff   :  { %v3639_v12 = vpop.eup %3638 }
0x2000   :  { %v2131_v36 = vmul.f32 %v3639_v12, %v2129_v32 }
0x2002   :  { %2133 = vrot.lane.b32.xlu1 %v2131_v36, %s3709_s7 }
0x2074   :  { %v2134_v54 = vpop.permute.xlu1 %2133 }
0x2075   :  { %v2136_v38 = vadd.f32 %v2134_v54, %v3958_v46 }
0x2077   :  { %3640 = vtanh.f32 %v2136_v38 }
0x2078   :  { %3642 = vpow2.f32 %v2987_v11 }
0x2081   :  { %v3641_v39 = vpop.eup %3640 }
0x2082   :  { %2140 = vrot.lane.b32.xlu0 %v3641_v39, %s3710_s1  ;;  %v3643_v42 = vpop.eup %3642 }
0x2083   :  { %v2125_v31 = vadd.f32 1.0, %v3643_v42 }
0x2085   :  { %3644 = vrcp.f32 %v2125_v31 }
0x208f   :  { %v3645_v45 = vpop.eup %3644 }
0x2090   :  { %v2138_v15 = vsub.f32 1.0, %v3645_v45  ;;  %v2146_v26 = vmul.f32 %v3645_v45, %v2144_v50 }
0x20f4   :  { %v2141_v16 = vpop.permute.xlu0 %2140 }
0x20f5   :  { %v2143_v27 = vmul.f32 %v2141_v16, %v2138_v15 }
0x20f7   :  { %v2147_v44 = vadd.f32 %v2146_v26, %v2143_v27 }
0x20f9   :  { %v2149_v34 = vrot.slane %v2147_v44, 2  ;;  %v2257_v17 = vrot.slane %v2147_v44, 6  ;;  %v2824_v21 = vsel %vm2823_vm0, %v4467_v19, %v2147_v44 }
0x20fb   :  { %3187 = vmatmul.mubr.msk.f32.vlgmr.msra.gmra.mrb[12].mxu1 %vm442_vm3, %v2149_v34 }
0x20fc   :  { %3456 = vmatpush3.bf16.msra.mxu1 %v4416_v43  ;;  %3208 = vmatprep.mubr.msk.f32.mxu1 %vm3713_vm5, %v3707_v3 }
0x20fd   :  { %3457 = vmatprep.subr.bf16.mxu1 %v3712_v35 }
0x2100   :  { %3459 = vmatpush3.bf16.msra.mxu1 %v4438_v33 }
0x2101   :  { %3466 = vmatprep.subr.bf16.mxu1 %v3712_v35 }
0x21ce   :  { %v2218_v29 = vpop.f32.mrb[12].mxu1 }
0x21cf   :  { %v2219_v37 = vadd.f32 %v4457_v52, %v2218_v29  ;;  %v3188_v53 = vpop.f32.mrb[13].mxu1 }
0x21d1   :  { %v2223_v55 = vrot.slane %v2219_v37, 4 }
0x21d3   :  { %2241 = vrot.lane.b32.xlu0 %v2223_v55, %s3711_s9  ;;  %2224 = vrot.lane.b32.xlu1 %v2223_v55, %s3710_s1 }
0x2245   :  { %v2225_v58 = vpop.permute.xlu1 %2224  ;;  %v2242_v2 = vpop.permute.xlu0 %2241 }
0x2246   :  { %v2227_v61 = vadd.f32 %v2225_v58, %v3983_v0  ;;  %v2234_v8 = vadd.f32 %v2225_v58, %v3958_v46 }
0x2248   :  { %v2989_v62 = vmul.f32 -1.442695, %v2227_v61  ;;  %v2990_v40 = vmul.f32 -1.442695, %v2234_v8 }
0x224a   :  { %3646 = vpow2.f32 %v2989_v62 }
0x2254   :  { %v3647_v59 = vpop.eup %3646 }
0x2255   :  { %v2231_v63 = vadd.f32 1.0, %v3647_v59 }
0x2257   :  { %3648 = vrcp.f32 %v2231_v63 }
0x2261   :  { %v3649_v1 = vpop.eup %3648 }
0x2262   :  { %v2244_v4 = vmul.f32 %v3649_v1, %v2242_v2 }
0x2264   :  { %2246 = vrot.lane.b32.xlu1 %v2244_v4, %s3709_s7 }
0x22d6   :  { %v2247_v5 = vpop.permute.xlu1 %2246 }
0x22d7   :  { %v2249_v7 = vadd.f32 %v2247_v5, %v3958_v46 }
0x22d9   :  { %3650 = vtanh.f32 %v2249_v7 }
0x22da   :  { %3652 = vpow2.f32 %v2990_v40 }
0x22e3   :  { %v3651_v56 = vpop.eup %3650 }
0x22e4   :  { %2253 = vrot.lane.b32.xlu0 %v3651_v56, %s3710_s1  ;;  %v3653_v48 = vpop.eup %3652 }
0x22e5   :  { %v2238_v13 = vadd.f32 1.0, %v3653_v48 }
0x22e7   :  { %3654 = vrcp.f32 %v2238_v13 }
0x22f1   :  { %v3655_v6 = vpop.eup %3654 }
0x22f2   :  { %v2251_v60 = vsub.f32 1.0, %v3655_v6  ;;  %v2259_v18 = vmul.f32 %v3655_v6, %v2257_v17 }
0x2356   :  { %v2254_v14 = vpop.permute.xlu0 %2253 }
0x2357   :  { %v2256_v57 = vmul.f32 %v2254_v14, %v2251_v60 }
0x2359   :  { %v2260_v20 = vadd.f32 %v2259_v18, %v2256_v57 }
0x235b   :  { %v2262_v22 = vrot.slane %v2260_v20, 4  ;;  %v2826_v24 = vsel %vm2825_vm7, %v2824_v21, %v2260_v20  ;;  %v2370_v26 = vrot.slane %v2260_v20, 6 }
0x235d   :  { %3198 = vmatmul.mubr.msk.f32.vlgmr.msra.gmra.mrb[20].mxu0 %vm442_vm3, %v2262_v22 }
0x235e   :  { %3462 = vmatpush3.bf16.msra.mxu0 %v4416_v43  ;;  %3219 = vmatprep.mubr.msk.f32.mxu0 %vm3713_vm5, %v3707_v3 }
0x235f   :  { %3463 = vmatprep.subr.bf16.mxu0 %v3712_v35 }
0x2362   :  { %3465 = vmatpush3.bf16.msra.mxu0 %v4438_v33 }
0x2363   :  { %3472 = vmatprep.subr.bf16.mxu0 %v3712_v35 }
0x2430   :  { %v2331_v47 = vpop.f32.mrb[20].mxu0 }
0x2431   :  { %v2332_v25 = vadd.f32 %v4457_v52, %v2331_v47  ;;  %v3199_v19 = vpop.f32.mrb[21].mxu0 }
0x2433   :  { %v2336_v28 = vrot.slane %v2332_v25, 2 }
0x2435   :  { %2354 = vrot.lane.b32.xlu0 %v2336_v28, %s3711_s9  ;;  %2337 = vrot.lane.b32.xlu1 %v2336_v28, %s3710_s1 }
0x24a7   :  { %v2338_v30 = vpop.permute.xlu1 %2337  ;;  %v2355_v38 = vpop.permute.xlu0 %2354 }
0x24a8   :  { %v2340_v9 = vadd.f32 %v2338_v30, %v3983_v0  ;;  %v2347_v31 = vadd.f32 %v2338_v30, %v3958_v46 }
0x24aa   :  { %v2992_v12 = vmul.f32 -1.442695, %v2340_v9  ;;  %v2993_v0 = vmul.f32 -1.442695, %v2347_v31 }
0x24ac   :  { %3656 = vpow2.f32 %v2992_v12 }
0x24b6   :  { %v3657_v32 = vpop.eup %3656 }
0x24b7   :  { %v2344_v36 = vadd.f32 1.0, %v3657_v32 }
0x24b9   :  { %3658 = vrcp.f32 %v2344_v36 }
0x24c3   :  { %v3659_v54 = vpop.eup %3658 }
0x24c4   :  { %v2357_v39 = vmul.f32 %v3659_v54, %v2355_v38 }
0x24c6   :  { %2359 = vrot.lane.b32.xlu1 %v2357_v39, %s3709_s7 }
0x2538   :  { %v2360_v41 = vpop.permute.xlu1 %2359 }
0x2539   :  { %v2362_v11 = vadd.f32 %v2360_v41, %v3958_v46 }
0x253b   :  { %3660 = vtanh.f32 %v2362_v11 }
0x253c   :  { %3662 = vpow2.f32 %v2993_v0 }
0x2545   :  { %v3661_v42 = vpop.eup %3660 }
0x2546   :  { %2366 = vrot.lane.b32.xlu0 %v3661_v42, %s3710_s1  ;;  %v3663_v45 = vpop.eup %3662 }
0x2547   :  { %v2351_v15 = vadd.f32 1.0, %v3663_v45 }
0x2549   :  { %3664 = vrcp.f32 %v2351_v15 }
0x2553   :  { %v3665_v50 = vpop.eup %3664 }
0x2554   :  { %v2364_v16 = vsub.f32 1.0, %v3665_v50  ;;  %v2372_v44 = vmul.f32 %v3665_v50, %v2370_v26 }
0x25b8   :  { %v2367_v27 = vpop.permute.xlu0 %2366 }
0x25b9   :  { %v2369_v34 = vmul.f32 %v2367_v27, %v2364_v16 }
0x25bb   :  { %v2373_v29 = vadd.f32 %v2372_v44, %v2369_v34 }
0x25bd   :  { %v2375_v37 = vrot.slane %v2373_v29, 6  ;;  %v4520_v53 = vsel %vm2827_vm8, %v2826_v24, %v2373_v29 }
0x25bf   :  { %3209 = vmatmul.mubr.msk.f32.vlgmr.msra.gmra.mrb[14].mxu1 %vm442_vm3, %v2375_v37 }
0x25c0   :  { %3468 = vmatpush3.bf16.msra.mxu1 %v4416_v43  ;;  %3230 = vmatprep.mubr.msk.f32.mxu1 %vm3713_vm5, %v3707_v3 }
0x25c1   :  { %3469 = vmatprep.subr.bf16.mxu1 %v3712_v35 }
0x25c4   :  { %3471 = vmatpush3.bf16.msra.mxu1 %v4438_v33 }
0x2692   :  { %v2444_v46 = vpop.f32.mrb[14].mxu1 }
0x2693   :  { %v2445_v55 = vadd.f32 %v4457_v52, %v2444_v46  ;;  %v3210_v58 = vpop.f32.mrb[15].mxu1 }
0x2695   :  { %2466 = vrot.lane.b32.xlu0 %v2445_v55, %s3711_s9  ;;  %2449 = vrot.lane.b32.xlu1 %v2445_v55, %s3710_s1 }
0x2707   :  { %v2450_v61 = vpop.permute.xlu1 %2449  ;;  %v2467_v4 = vpop.permute.xlu0 %2466 }
0x2708   :  { %v2452_v62 = vadd.f32 %v2450_v61, %v3960_v49  ;;  %v2459_v40 = vadd.f32 %v2450_v61, %v3962_v51 }
0x270a   :  { %v2995_v59 = vmul.f32 -1.442695, %v2452_v62  ;;  %v2996_v48 = vmul.f32 -1.442695, %v2459_v40 }
0x270c   :  { %3666 = vpow2.f32 %v2995_v59 }
0x2716   :  { %v3667_v63 = vpop.eup %3666 }
0x2717   :  { %v2456_v1 = vadd.f32 1.0, %v3667_v63 }
0x2719   :  { %3668 = vrcp.f32 %v2456_v1 }
0x2723   :  { %v3669_v2 = vpop.eup %3668 }
0x2724   :  { %v2469_v5 = vmul.f32 %v3669_v2, %v2467_v4 }
0x2726   :  { %2471 = vrot.lane.b32.xlu1 %v2469_v5, %s3709_s7 }
0x2798   :  { %v2472_v7 = vpop.permute.xlu1 %2471 }
0x2799   :  { %v2474_v56 = vadd.f32 %v2472_v7, %v3962_v51 }
0x279b   :  { %3670 = vtanh.f32 %v2474_v56 }
0x279c   :  { %3672 = vpow2.f32 %v2996_v48 }
0x27a5   :  { %v3671_v8 = vpop.eup %3670 }
0x27a6   :  { %2478 = vrot.lane.b32.xlu0 %v3671_v8, %s3710_s1  ;;  %v3673_v13 = vpop.eup %3672 }
0x27a7   :  { %v2463_v6 = vadd.f32 1.0, %v3673_v13 }
0x27a9   :  { %3674 = vrcp.f32 %v2463_v6 }
0x27b3   :  { %v3675_v60 = vpop.eup %3674 }
0x27b4   :  { %v2476_v17 = vsub.f32 1.0, %v3675_v60  ;;  %v2483_v18 = vmul.f32 %v3675_v60, %v2375_v37 }
0x2818   :  { %v2479_v14 = vpop.permute.xlu0 %2478 }
0x2819   :  { %v2481_v57 = vmul.f32 %v2479_v14, %v2476_v17 }
0x281b   :  { %v4536_v20 = vadd.f32 %v2483_v18, %v2481_v57 }
0x281d   :  { %3220 = vmatmul.mubr.msk.f32.vlgmr.msra.gmra.mrb[22].mxu0 %vm442_vm3, %v4536_v20  ;;  %v2593_v42 = vrot.slane %v4536_v20, 6 }
0x281e   :  { %3474 = vmatpush3.bf16.msra.mxu0 %v4416_v43  ;;  %3241 = vmatprep.mubr.msk.f32.mxu0 %vm3713_vm5, %v3707_v3 }
0x281f   :  { %3475 = vmatprep.subr.bf16.mxu0 %v3712_v35 }
0x2822   :  { %3477 = vmatpush3.bf16.msra.mxu0 %v4438_v33 }
0x28f0   :  { %v2554_v21 = vpop.f32.mrb[22].mxu0 }
0x28f1   :  { %v2555_v22 = vadd.f32 %v4457_v52, %v2554_v21  ;;  %v3221_v24 = vpop.f32.mrb[23].mxu0 }
0x28f3   :  { %v2559_v47 = vrot.slane %v2555_v22, 6 }
0x28f5   :  { %2577 = vrot.lane.b32.xlu0 %v2559_v47, %s3711_s9  ;;  %2560 = vrot.lane.b32.xlu1 %v2559_v47, %s3710_s1 }
0x2967   :  { %v2561_v25 = vpop.permute.xlu1 %2560  ;;  %v2578_v30 = vpop.permute.xlu0 %2577 }
0x2968   :  { %v2563_v19 = vadd.f32 %v2561_v25, %v3960_v49  ;;  %v2570_v36 = vadd.f32 %v2561_v25, %v3962_v51 }
0x296a   :  { %v2998_v43 = vmul.f32 -1.442695, %v2563_v19  ;;  %v2999_v54 = vmul.f32 -1.442695, %v2570_v36 }
0x296c   :  { %3676 = vpow2.f32 %v2998_v43 }
0x2976   :  { %v3677_v28 = vpop.eup %3676 }
0x2977   :  { %v2567_v3 = vadd.f32 1.0, %v3677_v28 }
0x2979   :  { %3678 = vrcp.f32 %v2567_v3 }
0x2983   :  { %v3679_v35 = vpop.eup %3678 }
0x2984   :  { %v2580_v33 = vmul.f32 %v3679_v35, %v2578_v30  ;;  %v2833_v35 = vld [vmem:[%s4627_s18 + $0x8] sm:$0xff] }
0x2986   :  { %2582 = vrot.lane.b32.xlu1 %v2580_v33, %s3709_s7  ;;  %v2834_v33 = vld [vmem:[%s4627_s18 + $0x10] sm:$0xff] }
0x29f8   :  { %v2583_v9 = vpop.permute.xlu1 %2582 }
0x29f9   :  { %v2585_v12 = vadd.f32 %v2583_v9, %v3962_v51  ;;  %v2835_v9 = vld [vmem:[%s4627_s18 + $0x18] sm:$0xff] }
0x29fb   :  { %3680 = vtanh.f32 %v2585_v12 }
0x29fc   :  { %3682 = vpow2.f32 %v2999_v54 }
0x2a05   :  { %v3681_v32 = vpop.eup %3680 }
0x2a06   :  { %2589 = vrot.lane.b32.xlu0 %v3681_v32, %s3710_s1  ;;  %v3683_v38 = vpop.eup %3682  ;;  %v3482_v32 = vpack.c.bf16 %v2835_v9, %v2834_v33 }
0x2a07   :  { %v2574_v39 = vadd.f32 1.0, %v3683_v38 }
0x2a09   :  { %3684 = vrcp.f32 %v2574_v39 }
0x2a13   :  { %v3685_v41 = vpop.eup %3684 }
0x2a14   :  { %v2587_v11 = vsub.f32 1.0, %v3685_v41  ;;  %v2595_v0 = vmul.f32 %v3685_v41, %v2593_v42 }
0x2a78   :  { %v2590_v31 = vpop.permute.xlu0 %2589 }
0x2a79   :  { %v2592_v45 = vmul.f32 %v2590_v31, %v2587_v11 }
0x2a7b   :  { %v2596_v15 = vadd.f32 %v2595_v0, %v2592_v45 }
0x2a7d   :  { %v2598_v50 = vrot.slane %v2596_v15, 2  ;;  %v2706_v8 = vrot.slane %v2596_v15, 6  ;;  %v2829_v60 = vsel %vm2823_vm0, %v4536_v20, %v2596_v15 }
0x2a7f   :  { %3231 = vmatmul.mubr.msk.f32.vlgmr.msra.gmra.mrb[16].mxu1 %vm442_vm3, %v2598_v50 }
0x2a80   :  { %3252 = vmatprep.mubr.msk.f32.mxu1 %vm442_vm3, %v4520_v53 }
0x2b52   :  { %v2667_v16 = vpop.f32.mrb[16].mxu1 }
0x2b53   :  { %v2668_v26 = vadd.f32 %v4457_v52, %v2667_v16  ;;  %v3232_v27 = vpop.f32.mrb[17].mxu1 }
0x2b55   :  { %v2672_v44 = vrot.slane %v2668_v26, 4 }
0x2b57   :  { %2690 = vrot.lane.b32.xlu0 %v2672_v44, %s3711_s9  ;;  %2673 = vrot.lane.b32.xlu1 %v2672_v44, %s3710_s1 }
0x2bc9   :  { %v2674_v34 = vpop.permute.xlu1 %2673  ;;  %v2691_v61 = vpop.permute.xlu0 %2690 }
0x2bca   :  { %v2676_v29 = vadd.f32 %v2674_v34, %v3960_v49  ;;  %v2683_v1 = vadd.f32 %v2674_v34, %v3962_v51 }
0x2bcc   :  { %v3001_v37 = vmul.f32 -1.442695, %v2676_v29  ;;  %v3002_v2 = vmul.f32 -1.442695, %v2683_v1 }
0x2bce   :  { %3686 = vpow2.f32 %v3001_v37 }
0x2bd8   :  { %v3687_v46 = vpop.eup %3686 }
0x2bd9   :  { %v2680_v55 = vadd.f32 1.0, %v3687_v46 }
0x2bdb   :  { %3688 = vrcp.f32 %v2680_v55 }
0x2be5   :  { %v3689_v58 = vpop.eup %3688 }
0x2be6   :  { %v2693_v53 = vmul.f32 %v3689_v58, %v2691_v61 }
0x2be8   :  { %2695 = vrot.lane.b32.xlu1 %v2693_v53, %s3709_s7 }
0x2c5a   :  { %v2696_v62 = vpop.permute.xlu1 %2695 }
0x2c5b   :  { %v2698_v59 = vadd.f32 %v2696_v62, %v3962_v51 }
0x2c5d   :  { %3690 = vtanh.f32 %v2698_v59 }
0x2c5e   :  { %3692 = vpow2.f32 %v3002_v2 }
0x2c67   :  { %v3691_v63 = vpop.eup %3690 }
0x2c68   :  { %2702 = vrot.lane.b32.xlu0 %v3691_v63, %s3710_s1  ;;  %v3693_v4 = vpop.eup %3692 }
0x2c69   :  { %v2687_v5 = vadd.f32 1.0, %v3693_v4 }
0x2c6b   :  { %3694 = vrcp.f32 %v2687_v5 }
0x2c75   :  { %v3695_v7 = vpop.eup %3694 }
0x2c76   :  { %v2700_v56 = vsub.f32 1.0, %v3695_v7  ;;  %v2708_v48 = vmul.f32 %v3695_v7, %v2706_v8 }
0x2cda   :  { %v2703_v40 = vpop.permute.xlu0 %2702 }
0x2cdb   :  { %v2705_v13 = vmul.f32 %v2703_v40, %v2700_v56 }
0x2cdd   :  { %v2709_v6 = vadd.f32 %v2708_v48, %v2705_v13 }
0x2cdf   :  { %v2711_v17 = vrot.slane %v2709_v6, 4  ;;  %v2830_v14 = vsel %vm2825_vm7, %v2829_v60, %v2709_v6  ;;  %v2819_v0 = vrot.slane %v2709_v6, 6 }
0x2ce1   :  { %3242 = vmatmul.mubr.msk.f32.vlgmr.msra.gmra.mrb[24].mxu0 %vm442_vm3, %v2711_v17 }
0x2db4   :  { %v2780_v18 = vpop.f32.mrb[24].mxu0 }
0x2db5   :  { %v2781_v57 = vadd.f32 %v4457_v52, %v2780_v18  ;;  %v3243_v21 = vpop.f32.mrb[25].mxu0  ;;  %v2832_v52 = vld [vmem:[%s4627_s18] sm:$0xff] }
0x2db6   :  { %v3478_v30 = vpack.c.bf16 %v2833_v35, %v2832_v52 }
0x2db7   :  { %v2785_v22 = vrot.slane %v2781_v57, 2 }
0x2db8   :  { %3479 = vmatprep.subr.bf16.mxu1 %v3478_v30 }
0x2db9   :  { %2803 = vrot.lane.b32.xlu0 %v2785_v22, %s3711_s9  ;;  %2786 = vrot.lane.b32.xlu1 %v2785_v22, %s3710_s1 }
0x2dba   :  { %3481 = vmatpush3.bf16.msra.mxu1 %v3478_v30 }
0x2dbb   :  { %3483 = vmatprep.subr.bf16.mxu1 %v3482_v32 }
0x2dbe   :  { %3485 = vmatpush3.bf16.msra.mxu1 %v3482_v32 }
0x2e2b   :  { %v2787_v24 = vpop.permute.xlu1 %2786  ;;  %v2804_v28 = vpop.permute.xlu0 %2803 }
0x2e2c   :  { %v2789_v47 = vadd.f32 %v2787_v24, %v3960_v49  ;;  %v2796_v38 = vadd.f32 %v2787_v24, %v3962_v51 }
0x2e2e   :  { %v3004_v25 = vmul.f32 -1.442695, %v2789_v47  ;;  %v3005_v39 = vmul.f32 -1.442695, %v2796_v38 }
0x2e30   :  { %3696 = vpow2.f32 %v3004_v25 }
0x2e3a   :  { %v3697_v20 = vpop.eup %3696 }
0x2e3b   :  { %v2793_v19 = vadd.f32 1.0, %v3697_v20 }
0x2e3d   :  { %3698 = vrcp.f32 %v2793_v19 }
0x2e47   :  { %v3699_v43 = vpop.eup %3698 }
0x2e48   :  { %v2806_v3 = vmul.f32 %v3699_v43, %v2804_v28 }
0x2e4a   :  { %2808 = vrot.lane.b32.xlu1 %v2806_v3, %s3709_s7 }
0x2e4e   :  { %2926 = vrot.lane.b32.xlu1 %v4424_v23, %s3711_s9 }
0x2ebc   :  { %v2809_v49 = vpop.permute.xlu1 %2808 }
0x2ebd   :  { %v2811_v12 = vadd.f32 %v2809_v49, %v3962_v51  ;;  %v3006_v51 = vld [vmem:[%s4629_s19] ss:$0 sm:$0xff] }
0x2ebf   :  { %3700 = vtanh.f32 %v2811_v12 }
0x2ec0   :  { %v2927_v36 = vpop.permute.xlu1 %2926  ;;  %3702 = vpow2.f32 %v3005_v39 }
0x2ec1   :  { %v2929_v23 = vsel %vm442_vm3, %v4400_v10, %v2927_v36 }
0x2ec2   :  { %2931 = vst.msk [vmem:[%s4628_s21] sm:$0x3] %vm2930_vm9, %v2929_v23 }
0x2ec9   :  { %v3701_v54 = vpop.eup %3700 }
0x2eca   :  { %2815 = vrot.lane.b32.xlu0 %v3701_v54, %s3710_s1  ;;  %v3703_v41 = vpop.eup %3702 }
0x2ecb   :  { %v2800_v11 = vadd.f32 1.0, %v3703_v41 }
0x2ecd   :  { %3704 = vrcp.f32 %v2800_v11 }
0x2ed7   :  { %v3705_v42 = vpop.eup %3704 }
0x2ed8   :  { %v2813_v31 = vsub.f32 1.0, %v3705_v42  ;;  %v2821_v15 = vmul.f32 %v3705_v42, %v2819_v0 }
0x2f3c   :  { %v2816_v45 = vpop.permute.xlu0 %2815 }
0x2f3d   :  { %v2818_v10 = vmul.f32 %v2816_v45, %v2813_v31 }
0x2f3f   :  { %v2822_v50 = vadd.f32 %v2821_v15, %v2818_v10 }
0x2f41   :  { %v2831_v16 = vsel %vm2827_vm8, %v2830_v14, %v2822_v50 }
0x2f42   :  { %3253 = vmatmul.mubr.msk.f32.vlgmr.msra.gmra.mrb[18].mxu1 %vm442_vm3, %v2831_v16 }
0x3015   :  { %v3254_v26 = vpop.f32.mrb[18].mxu1 }
0x3016   :  { %v2921_v27 = vadd.f32 %v3254_v26, %v3006_v51  ;;  %v2915_v44 = vpop.f32.mrb[19].mxu1 }
0x3017   :  { %v2916_v34 = vadd.f32 %v3006_v51, %v2915_v44 }
0x3018   :  { %2925 = vst.msk [vmem:[%s4630_s20 + $0x8] sm:$0xff] %vm290_vm4, %v2921_v27 }
0x3019   :  { %2924 = vst.msk [vmem:[%s4630_s20] sm:$0xff] %vm290_vm4, %v2916_v34 }

</bundles_post_ra>
